<compile_context>
chip_gen: v5e
topology: v5e:2x2
jax: 0.10.0
libtpu: 0.0.40
codegen_flags: <defaults>
</compile_context>

<pallas_src>
import functools

import jax
import jax.numpy as jnp
from jax import lax
from jax.experimental import pallas as pl
from jax.experimental.pallas import tpu as pltpu

EPS_BN = 1e-5
EPS_LN = 1e-5


# ----------------------------------------------------------------------------
# Fused kernel: folded in_conv (3 temporal taps) + patch merge + LN + reduction
# ----------------------------------------------------------------------------
def _fused_patch_merge_kernel(x_ref, wc_ref, bconv_ref, wred_ref, colsum_ref,
                              bred_ref, o_ref):
    # x_ref     : (1, T, RH, 2, W2, 2C)  input tile; dim 3 = h-parity,
    #             lanes = [w-even channels | w-odd channels]
    # wc_ref    : (C, 3C)   folded in_conv tap weights [A0^T | A1^T | A2^T]
    # bconv_ref : (T, C)    per-frame conv bias (temporal-boundary corrected)
    # wred_ref  : (4, C, C) LN-gamma-folded reduction weights, one per merge stream
    # colsum_ref: (1, C)    column sums of the gamma-folded reduction weight
    # bred_ref  : (1, C)    ln_beta @ Wred^T
    # o_ref     : (1, T, RH, W2, C)
    _, T, RH, _, W2, C2 = x_ref.shape
    C = C2 // 2
    M = RH * W2
    N = T * M
    f32 = jnp.float32
    mmdt = wc_ref.dtype

    wc = wc_ref[...]                              # (C, 3C)
    bias_t = bconv_ref[...][:, None, :]           # (T, 1, C), f32

    sum_all = None     # LN sum over all 4C merged features
    sum_sq = None      # LN sum of squares
    red = None         # gamma-folded reduction accumulator
    for hp in (0, 1):                              # h parity (static unroll)
        xh = x_ref[0, :, :, hp:hp + 1, :, :].reshape(T, RH, W2, C2)
        for wp in (0, 1):                          # w parity
            s = 2 * wp + hp                        # stream id in torch concat order
            xs = xh[:, :, :, wp * C:(wp + 1) * C]  # (T, RH, W2, C)
            xs2 = xs.reshape(N, C).astype(mmdt)    # free: W2 % 8 == 0
            # one wide matmul covering all three temporal taps of the folded conv
            taps = jnp.dot(xs2, wc, preferred_element_type=f32)   # (N, 3C)
            taps = taps.reshape(T, M, 3 * C)
            t_prev = taps[:, :, 0:C]          # tap k=0: frame tau feeds output tau+1
            t_self = taps[:, :, C:2 * C]      # tap k=1
            t_next = taps[:, :, 2 * C:3 * C]  # tap k=2: frame tau feeds output tau-1
            y = t_self + bias_t
            if T > 1:
                zero = jnp.zeros((1, M, C), f32)
                y = y + jnp.concatenate([zero, t_prev[:T - 1]], axis=0)
                y = y + jnp.concatenate([t_next[1:], zero], axis=0)
            # LN statistics accumulated over the four merge streams (4C features)
            ssum = jnp.sum(y, axis=-1, keepdims=True)
            ssq = jnp.sum(y * y, axis=-1, keepdims=True)
            r = jnp.dot(y.reshape(N, C).astype(mmdt), wred_ref[s],
                        preferred_element_type=f32).reshape(T, M, C)
            sum_all = ssum if sum_all is None else sum_all + ssum
            sum_sq = ssq if sum_sq is None else sum_sq + ssq
            red = r if red is None else red + r

    inv_4c = 1.0 / (4 * C)
    mu = sum_all * inv_4c                          # (T, M, 1)
    var = sum_sq * inv_4c - mu * mu
    inv = lax.rsqrt(var + EPS_LN)
    out = inv * (red - mu * colsum_ref[...]) + bred_ref[...]
    o_ref[0] = out.reshape(T, RH, W2, C).astype(o_ref.dtype)


def _run_fused(xr, wc, bconv, wred, colsum, bred, *, rows_per_tile, out_dtype,
               vmem_limit):
    B, T, H2, _, W2, C2 = xr.shape
    C = C2 // 2
    grid = (B, H2 // rows_per_tile)
    return pl.pallas_call(
        _fused_patch_merge_kernel,
        out_shape=jax.ShapeDtypeStruct((B, T, H2, W2, C), out_dtype),
        grid=grid,
        in_specs=[
            pl.BlockSpec((1, T, rows_per_tile, 2, W2, C2),
                         lambda b, j: (b, 0, j, 0, 0, 0)),
            pl.BlockSpec((C, 3 * C), lambda b, j: (0, 0)),
            pl.BlockSpec((T, C), lambda b, j: (0, 0)),
            pl.BlockSpec((4, C, C), lambda b, j: (0, 0, 0)),
            pl.BlockSpec((1, C), lambda b, j: (0, 0)),
            pl.BlockSpec((1, C), lambda b, j: (0, 0)),
        ],
        out_specs=pl.BlockSpec((1, T, rows_per_tile, W2, C),
                               lambda b, j: (b, 0, j, 0, 0)),
        compiler_params=pltpu.CompilerParams(
            dimension_semantics=("parallel", "parallel"),
            vmem_limit_bytes=vmem_limit),
    )(xr, wc, bconv, wred, colsum, bred)


# ----------------------------------------------------------------------------
# Chip-aware VMEM budgeting and spatial tile selection
# ----------------------------------------------------------------------------
def _vmem_limit_bytes():
    """Scoped-VMEM limit derived from the chip (v7x: 64 MiB/TC, v5e/v6e: 128 MiB)."""
    cap = 64 * 1024 * 1024
    try:
        info = pltpu.get_tpu_info()
        cap = int(getattr(info, "vmem_capacity_bytes", 0)) or cap
    except Exception:
        pass
    return min(int(cap * 0.70), 100 * 1024 * 1024)


def _pick_rows_per_tile(B, T, H2, W2, C, xbytes, obytes, budget_bytes):
    """Largest divisor of H2 whose per-step footprint fits, keeping >=2 grid steps."""
    def footprint(rh):
        m = T * rh * W2
        blk_in = 4 * m * C * xbytes          # (1, T, rh, 2, W2, 2C), double-buffered
        blk_out = m * C * obytes
        temps = 6 * m * C * 4                # f32 stream value / taps / red accumulator
        return 2 * blk_in + 2 * blk_out + temps

    divisors = [r for r in range(1, H2 + 1) if H2 % r == 0]
    fitting = [r for r in divisors if footprint(r) <= budget_bytes]
    if not fitting:
        return 1
    for min_steps in (4, 2, 1):              # keep the parallel grid busy (v7x: 2 TCs)
        cands = [r for r in fitting if B * (H2 // r) >= min_steps]
        if cands:
            return max(cands)
    return max(fitting)


# ----------------------------------------------------------------------------
# Parameter construction + algebraic folding (plain JAX glue on tiny tensors)
# ----------------------------------------------------------------------------
def make_params(key, C):
    ks = jax.random.split(key, 16)
    C4 = 4 * C

    def bn_params(k):
        k1, k2, k3, k4 = jax.random.split(k, 4)
        gamma = 1.0 + 0.1 * jax.random.normal(k1, (C,), jnp.float32)
        beta = 0.05 * jax.random.normal(k2, (C,), jnp.float32)
        mean = 0.1 * jax.random.normal(k3, (C,), jnp.float32)
        var = jax.random.uniform(k4, (C,), jnp.float32, 0.5, 1.5)
        return gamma, beta, mean, var

    return dict(
        W1=0.2 * jax.random.normal(ks[0], (C, C), jnp.float32),        # (Cout, Cin)
        bn1=bn_params(ks[1]),
        W2=0.2 * jax.random.normal(ks[2], (C, C, 3), jnp.float32),     # (Cout, Cin, kT)
        bn2=bn_params(ks[3]),
        W3=0.2 * jax.random.normal(ks[4], (C, C), jnp.float32),
        bn3=bn_params(ks[5]),
        ln_g=1.0 + 0.1 * jax.random.normal(ks[6], (C4,), jnp.float32),
        ln_b=0.05 * jax.random.normal(ks[7], (C4,), jnp.float32),
        Wred=0.2 * jax.random.normal(ks[8], (C, C4), jnp.float32),     # Linear (out, in)
    )


def _prepare_fused_params(params, T, mm_dtype):
    """Fold conv1+BN1 / conv2+BN2 / conv3+BN3 into 3 tap matrices + per-frame bias,
    and fold LN gamma/beta into the reduction weights / bias."""
    C = params["W1"].shape[0]
    f32 = jnp.float32

    def bn_fold(bn):
        g, b, m, v = bn
        s = g / jnp.sqrt(v + EPS_BN)
        return s, b - m * s

    s1, c1 = bn_fold(params["bn1"])
    s2, c2 = bn_fold(params["bn2"])
    s3, c3 = bn_fold(params["bn3"])

    W3e = params["W3"] * s3[:, None]                                   # S3 W3
    Bk = [W3e @ (params["W2"][:, :, k] * s2[:, None]) for k in range(3)]
    d = W3e @ c2 + c3
    S1W1 = params["W1"] * s1[:, None]
    Ak = [b @ S1W1 for b in Bk]                                        # fully folded taps

    # per-frame bias; zero-padded temporal taps must not carry the c1 path
    bias_mid = (Bk[0] + Bk[1] + Bk[2]) @ c1 + d
    bconv = jnp.tile(bias_mid[None, :], (T, 1))
    bconv = bconv.at[0].add(-(Bk[0] @ c1))
    bconv = bconv.at[T - 1].add(-(Bk[2] @ c1))

    wc = jnp.concatenate([a.T for a in Ak], axis=1)                    # (C, 3C)

    # reduction: LN gamma folded into weights, beta folded into a constant bias;
    # 4C concat order is [x0, x1, x2, x3] (h/w parity streams).
    Wg = params["Wred"] * params["ln_g"][None, :]                      # (C, 4C)
    G = Wg.T                                                           # (4C, C)
    wred = jnp.stack([G[s * C:(s + 1) * C] for s in range(4)], axis=0)  # (4, C, C)
    colsum = jnp.sum(G, axis=0, keepdims=True)                         # (1, C)
    bred = params["ln_b"][None, :] @ params["Wred"].T                  # (1, C)

    return (wc.astype(mm_dtype), bconv.astype(f32), wred.astype(mm_dtype),
            colsum.astype(f32), bred.astype(f32))


# ----------------------------------------------------------------------------
# Forward wrappers
# ----------------------------------------------------------------------------
@functools.partial(jax.jit, static_argnames=("rows_per_tile", "mm_dtype", "out_dtype"))
def patch_merge_3d(x, params, *, rows_per_tile=None, mm_dtype=jnp.bfloat16,
                   out_dtype=None):
    """Fused PatchMerge3D, channels-last: (B, T, H, W, C) -> (B, T, H/2, W/2, C).

    No HBM relayout passes: the only host-side transform is a free reshape that
    exposes the h-parity as a block dim and packs [w-even C | w-odd C] in lanes."""
    B, T, H, W, C = x.shape
    assert H % 2 == 0 and W % 2 == 0, "odd-size pad quirk not supported (even H/W)"
    H2, W2 = H // 2, W // 2
    assert W2 % 8 == 0, "fused path requires W/2 to be a multiple of 8"
    out_dtype = x.dtype if out_dtype is None else out_dtype

    wc, bconv, wred, colsum, bred = _prepare_fused_params(params, T, mm_dtype)

    vmem_limit = _vmem_limit_bytes()
    if rows_per_tile is None:
        rows_per_tile = _pick_rows_per_tile(
            B, T, H2, W2, C, x.dtype.itemsize, jnp.dtype(out_dtype).itemsize,
            budget_bytes=int(vmem_limit * 0.6))
    assert H2 % rows_per_tile == 0, "rows_per_tile must divide H/2"

    xr = x.reshape(B, T, H2, 2, W2, 2 * C)      # FREE: pure split/merge, no relayout
    return _run_fused(xr, wc, bconv, wred, colsum, bred,
                      rows_per_tile=rows_per_tile, out_dtype=out_dtype,
                      vmem_limit=vmem_limit)


def patch_merge_3d_ncdhw(x, params, **kwargs):
    """Drop-in NCDHW wrapper: (B, C, T, H, W) -> (B, C, T, H/2, W/2).

    The two transposes below are full HBM relayout passes; production code should
    call `patch_merge_3d` with channels-last tensors instead (see perf review)."""
    x_cl = jnp.transpose(x, (0, 2, 3, 4, 1))
    out_cl = patch_merge_3d(x_cl, params, **kwargs)
    return jnp.transpose(out_cl, (0, 4, 1, 2, 3))


# ----------------------------------------------------------------------------
# Pure-JAX reference (unfused, original op order) for correctness checking
# ----------------------------------------------------------------------------
def reference_forward(x, params):
    B, C, T, H, W = x.shape

    def bn(y, p):
        g, b, m, v = p
        s = g / jnp.sqrt(v + EPS_BN)
        return y * s[None, :, None, None, None] + (b - m * s)[None, :, None, None, None]

    y = jnp.einsum("bcthw,oc->bothw", x, params["W1"])
    y = bn(y, params["bn1"])
    yp = jnp.pad(y, ((0, 0), (0, 0), (1, 1), (0, 0), (0, 0)))
    y = sum(jnp.einsum("bcthw,oc->bothw", yp[:, :, k:k + T], params["W2"][:, :, k])
            for k in range(3))
    y = bn(y, params["bn2"])
    y = jnp.einsum("bcthw,oc->bothw", y, params["W3"])
    y = bn(y, params["bn3"])

    y = jnp.transpose(y, (0, 2, 3, 4, 1))               # b t h w c
    x0 = y[:, :, 0::2, 0::2, :]
    x1 = y[:, :, 1::2, 0::2, :]
    x2 = y[:, :, 0::2, 1::2, :]
    x3 = y[:, :, 1::2, 1::2, :]
    y = jnp.concatenate([x0, x1, x2, x3], axis=-1)
    mu = y.mean(-1, keepdims=True)
    var = ((y - mu) ** 2).mean(-1, keepdims=True)
    y = (y - mu) / jnp.sqrt(var + EPS_LN) * params["ln_g"] + params["ln_b"]
    y = jnp.einsum("bthwc,oc->bthwo", y, params["Wred"])
    return jnp.transpose(y, (0, 4, 1, 2, 3))


if __name__ == "__main__":
    B, C, T, H, W = 2, 8, 4, 16, 16
    key = jax.random.PRNGKey(0)
    k_x, k_p = jax.random.split(key)
    x = jax.random.normal(k_x, (B, C, T, H, W), jnp.float32)   # NCDHW (Conv3d layout)
    params = make_params(k_p, C)

    ref = reference_forward(x, params)                          # (B, C, T, H/2, W/2)
    ref_cl = jnp.transpose(ref, (0, 2, 3, 4, 1))                # (B, T, H/2, W/2, C)

    # Primary channels-last path (no layout passes anywhere); f32 for a tight check.
    x_cl = jnp.transpose(x, (0, 2, 3, 4, 1))                    # harness-only relayout
    out_cl = jax.block_until_ready(patch_merge_3d(x_cl, params, mm_dtype=jnp.float32))
    assert out_cl.shape == (B, T, H // 2, W // 2, C), out_cl.shape
    assert jnp.allclose(out_cl, ref_cl, rtol=1e-4, atol=1e-4), \
        float(jnp.abs(out_cl - ref_cl).max())

    # NCDHW drop-in wrapper (keeps the original module's Conv3d layout contract).
    out_nc = jax.block_until_ready(
        patch_merge_3d_ncdhw(x, params, mm_dtype=jnp.float32))
    assert out_nc.shape == ref.shape, out_nc.shape
    assert jnp.allclose(out_nc, ref, rtol=1e-4, atol=1e-4), \
        float(jnp.abs(out_nc - ref).max())

    # Default path: bf16 activations + bf16 matmul operands + bf16 output
    # (halves HBM traffic on the DMA-bound portion); LN math stays f32.
    out_bf = jax.block_until_ready(patch_merge_3d(x_cl.astype(jnp.bfloat16), params))
    assert out_bf.dtype == jnp.bfloat16
    assert jnp.allclose(out_bf.astype(jnp.float32), ref_cl, rtol=1e-1, atol=1e-1), \
        float(jnp.abs(out_bf.astype(jnp.float32) - ref_cl).max())

    print("KERNEL_OK")
</pallas_src>

<mosaic_0001>
module attributes {stable_mosaic.version = 11 : i64} {
  func.func @_fused_patch_merge_kernel(%arg0: i32, %arg1: i32, %arg2: memref<1x4x4x2x8x16xf32, #tpu.memory_space<vmem>>, %arg3: memref<8x24xf32, #tpu.memory_space<vmem>>, %arg4: memref<4x8xf32, #tpu.memory_space<vmem>>, %arg5: memref<4x8x8xf32, #tpu.memory_space<vmem>>, %arg6: memref<1x8xf32, #tpu.memory_space<vmem>>, %arg7: memref<1x8xf32, #tpu.memory_space<vmem>>, %arg8: memref<1x4x4x8x8xf32, #tpu.memory_space<vmem>>) attributes {dimension_semantics = [#tpu.dimension_semantics<parallel>, #tpu.dimension_semantics<parallel>], iteration_bounds = array<i64: 2, 2>, scalar_prefetch = 0 : i64, scratch_operands = 0 : i64, tpu.core_type = #tpu.core_type<tc>, window_params = [{transform_indices = @transform_0, window_bounds = array<i64: 1, 4, 4, 2, 8, 16>}, {pipeline_mode = #tpu.pipeline_mode<synchronous>, transform_indices = @transform_1, window_bounds = array<i64: 8, 24>}, {pipeline_mode = #tpu.pipeline_mode<synchronous>, transform_indices = @transform_2, window_bounds = array<i64: 4, 8>}, {pipeline_mode = #tpu.pipeline_mode<synchronous>, transform_indices = @transform_3, window_bounds = array<i64: 4, 8, 8>}, {pipeline_mode = #tpu.pipeline_mode<synchronous>, transform_indices = @transform_4, window_bounds = array<i64: 1, 8>}, {pipeline_mode = #tpu.pipeline_mode<synchronous>, transform_indices = @transform_5, window_bounds = array<i64: 1, 8>}, {transform_indices = @transform_6, window_bounds = array<i64: 1, 4, 4, 8, 8>}]} {
    %c0 = arith.constant 0 : index
    %c0_0 = arith.constant 0 : index
    %0 = vector.load %arg3[%c0, %c0_0] : memref<8x24xf32, #tpu.memory_space<vmem>>, vector<8x24xf32>
    %c0_1 = arith.constant 0 : index
    %c0_2 = arith.constant 0 : index
    %1 = vector.load %arg4[%c0_1, %c0_2] : memref<4x8xf32, #tpu.memory_space<vmem>>, vector<4x8xf32>
    %2 = vector.shape_cast %1 : vector<4x8xf32> to vector<4x1x8xf32>
    %c0_3 = arith.constant 0 : index
    %c0_4 = arith.constant 0 : index
    %c0_5 = arith.constant 0 : index
    %c0_6 = arith.constant 0 : index
    %c0_7 = arith.constant 0 : index
    %c0_8 = arith.constant 0 : index
    %3 = vector.load %arg2[%c0_3, %c0_4, %c0_5, %c0_6, %c0_7, %c0_8] : memref<1x4x4x2x8x16xf32, #tpu.memory_space<vmem>>, vector<1x4x4x1x8x16xf32>
    %4 = vector.shape_cast %3 : vector<1x4x4x1x8x16xf32> to vector<4x4x1x8x16xf32>
    %5 = vector.shape_cast %4 : vector<4x4x1x8x16xf32> to vector<4x4x8x16xf32>
    %6 = vector.extract_strided_slice %5 {offsets = [0, 0, 0, 0], sizes = [4, 4, 8, 8], strides = [1, 1, 1, 1]} : vector<4x4x8x16xf32> to vector<4x4x8x8xf32>
    %7 = vector.shape_cast %6 : vector<4x4x8x8xf32> to vector<128x8xf32>
    %cst = arith.constant dense<0.000000e+00> : vector<128x24xf32>
    %8 = tpu.matmul %7, %0, %cst {dimension_numbers = #tpu.dot_dimension_numbers<[1], [0], [0], [1], [0, 0, 1, 1], [], []>} : vector<128x8xf32>, vector<8x24xf32>, vector<128x24xf32> -> vector<128x24xf32>
    %9 = vector.shape_cast %8 : vector<128x24xf32> to vector<4x32x24xf32>
    %10 = vector.extract_strided_slice %9 {offsets = [0, 0, 0], sizes = [4, 32, 8], strides = [1, 1, 1]} : vector<4x32x24xf32> to vector<4x32x8xf32>
    %11 = vector.extract_strided_slice %9 {offsets = [0, 0, 8], sizes = [4, 32, 8], strides = [1, 1, 1]} : vector<4x32x24xf32> to vector<4x32x8xf32>
    %12 = vector.extract_strided_slice %9 {offsets = [0, 0, 16], sizes = [4, 32, 8], strides = [1, 1, 1]} : vector<4x32x24xf32> to vector<4x32x8xf32>
    %13 = vector.broadcast %2 : vector<4x1x8xf32> to vector<4x32x8xf32>
    %14 = arith.addf %11, %13 : vector<4x32x8xf32>
    %cst_9 = arith.constant 0.000000e+00 : f32
    %15 = vector.broadcast %cst_9 : f32 to vector<1x32x8xf32>
    %16 = vector.extract_strided_slice %10 {offsets = [0, 0, 0], sizes = [3, 32, 8], strides = [1, 1, 1]} : vector<4x32x8xf32> to vector<3x32x8xf32>
    %17 = tpu.concatenate %15, %16 in 0 : vector<1x32x8xf32>, vector<3x32x8xf32> -> vector<4x32x8xf32>
    %18 = arith.addf %14, %17 : vector<4x32x8xf32>
    %19 = vector.extract_strided_slice %12 {offsets = [1, 0, 0], sizes = [3, 32, 8], strides = [1, 1, 1]} : vector<4x32x8xf32> to vector<3x32x8xf32>
    %20 = tpu.concatenate %19, %15 in 0 : vector<3x32x8xf32>, vector<1x32x8xf32> -> vector<4x32x8xf32>
    %21 = arith.addf %18, %20 : vector<4x32x8xf32>
    %cst_10 = arith.constant dense<0.000000e+00> : vector<4x32xf32>
    %22 = vector.multi_reduction <add>, %21, %cst_10 [2] : vector<4x32x8xf32> to vector<4x32xf32>
    %23 = vector.shape_cast %22 : vector<4x32xf32> to vector<4x32x1xf32>
    %24 = arith.mulf %21, %21 : vector<4x32x8xf32>
    %cst_11 = arith.constant dense<0.000000e+00> : vector<4x32xf32>
    %25 = vector.multi_reduction <add>, %24, %cst_11 [2] : vector<4x32x8xf32> to vector<4x32xf32>
    %26 = vector.shape_cast %25 : vector<4x32xf32> to vector<4x32x1xf32>
    %27 = vector.shape_cast %21 : vector<4x32x8xf32> to vector<128x8xf32>
    %c0_12 = arith.constant 0 : index
    %c0_13 = arith.constant 0 : index
    %c0_14 = arith.constant 0 : index
    %28 = vector.load %arg5[%c0_12, %c0_13, %c0_14] : memref<4x8x8xf32, #tpu.memory_space<vmem>>, vector<1x8x8xf32>
    %29 = vector.shape_cast %28 : vector<1x8x8xf32> to vector<8x8xf32>
    %cst_15 = arith.constant dense<0.000000e+00> : vector<128x8xf32>
    %30 = tpu.matmul %27, %29, %cst_15 {dimension_numbers = #tpu.dot_dimension_numbers<[1], [0], [0], [1], [0, 0, 1, 1], [], []>} : vector<128x8xf32>, vector<8x8xf32>, vector<128x8xf32> -> vector<128x8xf32>
    %31 = vector.shape_cast %30 : vector<128x8xf32> to vector<4x32x8xf32>
    %32 = vector.extract_strided_slice %5 {offsets = [0, 0, 0, 8], sizes = [4, 4, 8, 8], strides = [1, 1, 1, 1]} : vector<4x4x8x16xf32> to vector<4x4x8x8xf32>
    %33 = vector.shape_cast %32 : vector<4x4x8x8xf32> to vector<128x8xf32>
    %cst_16 = arith.constant dense<0.000000e+00> : vector<128x24xf32>
    %34 = tpu.matmul %33, %0, %cst_16 {dimension_numbers = #tpu.dot_dimension_numbers<[1], [0], [0], [1], [0, 0, 1, 1], [], []>} : vector<128x8xf32>, vector<8x24xf32>, vector<128x24xf32> -> vector<128x24xf32>
    %35 = vector.shape_cast %34 : vector<128x24xf32> to vector<4x32x24xf32>
    %36 = vector.extract_strided_slice %35 {offsets = [0, 0, 0], sizes = [4, 32, 8], strides = [1, 1, 1]} : vector<4x32x24xf32> to vector<4x32x8xf32>
    %37 = vector.extract_strided_slice %35 {offsets = [0, 0, 8], sizes = [4, 32, 8], strides = [1, 1, 1]} : vector<4x32x24xf32> to vector<4x32x8xf32>
    %38 = vector.extract_strided_slice %35 {offsets = [0, 0, 16], sizes = [4, 32, 8], strides = [1, 1, 1]} : vector<4x32x24xf32> to vector<4x32x8xf32>
    %39 = vector.broadcast %2 : vector<4x1x8xf32> to vector<4x32x8xf32>
    %40 = arith.addf %37, %39 : vector<4x32x8xf32>
    %cst_17 = arith.constant 0.000000e+00 : f32
    %41 = vector.broadcast %cst_17 : f32 to vector<1x32x8xf32>
    %42 = vector.extract_strided_slice %36 {offsets = [0, 0, 0], sizes = [3, 32, 8], strides = [1, 1, 1]} : vector<4x32x8xf32> to vector<3x32x8xf32>
    %43 = tpu.concatenate %41, %42 in 0 : vector<1x32x8xf32>, vector<3x32x8xf32> -> vector<4x32x8xf32>
    %44 = arith.addf %40, %43 : vector<4x32x8xf32>
    %45 = vector.extract_strided_slice %38 {offsets = [1, 0, 0], sizes = [3, 32, 8], strides = [1, 1, 1]} : vector<4x32x8xf32> to vector<3x32x8xf32>
    %46 = tpu.concatenate %45, %41 in 0 : vector<3x32x8xf32>, vector<1x32x8xf32> -> vector<4x32x8xf32>
    %47 = arith.addf %44, %46 : vector<4x32x8xf32>
    %cst_18 = arith.constant dense<0.000000e+00> : vector<4x32xf32>
    %48 = vector.multi_reduction <add>, %47, %cst_18 [2] : vector<4x32x8xf32> to vector<4x32xf32>
    %49 = vector.shape_cast %48 : vector<4x32xf32> to vector<4x32x1xf32>
    %50 = arith.mulf %47, %47 : vector<4x32x8xf32>
    %cst_19 = arith.constant dense<0.000000e+00> : vector<4x32xf32>
    %51 = vector.multi_reduction <add>, %50, %cst_19 [2] : vector<4x32x8xf32> to vector<4x32xf32>
    %52 = vector.shape_cast %51 : vector<4x32xf32> to vector<4x32x1xf32>
    %53 = vector.shape_cast %47 : vector<4x32x8xf32> to vector<128x8xf32>
    %c2 = arith.constant 2 : index
    %c0_20 = arith.constant 0 : index
    %c0_21 = arith.constant 0 : index
    %54 = vector.load %arg5[%c2, %c0_20, %c0_21] : memref<4x8x8xf32, #tpu.memory_space<vmem>>, vector<1x8x8xf32>
    %55 = vector.shape_cast %54 : vector<1x8x8xf32> to vector<8x8xf32>
    %cst_22 = arith.constant dense<0.000000e+00> : vector<128x8xf32>
    %56 = tpu.matmul %53, %55, %cst_22 {dimension_numbers = #tpu.dot_dimension_numbers<[1], [0], [0], [1], [0, 0, 1, 1], [], []>} : vector<128x8xf32>, vector<8x8xf32>, vector<128x8xf32> -> vector<128x8xf32>
    %57 = vector.shape_cast %56 : vector<128x8xf32> to vector<4x32x8xf32>
    %58 = arith.addf %23, %49 : vector<4x32x1xf32>
    %59 = arith.addf %26, %52 : vector<4x32x1xf32>
    %60 = arith.addf %31, %57 : vector<4x32x8xf32>
    %c0_23 = arith.constant 0 : index
    %c0_24 = arith.constant 0 : index
    %c0_25 = arith.constant 0 : index
    %c1 = arith.constant 1 : index
    %c0_26 = arith.constant 0 : index
    %c0_27 = arith.constant 0 : index
    %61 = vector.load %arg2[%c0_23, %c0_24, %c0_25, %c1, %c0_26, %c0_27] : memref<1x4x4x2x8x16xf32, #tpu.memory_space<vmem>>, vector<1x4x4x1x8x16xf32>
    %62 = vector.shape_cast %61 : vector<1x4x4x1x8x16xf32> to vector<4x4x1x8x16xf32>
    %63 = vector.shape_cast %62 : vector<4x4x1x8x16xf32> to vector<4x4x8x16xf32>
    %64 = vector.extract_strided_slice %63 {offsets = [0, 0, 0, 0], sizes = [4, 4, 8, 8], strides = [1, 1, 1, 1]} : vector<4x4x8x16xf32> to vector<4x4x8x8xf32>
    %65 = vector.shape_cast %64 : vector<4x4x8x8xf32> to vector<128x8xf32>
    %cst_28 = arith.constant dense<0.000000e+00> : vector<128x24xf32>
    %66 = tpu.matmul %65, %0, %cst_28 {dimension_numbers = #tpu.dot_dimension_numbers<[1], [0], [0], [1], [0, 0, 1, 1], [], []>} : vector<128x8xf32>, vector<8x24xf32>, vector<128x24xf32> -> vector<128x24xf32>
    %67 = vector.shape_cast %66 : vector<128x24xf32> to vector<4x32x24xf32>
    %68 = vector.extract_strided_slice %67 {offsets = [0, 0, 0], sizes = [4, 32, 8], strides = [1, 1, 1]} : vector<4x32x24xf32> to vector<4x32x8xf32>
    %69 = vector.extract_strided_slice %67 {offsets = [0, 0, 8], sizes = [4, 32, 8], strides = [1, 1, 1]} : vector<4x32x24xf32> to vector<4x32x8xf32>
    %70 = vector.extract_strided_slice %67 {offsets = [0, 0, 16], sizes = [4, 32, 8], strides = [1, 1, 1]} : vector<4x32x24xf32> to vector<4x32x8xf32>
    %71 = vector.broadcast %2 : vector<4x1x8xf32> to vector<4x32x8xf32>
    %72 = arith.addf %69, %71 : vector<4x32x8xf32>
    %cst_29 = arith.constant 0.000000e+00 : f32
    %73 = vector.broadcast %cst_29 : f32 to vector<1x32x8xf32>
    %74 = vector.extract_strided_slice %68 {offsets = [0, 0, 0], sizes = [3, 32, 8], strides = [1, 1, 1]} : vector<4x32x8xf32> to vector<3x32x8xf32>
    %75 = tpu.concatenate %73, %74 in 0 : vector<1x32x8xf32>, vector<3x32x8xf32> -> vector<4x32x8xf32>
    %76 = arith.addf %72, %75 : vector<4x32x8xf32>
    %77 = vector.extract_strided_slice %70 {offsets = [1, 0, 0], sizes = [3, 32, 8], strides = [1, 1, 1]} : vector<4x32x8xf32> to vector<3x32x8xf32>
    %78 = tpu.concatenate %77, %73 in 0 : vector<3x32x8xf32>, vector<1x32x8xf32> -> vector<4x32x8xf32>
    %79 = arith.addf %76, %78 : vector<4x32x8xf32>
    %cst_30 = arith.constant dense<0.000000e+00> : vector<4x32xf32>
    %80 = vector.multi_reduction <add>, %79, %cst_30 [2] : vector<4x32x8xf32> to vector<4x32xf32>
    %81 = vector.shape_cast %80 : vector<4x32xf32> to vector<4x32x1xf32>
    %82 = arith.mulf %79, %79 : vector<4x32x8xf32>
    %cst_31 = arith.constant dense<0.000000e+00> : vector<4x32xf32>
    %83 = vector.multi_reduction <add>, %82, %cst_31 [2] : vector<4x32x8xf32> to vector<4x32xf32>
    %84 = vector.shape_cast %83 : vector<4x32xf32> to vector<4x32x1xf32>
    %85 = vector.shape_cast %79 : vector<4x32x8xf32> to vector<128x8xf32>
    %c1_32 = arith.constant 1 : index
    %c0_33 = arith.constant 0 : index
    %c0_34 = arith.constant 0 : index
    %86 = vector.load %arg5[%c1_32, %c0_33, %c0_34] : memref<4x8x8xf32, #tpu.memory_space<vmem>>, vector<1x8x8xf32>
    %87 = vector.shape_cast %86 : vector<1x8x8xf32> to vector<8x8xf32>
    %cst_35 = arith.constant dense<0.000000e+00> : vector<128x8xf32>
    %88 = tpu.matmul %85, %87, %cst_35 {dimension_numbers = #tpu.dot_dimension_numbers<[1], [0], [0], [1], [0, 0, 1, 1], [], []>} : vector<128x8xf32>, vector<8x8xf32>, vector<128x8xf32> -> vector<128x8xf32>
    %89 = vector.shape_cast %88 : vector<128x8xf32> to vector<4x32x8xf32>
    %90 = arith.addf %58, %81 : vector<4x32x1xf32>
    %91 = arith.addf %59, %84 : vector<4x32x1xf32>
    %92 = arith.addf %60, %89 : vector<4x32x8xf32>
    %93 = vector.extract_strided_slice %63 {offsets = [0, 0, 0, 8], sizes = [4, 4, 8, 8], strides = [1, 1, 1, 1]} : vector<4x4x8x16xf32> to vector<4x4x8x8xf32>
    %94 = vector.shape_cast %93 : vector<4x4x8x8xf32> to vector<128x8xf32>
    %cst_36 = arith.constant dense<0.000000e+00> : vector<128x24xf32>
    %95 = tpu.matmul %94, %0, %cst_36 {dimension_numbers = #tpu.dot_dimension_numbers<[1], [0], [0], [1], [0, 0, 1, 1], [], []>} : vector<128x8xf32>, vector<8x24xf32>, vector<128x24xf32> -> vector<128x24xf32>
    %96 = vector.shape_cast %95 : vector<128x24xf32> to vector<4x32x24xf32>
    %97 = vector.extract_strided_slice %96 {offsets = [0, 0, 0], sizes = [4, 32, 8], strides = [1, 1, 1]} : vector<4x32x24xf32> to vector<4x32x8xf32>
    %98 = vector.extract_strided_slice %96 {offsets = [0, 0, 8], sizes = [4, 32, 8], strides = [1, 1, 1]} : vector<4x32x24xf32> to vector<4x32x8xf32>
    %99 = vector.extract_strided_slice %96 {offsets = [0, 0, 16], sizes = [4, 32, 8], strides = [1, 1, 1]} : vector<4x32x24xf32> to vector<4x32x8xf32>
    %100 = vector.broadcast %2 : vector<4x1x8xf32> to vector<4x32x8xf32>
    %101 = arith.addf %98, %100 : vector<4x32x8xf32>
    %cst_37 = arith.constant 0.000000e+00 : f32
    %102 = vector.broadcast %cst_37 : f32 to vector<1x32x8xf32>
    %103 = vector.extract_strided_slice %97 {offsets = [0, 0, 0], sizes = [3, 32, 8], strides = [1, 1, 1]} : vector<4x32x8xf32> to vector<3x32x8xf32>
    %104 = tpu.concatenate %102, %103 in 0 : vector<1x32x8xf32>, vector<3x32x8xf32> -> vector<4x32x8xf32>
    %105 = arith.addf %101, %104 : vector<4x32x8xf32>
    %106 = vector.extract_strided_slice %99 {offsets = [1, 0, 0], sizes = [3, 32, 8], strides = [1, 1, 1]} : vector<4x32x8xf32> to vector<3x32x8xf32>
    %107 = tpu.concatenate %106, %102 in 0 : vector<3x32x8xf32>, vector<1x32x8xf32> -> vector<4x32x8xf32>
    %108 = arith.addf %105, %107 : vector<4x32x8xf32>
    %cst_38 = arith.constant dense<0.000000e+00> : vector<4x32xf32>
    %109 = vector.multi_reduction <add>, %108, %cst_38 [2] : vector<4x32x8xf32> to vector<4x32xf32>
    %110 = vector.shape_cast %109 : vector<4x32xf32> to vector<4x32x1xf32>
    %111 = arith.mulf %108, %108 : vector<4x32x8xf32>
    %cst_39 = arith.constant dense<0.000000e+00> : vector<4x32xf32>
    %112 = vector.multi_reduction <add>, %111, %cst_39 [2] : vector<4x32x8xf32> to vector<4x32xf32>
    %113 = vector.shape_cast %112 : vector<4x32xf32> to vector<4x32x1xf32>
    %114 = vector.shape_cast %108 : vector<4x32x8xf32> to vector<128x8xf32>
    %c3 = arith.constant 3 : index
    %c0_40 = arith.constant 0 : index
    %c0_41 = arith.constant 0 : index
    %115 = vector.load %arg5[%c3, %c0_40, %c0_41] : memref<4x8x8xf32, #tpu.memory_space<vmem>>, vector<1x8x8xf32>
    %116 = vector.shape_cast %115 : vector<1x8x8xf32> to vector<8x8xf32>
    %cst_42 = arith.constant dense<0.000000e+00> : vector<128x8xf32>
    %117 = tpu.matmul %114, %116, %cst_42 {dimension_numbers = #tpu.dot_dimension_numbers<[1], [0], [0], [1], [0, 0, 1, 1], [], []>} : vector<128x8xf32>, vector<8x8xf32>, vector<128x8xf32> -> vector<128x8xf32>
    %118 = vector.shape_cast %117 : vector<128x8xf32> to vector<4x32x8xf32>
    %119 = arith.addf %90, %110 : vector<4x32x1xf32>
    %120 = arith.addf %91, %113 : vector<4x32x1xf32>
    %121 = arith.addf %92, %118 : vector<4x32x8xf32>
    %cst_43 = arith.constant 3.125000e-02 : f32
    %122 = vector.broadcast %cst_43 : f32 to vector<4x32x1xf32>
    %123 = arith.mulf %119, %122 : vector<4x32x1xf32>
    %cst_44 = arith.constant 3.125000e-02 : f32
    %124 = vector.broadcast %cst_44 : f32 to vector<4x32x1xf32>
    %125 = arith.mulf %120, %124 : vector<4x32x1xf32>
    %126 = arith.mulf %123, %123 : vector<4x32x1xf32>
    %127 = arith.subf %125, %126 : vector<4x32x1xf32>
    %cst_45 = arith.constant 9.99999974E-6 : f32
    %128 = vector.broadcast %cst_45 : f32 to vector<4x32x1xf32>
    %129 = arith.addf %127, %128 : vector<4x32x1xf32>
    %130 = math.rsqrt %129 : vector<4x32x1xf32>
    %c0_46 = arith.constant 0 : index
    %c0_47 = arith.constant 0 : index
    %131 = vector.load %arg6[%c0_46, %c0_47] : memref<1x8xf32, #tpu.memory_space<vmem>>, vector<1x8xf32>
    %132 = vector.shape_cast %131 : vector<1x8xf32> to vector<1x1x8xf32>
    %133 = vector.broadcast %123 : vector<4x32x1xf32> to vector<4x32x8xf32>
    %134 = vector.broadcast %132 : vector<1x1x8xf32> to vector<4x32x8xf32>
    %135 = arith.mulf %133, %134 : vector<4x32x8xf32>
    %136 = arith.subf %121, %135 : vector<4x32x8xf32>
    %137 = vector.broadcast %130 : vector<4x32x1xf32> to vector<4x32x8xf32>
    %138 = arith.mulf %137, %136 : vector<4x32x8xf32>
    %c0_48 = arith.constant 0 : index
    %c0_49 = arith.constant 0 : index
    %139 = vector.load %arg7[%c0_48, %c0_49] : memref<1x8xf32, #tpu.memory_space<vmem>>, vector<1x8xf32>
    %140 = vector.shape_cast %139 : vector<1x8xf32> to vector<1x1x8xf32>
    %141 = vector.broadcast %140 : vector<1x1x8xf32> to vector<4x32x8xf32>
    %142 = arith.addf %138, %141 : vector<4x32x8xf32>
    %143 = vector.shape_cast %142 : vector<4x32x8xf32> to vector<4x4x8x8xf32>
    %c0_50 = arith.constant 0 : index
    %c0_51 = arith.constant 0 : index
    %c0_52 = arith.constant 0 : index
    %c0_53 = arith.constant 0 : index
    %c0_54 = arith.constant 0 : index
    %144 = vector.load %arg8[%c0_50, %c0_51, %c0_52, %c0_53, %c0_54] : memref<1x4x4x8x8xf32, #tpu.memory_space<vmem>>, vector<1x4x4x8x8xf32>
    %145 = vector.shape_cast %144 : vector<1x4x4x8x8xf32> to vector<4x4x8x8xf32>
    %146 = vector.shape_cast %143 : vector<4x4x8x8xf32> to vector<1x4x4x8x8xf32>
    tpu.vector_store %arg8[%c0_50, %c0_51, %c0_52, %c0_53, %c0_54], %146 {strides = array<i32>} : memref<1x4x4x8x8xf32, #tpu.memory_space<vmem>>, vector<1x4x4x8x8xf32>,
    return
  }
  func.func @transform_0(%arg0: i32, %arg1: i32) -> (i32, i32, i32, i32, i32, i32) {
    %c0_i32 = arith.constant 0 : i32
    %c0_i32_0 = arith.constant 0 : i32
    %c0_i32_1 = arith.constant 0 : i32
    %c0_i32_2 = arith.constant 0 : i32
    %c0_i32_3 = arith.constant 0 : i32
    return %arg0, %c0_i32, %arg1, %c0_i32_0, %c0_i32_1, %c0_i32_2 : i32, i32, i32, i32, i32, i32
  }
  func.func @transform_1(%arg0: i32, %arg1: i32) -> (i32, i32) {
    %c0_i32 = arith.constant 0 : i32
    %c0_i32_0 = arith.constant 0 : i32
    %c0_i32_1 = arith.constant 0 : i32
    return %c0_i32, %c0_i32_0 : i32, i32
  }
  func.func @transform_2(%arg0: i32, %arg1: i32) -> (i32, i32) {
    %c0_i32 = arith.constant 0 : i32
    %c0_i32_0 = arith.constant 0 : i32
    %c0_i32_1 = arith.constant 0 : i32
    return %c0_i32, %c0_i32_0 : i32, i32
  }
  func.func @transform_3(%arg0: i32, %arg1: i32) -> (i32, i32, i32) {
    %c0_i32 = arith.constant 0 : i32
    %c0_i32_0 = arith.constant 0 : i32
    %c0_i32_1 = arith.constant 0 : i32
    %c0_i32_2 = arith.constant 0 : i32
    return %c0_i32, %c0_i32_0, %c0_i32_1 : i32, i32, i32
  }
  func.func @transform_4(%arg0: i32, %arg1: i32) -> (i32, i32) {
    %c0_i32 = arith.constant 0 : i32
    %c0_i32_0 = arith.constant 0 : i32
    %c0_i32_1 = arith.constant 0 : i32
    return %c0_i32, %c0_i32_0 : i32, i32
  }
  func.func @transform_5(%arg0: i32, %arg1: i32) -> (i32, i32) {
    %c0_i32 = arith.constant 0 : i32
    %c0_i32_0 = arith.constant 0 : i32
    %c0_i32_1 = arith.constant 0 : i32
    return %c0_i32, %c0_i32_0 : i32, i32
  }
  func.func @transform_6(%arg0: i32, %arg1: i32) -> (i32, i32, i32, i32, i32) {
    %c0_i32 = arith.constant 0 : i32
    %c0_i32_0 = arith.constant 0 : i32
    %c0_i32_1 = arith.constant 0 : i32
    %c0_i32_2 = arith.constant 0 : i32
    return %arg0, %c0_i32, %arg1, %c0_i32_0, %c0_i32_1 : i32, i32, i32, i32, i32
  }
}

</mosaic_0001>

<bundles_post_ra>
// kernel: patch_merge_3d.1
= control target key start
LH: loop header
LB: loop body
LE: loop exit
PB: predicated region body
PF: predicated region fallthrough
CT: control target
= control target key end

     0   :  { %s6616_s0 = inlined_call_operand.vmem [shape: f32[2,4,8,2,8,16], index: 0, kind: input, shape index: {}]   ;;  %s6617_s1 = inlined_call_operand.vmem [shape: f32[8,24], index: 1, kind: input, shape index: {}]   ;;  %s6618_s2 = inlined_call_operand.vmem [shape: f32[4,8], index: 2, kind: input, shape index: {}]   ;;  %s6619_s3 = inlined_call_operand.vmem [shape: f32[4,8,8], index: 3, kind: input, shape index: {}]   ;;  %s6620_s4 = inlined_call_operand.vmem [shape: f32[1,8], index: 4, kind: input, shape index: {}]   ;;  %s6621_s5 = inlined_call_operand.vmem [shape: f32[1,8], index: 5, kind: input, shape index: {}]   ;;  %s6622_s6 = inlined_call_operand.hbm [shape: f32[2,4,8,8,8], index: 6, kind: output, shape index: {}]  }
   0x1   :  { %6648 = sst [smem:[#allocation121_spill]] %s6616_s0 }
   0x2   :  { %6649 = sst [smem:[#allocation122_spill]] %s6617_s1 }
   0x3   :  { %11 = vsyncpa [#allocation4], 0 }
   0x4   :  { %13 = vsyncpa [#allocation4 + $0x1], 0  ;;  %s3892_s21 = smov 0   ;;  %s3894_s22 = smov 0  }
   0x5   :  { %s3896_s23 = smov 0   ;;  %s3898_s24 = smov 0  }
   0x6   :  { %s3900_s25 = smov 0   ;;  %s3902_s26 = smov 0  }
   0x7   :  { %s3904_s27 = smov 0   ;;  %s3906_s28 = smov 0  }
   0x8 LB: > { %s3475_s29 = sadd.s32 4294967295, %s3845_s28   ;;  %s3476_s30 = sadd.s32 4294967294, %s3845_s28   ;;  %s3845_s28 = sphi %s3906_s28, %s19_s28   ;;  %s3841_s27 = sphi %s3904_s27, %s6950_s27   ;;  %s3837_s26 = sphi %s3902_s26, %s6949_s26   ;;  %s3833_s25 = sphi %s3900_s25, %s6948_s25   ;;  %s3829_s24 = sphi %s3898_s24, %s6947_s24   ;;  %s3825_s23 = sphi %s3896_s23, %s6946_s23   ;;  %s3821_s22 = sphi %s3894_s22, %s6945_s22   ;;  %s3817_s21 = sphi %s3892_s21, %s6944_s21  }
   0x9   : > { %s28_s7 = sadd.s32 1, %s3837_s26  ;;  %s31_s8 = sadd.s32 1, %s3841_s27 }
   0xa   : > { %p29_p0 = scmp.ge.s32.totalorder %s28_s7, 2  ;;  %p47_p1 = scmp.ne.s32.totalorder %s3825_s23, %s3821_s22 }
   0xb   : > { %p48_p2 = scmp.eq.s32.totalorder %s3845_s28, 0  ;;  %p184_p5 = scmp.eq.s32.totalorder %s3475_s29, 3 }
   0xc   : > { %s6952_s7 = smov (%p29_p0, %s28_s7), 0  ;;  %s6954_s8 = smov (!%p29_p0, %s31_s8), %s3841_s27 }
   0xd   : > { %s36_s9 = ssub.s32 %s3837_s26, %s6952_s7  ;;  %p3944_p3 = por %p48_p2, %p47_p1 }
   0xe   : > { %p33_p4 = scmp.ge.s32.totalorder %s6954_s8, 2  ;;  %p189_p6 = scmp.ne.s32.totalorder %s3821_s22, %s3817_s21 }
   0xf   : > { %p190_p7 = scmp.eq.s32.totalorder %s3476_s30, 3  ;;  %p3952_p8 = por %p184_p5, %p47_p1 }
  0x10   : > { %s6956_s8 = smov (%p33_p4, %s6954_s8), 0  ;;  %s40_s15 = sadd.s32 1, %s3825_s23 }
  0x11   : > { %p3956_p9 = por %p190_p7, %p189_p6  ;;  %s35_s13 = ssub.s32 %s3841_s27, %s6956_s8 }
  0x12   : > { %s37_s14 = sor.u32 %s36_s9, %s35_s13  ;;  %p3478_p11 = scmp.ge.s32.totalorder %s3845_s28, 4 }
  0x13   : > { %p38_p10 = scmp.eq.s32.totalorder %s37_s14, 0 }
  0x14   : > { %221 = sbr.rel (%p3478_p11) target bundleno = 67 (0x43), region = 36 }
  0x15   : > { %s3964_s16 = scalar_select %p38_p10, %s3825_s23, %s40_s15  }
  0x19   : > { %224 = sbr.rel (!%p3944_p3) target bundleno = 67 (0x43), region = 40  ;;  %s226_s17 = sand.u32 (%p3944_p3), 1, %s3825_s23  }
  0x1a   : > { %s3640_s18 = sshll.u32 (%p3944_p3), %s3837_s26, 3  ;;  %s3479_s19 = sshll.u32 (%p3944_p3), %s226_s17, 8 }
  0x1b   : > { %s3482_s20 = sshll.u32 (%p3944_p3), %s3841_s27, 6  ;;  %s6653_s0 = sld [smem:[#allocation121_spill]] (%p3944_p3) }
  0x1c   : > { %s232_s29 = sadd.s32 (%p3944_p3), %s3640_s18, %s3482_s20  ;;  %s3980_s10 = scalar_lea.vmem (%p3944_p3), [#allocation2], %s3479_s19 }
  0x1d   : > { %s3483_s30 = sshll.u32 (%p3944_p3), %s232_s29, 3 }
  0x21   : > { %s3975_s14 = scalar_lea.vmem %s6653_s0, %s3483_s30 }
  0x22   : > { %v325_v0 = vld [vmem:[%s3975_s14] sm:$0xff]  ;;  %v327_v1 = vld [vmem:[%s3975_s14 + $0x8] sm:$0xff]  ;;  %v329_v2 = vld [vmem:[%s3975_s14 + $0x10] sm:$0xff] }
  0x23   : > { %326 = vst [vmem:[%s3980_s10] sm:$0xff] %v325_v0  ;;  %v331_v3 = vld [vmem:[%s3975_s14 + $0x18] sm:$0xff]  ;;  %v333_v4 = vld [vmem:[%s3975_s14 + $0x20] sm:$0xff]  ;;  %v335_v5 = vld [vmem:[%s3975_s14 + $0x28] sm:$0xff] }
  0x24   : > { %328 = vst [vmem:[%s3980_s10 + $0x8] sm:$0xff] %v327_v1  ;;  %v337_v6 = vld [vmem:[%s3975_s14 + $0x30] sm:$0xff]  ;;  %v339_v7 = vld [vmem:[%s3975_s14 + $0x38] sm:$0xff]  ;;  %v341_v8 = vld [vmem:[%s3975_s14 + $0x80] sm:$0xff] }
  0x25   : > { %330 = vst [vmem:[%s3980_s10 + $0x10] sm:$0xff] %v329_v2  ;;  %v343_v9 = vld [vmem:[%s3975_s14 + $0x88] sm:$0xff]  ;;  %v345_v10 = vld [vmem:[%s3975_s14 + $0x90] sm:$0xff]  ;;  %v347_v11 = vld [vmem:[%s3975_s14 + $0x98] sm:$0xff] }
  0x26   : > { %332 = vst [vmem:[%s3980_s10 + $0x18] sm:$0xff] %v331_v3  ;;  %v349_v12 = vld [vmem:[%s3975_s14 + $0xa0] sm:$0xff]  ;;  %v351_v13 = vld [vmem:[%s3975_s14 + $0xa8] sm:$0xff]  ;;  %v353_v14 = vld [vmem:[%s3975_s14 + $0xb0] sm:$0xff] }
  0x27   : > { %334 = vst [vmem:[%s3980_s10 + $0x20] sm:$0xff] %v333_v4  ;;  %v355_v15 = vld [vmem:[%s3975_s14 + $0xb8] sm:$0xff]  ;;  %v357_v16 = vld [vmem:[%s3975_s14 + $0x100] sm:$0xff]  ;;  %v359_v17 = vld [vmem:[%s3975_s14 + $0x108] sm:$0xff] }
  0x28   : > { %336 = vst [vmem:[%s3980_s10 + $0x28] sm:$0xff] %v335_v5  ;;  %v361_v18 = vld [vmem:[%s3975_s14 + $0x110] sm:$0xff]  ;;  %v363_v19 = vld [vmem:[%s3975_s14 + $0x118] sm:$0xff]  ;;  %v365_v20 = vld [vmem:[%s3975_s14 + $0x120] sm:$0xff] }
  0x29   : > { %338 = vst [vmem:[%s3980_s10 + $0x30] sm:$0xff] %v337_v6  ;;  %v367_v21 = vld [vmem:[%s3975_s14 + $0x128] sm:$0xff]  ;;  %v369_v22 = vld [vmem:[%s3975_s14 + $0x130] sm:$0xff]  ;;  %v371_v23 = vld [vmem:[%s3975_s14 + $0x138] sm:$0xff] }
  0x2a   : > { %340 = vst [vmem:[%s3980_s10 + $0x38] sm:$0xff] %v339_v7  ;;  %v373_v24 = vld [vmem:[%s3975_s14 + $0x180] sm:$0xff]  ;;  %v375_v25 = vld [vmem:[%s3975_s14 + $0x188] sm:$0xff]  ;;  %v377_v26 = vld [vmem:[%s3975_s14 + $0x190] sm:$0xff] }
  0x2b   : > { %342 = vst [vmem:[%s3980_s10 + $0x40] sm:$0xff] %v341_v8  ;;  %v379_v27 = vld [vmem:[%s3975_s14 + $0x198] sm:$0xff]  ;;  %v381_v28 = vld [vmem:[%s3975_s14 + $0x1a0] sm:$0xff]  ;;  %v383_v29 = vld [vmem:[%s3975_s14 + $0x1a8] sm:$0xff] }
  0x2c   : > { %344 = vst [vmem:[%s3980_s10 + $0x48] sm:$0xff] %v343_v9  ;;  %v385_v30 = vld [vmem:[%s3975_s14 + $0x1b0] sm:$0xff]  ;;  %v387_v31 = vld [vmem:[%s3975_s14 + $0x1b8] sm:$0xff] }
  0x2d   : > { %346 = vst [vmem:[%s3980_s10 + $0x50] sm:$0xff] %v345_v10 }
  0x2e   : > { %348 = vst [vmem:[%s3980_s10 + $0x58] sm:$0xff] %v347_v11 }
  0x2f   : > { %350 = vst [vmem:[%s3980_s10 + $0x60] sm:$0xff] %v349_v12 }
  0x30   : > { %352 = vst [vmem:[%s3980_s10 + $0x68] sm:$0xff] %v351_v13 }
  0x31   : > { %354 = vst [vmem:[%s3980_s10 + $0x70] sm:$0xff] %v353_v14 }
  0x32   : > { %356 = vst [vmem:[%s3980_s10 + $0x78] sm:$0xff] %v355_v15 }
  0x33   : > { %358 = vst [vmem:[%s3980_s10 + $0x80] sm:$0xff] %v357_v16 }
  0x34   : > { %360 = vst [vmem:[%s3980_s10 + $0x88] sm:$0xff] %v359_v17 }
  0x35   : > { %362 = vst [vmem:[%s3980_s10 + $0x90] sm:$0xff] %v361_v18 }
  0x36   : > { %364 = vst [vmem:[%s3980_s10 + $0x98] sm:$0xff] %v363_v19 }
  0x37   : > { %366 = vst [vmem:[%s3980_s10 + $0xa0] sm:$0xff] %v365_v20 }
  0x38   : > { %368 = vst [vmem:[%s3980_s10 + $0xa8] sm:$0xff] %v367_v21 }
  0x39   : > { %370 = vst [vmem:[%s3980_s10 + $0xb0] sm:$0xff] %v369_v22 }
  0x3a   : > { %372 = vst [vmem:[%s3980_s10 + $0xb8] sm:$0xff] %v371_v23 }
  0x3b   : > { %374 = vst [vmem:[%s3980_s10 + $0xc0] sm:$0xff] %v373_v24 }
  0x3c   : > { %376 = vst [vmem:[%s3980_s10 + $0xc8] sm:$0xff] %v375_v25 }
  0x3d   : > { %378 = vst [vmem:[%s3980_s10 + $0xd0] sm:$0xff] %v377_v26 }
  0x3e   : > { %380 = vst [vmem:[%s3980_s10 + $0xd8] sm:$0xff] %v379_v27 }
  0x3f   : > { %382 = vst [vmem:[%s3980_s10 + $0xe0] sm:$0xff] %v381_v28 }
  0x40   : > { %384 = vst [vmem:[%s3980_s10 + $0xe8] sm:$0xff] %v383_v29 }
  0x41   : > { %386 = vst [vmem:[%s3980_s10 + $0xf0] sm:$0xff] %v385_v30 }
  0x42   : > { %388 = vst [vmem:[%s3980_s10 + $0xf8] sm:$0xff] %v387_v31 }
  0x43 PF: > { %p3484_p12 = scmp.ge.s32.totalorder %s3845_s28, 1  ;;  %p393_p13 = scmp.lt.s32.totalorder %s3845_s28, 5 }
  0x45   : > { %p394_p0 = pnand %p3484_p12, %p393_p13 }
  0x47   : > { %397 = sbr.rel (%p394_p0) target bundleno = 2397 (0x95d), region = 78 }
  0x4c   : > { %s6654_s1 = sld [smem:[#allocation122_spill]]  ;;  %s4049_s18 = sand.u32 1, %s3821_s22   ;;  %vm453_vm0 = vcmask 64512   ;;  %v3847_v33 = vmov 0.0   ;;  %v432_v34 = vld [vmem:[%s6618_s2] sm:$0xf] }
  0x4d   : > { %s3848_s19 = smov 8   ;;  %s3485_s20 = sshll.u32 %s4049_s18, 8  ;;  %v435_v35 = vrot.slane %v432_v34, 2  ;;  %v567_v36 = vperm.slane %v432_v34, 0  ;;  %v434_v39 = vrot.slane %v432_v34, 1  ;;  %v436_v40 = vrot.slane %v432_v34, 3 }
  0x4e   : > { %612 = vrot.lane.b32.xlu2 %v3847_v33, %s3848_s19  ;;  %s4056_s9 = scalar_lea.vmem [#allocation2], %s3485_s20  ;;  %s3849_s13 = smov 120  }
  0x4f   : > { %v437_v37 = vld [vmem:[%s4056_s9] sm:$0xff]  ;;  %v569_v38 = vperm.slane %v435_v35, 0  ;;  %571 = vrot.lane.b32.xlu0 %v567_v36, %s3848_s19  ;;  %v568_v41 = vperm.slane %v434_v39, 0  ;;  %v438_v42 = vld [vmem:[%s4056_s9 + $0x10] sm:$0xff]  ;;  %v570_v43 = vperm.slane %v436_v40, 0  ;;  %v3552_v1 = vld [vmem:[%s4056_s9 + $0x8] sm:$0xff] }
  0x50   : > { %v439_v44 = vld [vmem:[%s4056_s9 + $0x20] sm:$0xff]  ;;  %v440_v45 = vld [vmem:[%s4056_s9 + $0x30] sm:$0xff]  ;;  %v3553_v5 = vld [vmem:[%s4056_s9 + $0x18] sm:$0xff]  ;;  %s3350_s30 = scalar_lea.sflag [#allocation4], %s4049_s18 }
  0x51   : > { %575 = vrot.lane.b32.xlu1 %v569_v38, %s3848_s19  ;;  %v441_v46 = vld [vmem:[%s4056_s9 + $0x40] sm:$0xff]  ;;  %v442_v47 = vld [vmem:[%s4056_s9 + $0x50] sm:$0xff]  ;;  %v3554_v8 = vld [vmem:[%s4056_s9 + $0x28] sm:$0xff] }
  0x52   : > { %v431_v32 = vld [vmem:[%s6654_s1] sm:$0xff]  ;;  %v444_v49 = vld [vmem:[%s4056_s9 + $0x70] sm:$0xff]  ;;  %v3555_v11 = vld [vmem:[%s4056_s9 + $0x38] sm:$0xff] }
  0x53   : > { %517 = vmatpush.msra.mxu0 %v431_v32  ;;  %1143 = vmatpush.msra.mxu2 %v431_v32  ;;  %v443_v48 = vld [vmem:[%s4056_s9 + $0x60] sm:$0xff]  ;;  %v446_v51 = vld [vmem:[%s4056_s9 + $0x90] sm:$0xff]  ;;  %v3556_v14 = vld [vmem:[%s4056_s9 + $0x48] sm:$0xff] }
  0x54   : > { %3487 = vmatmul.msk.f32.vlgmr.msra.gmra.mxu0 %vm453_vm0, %v437_v37  ;;  %v445_v50 = vld [vmem:[%s4056_s9 + $0x80] sm:$0xff]  ;;  %v448_v53 = vld [vmem:[%s4056_s9 + $0xb0] sm:$0xff]  ;;  %v3557_v17 = vld [vmem:[%s4056_s9 + $0x58] sm:$0xff] }
  0x55   : > { %1796 = vmatpush.msrb.mxu0 %v431_v32  ;;  %2448 = vmatpush.msrb.mxu2 %v431_v32  ;;  %v447_v52 = vld [vmem:[%s4056_s9 + $0xa0] sm:$0xff]  ;;  %v450_v55 = vld [vmem:[%s4056_s9 + $0xd0] sm:$0xff]  ;;  %v3558_v20 = vld [vmem:[%s4056_s9 + $0x68] sm:$0xff] }
  0x56   : > { %695 = vrot.lane.b32.xlu2 %v3847_v33, %s3849_s13  ;;  %v449_v54 = vld [vmem:[%s4056_s9 + $0xc0] sm:$0xff]  ;;  %v452_v57 = vld [vmem:[%s4056_s9 + $0xf0] sm:$0xff]  ;;  %v3559_v23 = vld [vmem:[%s4056_s9 + $0x78] sm:$0xff] }
  0x57   : > { %573 = vrot.lane.b32.xlu0 %v568_v41, %s3848_s19  ;;  %v451_v56 = vld [vmem:[%s4056_s9 + $0xe0] sm:$0xff]  ;;  %v3560_v26 = vld [vmem:[%s4056_s9 + $0x88] sm:$0xff]  ;;  %v3561_v29 = vld [vmem:[%s4056_s9 + $0x98] sm:$0xff] }
  0x58   : > { %v3562_v32 = vld [vmem:[%s4056_s9 + $0xa8] sm:$0xff]  ;;  %v3563_v35 = vld [vmem:[%s4056_s9 + $0xb8] sm:$0xff] }
  0x59   : > { %577 = vrot.lane.b32.xlu1 %v570_v43, %s3848_s19  ;;  %v3564_v38 = vld [vmem:[%s4056_s9 + $0xc8] sm:$0xff]  ;;  %v3565_v41 = vld [vmem:[%s4056_s9 + $0xd8] sm:$0xff] }
  0x5c   : > { %3488 = vmatmul.msk.f32.gmra.mxu0 %vm453_vm0, %v438_v42 }
  0x5e   : > { %1064 = vrot.lane.b32.xlu2 %v437_v37, %s3849_s13 }
  0x5f   : > { %1068 = vrot.lane.b32.xlu0 %v439_v44, %s3849_s13 }
  0x61   : > { %1066 = vrot.lane.b32.xlu1 %v438_v42, %s3849_s13 }
  0x64   : > { %3489 = vmatmul.msk.f32.gmra.mxu0 %vm453_vm0, %v439_v44 }
  0x66   : > { %1070 = vrot.lane.b32.xlu2 %v440_v45, %s3849_s13 }
  0x67   : > { %1072 = vrot.lane.b32.xlu0 %v441_v46, %s3849_s13 }
  0x69   : > { %1074 = vrot.lane.b32.xlu1 %v442_v47, %s3849_s13 }
  0x6c   : > { %3490 = vmatmul.msk.f32.gmra.mxu0 %vm453_vm0, %v440_v45  ;;  %v3566_v45 = vld [vmem:[%s4056_s9 + $0xe8] sm:$0xff] }
  0x6e   : > { %1076 = vrot.lane.b32.xlu2 %v443_v48, %s3849_s13 }
  0x6f   : > { %1078 = vrot.lane.b32.xlu0 %v444_v49, %s3849_s13 }
  0x71   : > { %1080 = vrot.lane.b32.xlu1 %v445_v50, %s3849_s13 }
  0x74   : > { %3491 = vmatmul.msk.f32.gmra.mxu0 %vm453_vm0, %v441_v46 }
  0x76   : > { %1082 = vrot.lane.b32.xlu2 %v446_v51, %s3849_s13 }
  0x77   : > { %1084 = vrot.lane.b32.xlu0 %v447_v52, %s3849_s13 }
  0x79   : > { %1086 = vrot.lane.b32.xlu1 %v448_v53, %s3849_s13 }
  0x7c   : > { %3492 = vmatmul.msk.f32.gmra.mxu0 %vm453_vm0, %v442_v47 }
  0x7e   : > { %1088 = vrot.lane.b32.xlu2 %v449_v54, %s3849_s13 }
  0x7f   : > { %1090 = vrot.lane.b32.xlu0 %v450_v55, %s3849_s13 }
  0x81   : > { %1092 = vrot.lane.b32.xlu1 %v451_v56, %s3849_s13 }
  0x84   : > { %3493 = vmatmul.msk.f32.gmra.mxu0 %vm453_vm0, %v443_v48  ;;  %v3567_v48 = vld [vmem:[%s4056_s9 + $0xf8] sm:$0xff] }
  0x86   : > { %1094 = vrot.lane.b32.xlu2 %v452_v57, %s3849_s13 }
  0x8c   : > { %3494 = vmatmul.msk.f32.gmra.mxu0 %vm453_vm0, %v444_v49 }
  0x94   : > { %3495 = vmatmul.msk.f32.gmra.mxu0 %vm453_vm0, %v445_v50 }
  0x9c   : > { %3496 = vmatmul.msk.f32.gmra.mxu0 %vm453_vm0, %v446_v51 }
  0xa4   : > { %3497 = vmatmul.msk.f32.gmra.mxu0 %vm453_vm0, %v447_v52 }
  0xa8   : > { %v4106_v58 = vpop.permute.xlu2 %612 }
  0xac   : > { %3498 = vmatmul.msk.f32.gmra.mxu0 %vm453_vm0, %v448_v53 }
  0xb0   : > { %v4109_v59 = vpop.permute.xlu2 %695 }
  0xb4   : > { %3499 = vmatmul.msk.f32.gmra.mxu0 %vm453_vm0, %v449_v54 }
  0xb8   : > { %v1065_v60 = vpop.permute.xlu2 %1064 }
  0xb9   : > { %3519 = vmatmul.msk.f32.vlgmr.msra.gmra.mxu2 %vm453_vm0, %v1065_v60 }
  0xbc   : > { %3500 = vmatmul.msk.f32.gmra.mxu0 %vm453_vm0, %v450_v55 }
  0xc0   : > { %v1071_v9 = vpop.permute.xlu2 %1070 }
  0xc1   : > { %v4117_v62 = vpop.permute.xlu0 %571 }
  0xc3   : > { %v4115_v61 = vpop.permute.xlu1 %575 }
  0xc4   : > { %3501 = vmatmul.msk.f32.gmra.mxu0 %vm453_vm0, %v451_v56 }
  0xc8   : > { %v1077_v18 = vpop.permute.xlu2 %1076 }
  0xc9   : > { %v4128_v2 = vpop.permute.xlu0 %573 }
  0xcb   : > { %v4120_v63 = vpop.permute.xlu1 %577 }
  0xcc   : > { %3502 = vmatmul.msk.f32.gmra.mxu0 %vm453_vm0, %v452_v57 }
  0xd0   : > { %v1083_v27 = vpop.permute.xlu2 %1082 }
  0xd1   : > { %v4122_v0 = vpop.f32.mrf.mxu0  ;;  %v1069_v6 = vpop.permute.xlu0 %1068 }
  0xd2   : > { %614 = vrot.lane.b32.xlu2 %v4122_v0, %s3848_s19  ;;  %v583_v51 = vadd.f32 %v4117_v62, %v4122_v0 }
  0xd3   : > { %v1067_v3 = vpop.permute.xlu1 %1066 }
  0xd4   : > { %3568 = vmatmul.msk.f32.vlgmr.msrb.gmra.mxu0 %vm453_vm0, %v3552_v1  ;;  %3520 = vmatmul.msk.f32.gmra.mxu2 %vm453_vm0, %v1067_v3  ;;  %v651_v55 = vadd.f32 %v4106_v58, %v583_v51 }
  0xd8   : > { %v1089_v36 = vpop.permute.xlu2 %1088 }
  0xd9   : > { %v4131_v4 = vpop.f32.mrf.mxu0  ;;  %v1073_v12 = vpop.permute.xlu0 %1072 }
  0xda   : > { %616 = vrot.lane.b32.xlu0 %v4131_v4, %s3848_s19  ;;  %v584_v0 = vadd.f32 %v4117_v62, %v4131_v4 }
  0xdb   : > { %v1075_v15 = vpop.permute.xlu1 %1074 }
  0xdc   : > { %3569 = vmatmul.msk.f32.gmra.mxu0 %vm453_vm0, %v3553_v5  ;;  %3521 = vmatmul.msk.f32.gmra.mxu2 %vm453_vm0, %v1069_v6  ;;  %v652_v5 = vadd.f32 %v4106_v58, %v584_v0 }
  0xe0   : > { %v1095_v43 = vpop.permute.xlu2 %1094 }
  0xe1   : > { %v4138_v7 = vpop.f32.mrf.mxu0  ;;  %v1079_v21 = vpop.permute.xlu0 %1078 }
  0xe2   : > { %618 = vrot.lane.b32.xlu1 %v4138_v7, %s3848_s19  ;;  %v585_v4 = vadd.f32 %v4117_v62, %v4138_v7 }
  0xe3   : > { %v1081_v24 = vpop.permute.xlu1 %1080 }
  0xe4   : > { %3570 = vmatmul.msk.f32.gmra.mxu0 %vm453_vm0, %v3554_v8  ;;  %3522 = vmatmul.msk.f32.gmra.mxu2 %vm453_vm0, %v1071_v9 }
  0xe9   : > { %v4145_v10 = vpop.f32.mrf.mxu0  ;;  %v1085_v30 = vpop.permute.xlu0 %1084 }
  0xea   : > { %620 = vrot.lane.b32.xlu2 %v4145_v10, %s3848_s19 }
  0xeb   : > { %v1087_v33 = vpop.permute.xlu1 %1086 }
  0xec   : > { %3571 = vmatmul.msk.f32.gmra.mxu0 %vm453_vm0, %v3555_v11  ;;  %3523 = vmatmul.msk.f32.gmra.mxu2 %vm453_vm0, %v1073_v12 }
  0xf1   : > { %v4152_v13 = vpop.f32.mrf.mxu0  ;;  %v1091_v39 = vpop.permute.xlu0 %1090 }
  0xf2   : > { %671 = vrot.lane.b32.xlu2 %v4152_v13, %s3849_s13  ;;  %622 = vrot.lane.b32.xlu0 %v4152_v13, %s3848_s19 }
  0xf3   : > { %v1093_v42 = vpop.permute.xlu1 %1092 }
  0xf4   : > { %3572 = vmatmul.msk.f32.gmra.mxu0 %vm453_vm0, %v3556_v14  ;;  %3524 = vmatmul.msk.f32.gmra.mxu2 %vm453_vm0, %v1075_v15 }
  0xf9   : > { %v4161_v16 = vpop.f32.mrf.mxu0 }
  0xfa   : > { %673 = vrot.lane.b32.xlu0 %v4161_v16, %s3849_s13  ;;  %624 = vrot.lane.b32.xlu1 %v4161_v16, %s3848_s19 }
  0xfc   : > { %3573 = vmatmul.msk.f32.gmra.mxu0 %vm453_vm0, %v3557_v17  ;;  %3525 = vmatmul.msk.f32.gmra.mxu2 %vm453_vm0, %v1077_v18 }
 0x101   : > { %v4170_v19 = vpop.f32.mrf.mxu0 }
 0x102   : > { %675 = vrot.lane.b32.xlu1 %v4170_v19, %s3849_s13  ;;  %626 = vrot.lane.b32.xlu2 %v4170_v19, %s3848_s19 }
 0x104   : > { %3574 = vmatmul.msk.f32.gmra.mxu0 %vm453_vm0, %v3558_v20  ;;  %3526 = vmatmul.msk.f32.gmra.mxu2 %vm453_vm0, %v1079_v21  ;;  %v653_v20 = vadd.f32 %v4106_v58, %v585_v4  ;;  %v589_v4 = vadd.f32 %v4128_v2, %v4170_v19 }
 0x109   : > { %v4179_v22 = vpop.f32.mrf.mxu0 }
 0x10a   : > { %677 = vrot.lane.b32.xlu2 %v4179_v22, %s3849_s13  ;;  %628 = vrot.lane.b32.xlu0 %v4179_v22, %s3848_s19 }
 0x10c   : > { %3575 = vmatmul.msk.f32.gmra.mxu0 %vm453_vm0, %v3559_v23  ;;  %3527 = vmatmul.msk.f32.gmra.mxu2 %vm453_vm0, %v1081_v24  ;;  %v586_v23 = vadd.f32 %v4117_v62, %v4145_v10 }
 0x111   : > { %v4188_v25 = vpop.f32.mrf.mxu0 }
 0x112   : > { %679 = vrot.lane.b32.xlu0 %v4188_v25, %s3849_s13  ;;  %630 = vrot.lane.b32.xlu1 %v4188_v25, %s3848_s19 }
 0x114   : > { %3576 = vmatmul.msk.f32.gmra.mxu0 %vm453_vm0, %v3560_v26  ;;  %3528 = vmatmul.msk.f32.gmra.mxu2 %vm453_vm0, %v1083_v27  ;;  %v654_v27 = vadd.f32 %v4106_v58, %v586_v23 }
 0x119   : > { %v4197_v28 = vpop.f32.mrf.mxu0 }
 0x11a   : > { %681 = vrot.lane.b32.xlu1 %v4197_v28, %s3849_s13  ;;  %632 = vrot.lane.b32.xlu2 %v4197_v28, %s3848_s19 }
 0x11c   : > { %3577 = vmatmul.msk.f32.gmra.mxu0 %vm453_vm0, %v3561_v29  ;;  %3529 = vmatmul.msk.f32.gmra.mxu2 %vm453_vm0, %v1085_v30 }
 0x121   : > { %v4206_v31 = vpop.f32.mrf.mxu0 }
 0x122   : > { %683 = vrot.lane.b32.xlu2 %v4206_v31, %s3849_s13  ;;  %634 = vrot.lane.b32.xlu0 %v4206_v31, %s3848_s19 }
 0x124   : > { %3578 = vmatmul.msk.f32.gmra.mxu0 %vm453_vm0, %v3562_v32  ;;  %3530 = vmatmul.msk.f32.gmra.mxu2 %vm453_vm0, %v1087_v33 }
 0x129   : > { %v4215_v34 = vpop.f32.mrf.mxu0 }
 0x12a   : > { %685 = vrot.lane.b32.xlu0 %v4215_v34, %s3849_s13  ;;  %636 = vrot.lane.b32.xlu1 %v4215_v34, %s3848_s19 }
 0x12c   : > { %3579 = vmatmul.msk.f32.gmra.mxu0 %vm453_vm0, %v3563_v35  ;;  %3531 = vmatmul.msk.f32.gmra.mxu2 %vm453_vm0, %v1089_v36  ;;  %v4250_v49 = vpop.permute.xlu2 %614  ;;  %v588_v36 = vadd.f32 %v4128_v2, %v4161_v16 }
 0x131   : > { %v4224_v37 = vpop.f32.mrf.mxu0 }
 0x132   : > { %687 = vrot.lane.b32.xlu1 %v4224_v37, %s3849_s13 }
 0x134   : > { %3580 = vmatmul.msk.f32.gmra.mxu0 %vm453_vm0, %v3564_v38  ;;  %3532 = vmatmul.msk.f32.gmra.mxu2 %vm453_vm0, %v1091_v39  ;;  %v587_v38 = vadd.f32 %v4128_v2, %v4152_v13 }
 0x139   : > { %v4231_v40 = vpop.f32.mrf.mxu0 }
 0x13a   : > { %689 = vrot.lane.b32.xlu2 %v4231_v40, %s3849_s13 }
 0x13c   : > { %3581 = vmatmul.msk.f32.gmra.mxu0 %vm453_vm0, %v3565_v41  ;;  %3533 = vmatmul.msk.f32.gmra.mxu2 %vm453_vm0, %v1093_v42  ;;  %v4244_v46 = vpop.f32.mrf.mxu2 }
 0x141   : > { %v4238_v44 = vpop.f32.mrf.mxu0 }
 0x142   : > { %691 = vrot.lane.b32.xlu0 %v4238_v44, %s3849_s13 }
 0x144   : > { %3582 = vmatmul.msk.f32.gmra.mxu0 %vm453_vm0, %v3566_v45  ;;  %3534 = vmatmul.msk.f32.gmra.mxu2 %vm453_vm0, %v1095_v43  ;;  %v4257_v50 = vpop.permute.xlu2 %620  ;;  %v655_v43 = vadd.f32 %v4250_v49, %v587_v38  ;;  %v595_v45 = vadd.f32 %v4120_v63, %v4224_v37  ;;  %v596_v49 = vadd.f32 %v4120_v63, %v4231_v40 }
 0x149   : > { %v4247_v47 = vpop.f32.mrf.mxu0 }
 0x14a   : > { %1221 = vrot.lane.b32.xlu0 %v4244_v46, %s3848_s19  ;;  %693 = vrot.lane.b32.xlu1 %v4247_v47, %s3849_s13 }
 0x14c   : > { %3583 = vmatmul.msk.f32.gmra.mxu0 %vm453_vm0, %v3567_v48  ;;  %v617_v52 = vpop.permute.xlu0 %616  ;;  %v672_v53 = vpop.permute.xlu2 %671 }
 0x14d   : > { %v710_v56 = vadd.f32 %v672_v53, %v651_v55  ;;  %v656_v41 = vadd.f32 %v617_v52, %v588_v36 }
 0x14f   : > { %v838_v57 = vmul.f32 %v710_v56, %v710_v56 }
 0x154   : > { %v4275_v3 = vpop.permute.xlu1 %618 }
 0x157   : > { %v4261_v54 = vpop.f32.mrf.mxu2 }
 0x158   : > { %1223 = vrot.lane.b32.xlu1 %v4261_v54, %s3848_s19 }
 0x15c   : > { %v4292_v15 = vpop.permute.xlu2 %626 }
 0x15f   : > { %v4266_v60 = vpop.f32.mrf.mxu2 }
 0x160   : > { %1225 = vrot.lane.b32.xlu2 %v4266_v60, %s3848_s19  ;;  %870 = vrot.lane.b32.xlu1 %v838_v57, %s3849_s13 }
 0x164   : > { %v4268_v1 = vpop.permute.xlu0 %622  ;;  %v678_v26 = vpop.permute.xlu2 %677 }
 0x165   : > { %v713_v29 = vadd.f32 %v678_v26, %v654_v27 }
 0x167   : > { %v4278_v6 = vpop.f32.mrf.mxu2  ;;  %v841_v30 = vmul.f32 %v713_v29, %v713_v29 }
 0x168   : > { %1227 = vrot.lane.b32.xlu0 %v4278_v6, %s3848_s19 }
 0x16c   : > { %v674_v8 = vpop.permute.xlu0 %673  ;;  %v4283_v12 = vpop.permute.xlu1 %624 }
 0x16d   : > { %v711_v9 = vadd.f32 %v674_v8, %v652_v5  ;;  %v597_v5 = vadd.f32 %v4120_v63, %v4238_v44  ;;  %v657_v44 = vadd.f32 %v4275_v3, %v589_v4 }
 0x16f   : > { %v839_v11 = vmul.f32 %v711_v9, %v711_v9  ;;  %v4285_v14 = vpop.f32.mrf.mxu2 }
 0x170   : > { %742 = vrot.lane.b32.xlu0 %v710_v56, %s3849_s13  ;;  %1229 = vrot.lane.b32.xlu1 %v4285_v14, %s3848_s19 }
 0x171   : > { %872 = vrot.lane.b32.xlu2 %v839_v11, %s3849_s13 }
 0x174   : > { %v676_v17 = vpop.permute.xlu1 %675  ;;  %v633_v37 = vpop.permute.xlu2 %632 }
 0x175   : > { %v712_v21 = vadd.f32 %v676_v17, %v653_v20  ;;  %v664_v55 = vadd.f32 %v633_v37, %v596_v49 }
 0x177   : > { %v4294_v18 = vpop.f32.mrf.mxu2  ;;  %v840_v7 = vmul.f32 %v712_v21, %v712_v21  ;;  %v723_v8 = vadd.f32 %v4109_v59, %v664_v55  ;;  %v594_v55 = vadd.f32 %v4115_v61, %v4215_v34  ;;  %v593_v34 = vadd.f32 %v4115_v61, %v4206_v31 }
 0x178   : > { %1277 = vrot.lane.b32.xlu0 %v4285_v14, %s3849_s13  ;;  %744 = vrot.lane.b32.xlu1 %v711_v9, %s3849_s13 }
 0x179   : > { %1231 = vrot.lane.b32.xlu2 %v4294_v18, %s3848_s19  ;;  %v851_v11 = vmul.f32 %v723_v8, %v723_v8 }
 0x17c   : > { %v4318_v33 = vpop.permute.xlu0 %628  ;;  %v684_v17 = vpop.permute.xlu2 %683 }
 0x17d   : > { %v716_v20 = vadd.f32 %v684_v17, %v657_v44 }
 0x17f   : > { %v4304_v24 = vpop.f32.mrf.mxu2 }
 0x180   : > { %874 = vrot.lane.b32.xlu0 %v840_v7, %s3849_s13  ;;  %1279 = vrot.lane.b32.xlu1 %v4294_v18, %s3849_s13  ;;  %v844_v7 = vmul.f32 %v716_v20, %v716_v20 }
 0x181   : > { %746 = vrot.lane.b32.xlu2 %v712_v21, %s3849_s13 }
 0x184   : > { %v631_v10 = vpop.permute.xlu1 %630  ;;  %v680_v42 = vpop.permute.xlu0 %679 }
 0x185   : > { %v714_v51 = vadd.f32 %v680_v42, %v655_v43  ;;  %v663_v53 = vadd.f32 %v631_v10, %v595_v45  ;;  %v590_v10 = vadd.f32 %v4128_v2, %v4179_v22 }
 0x187   : > { %v4311_v32 = vpop.f32.mrf.mxu2  ;;  %v722_v13 = vadd.f32 %v4109_v59, %v663_v53  ;;  %v842_v56 = vmul.f32 %v714_v51, %v714_v51  ;;  %v658_v38 = vadd.f32 %v4257_v50, %v590_v10 }
 0x188   : > { %1233 = vrot.lane.b32.xlu0 %v4304_v24, %s3848_s19  ;;  %876 = vrot.lane.b32.xlu1 %v841_v30, %s3849_s13  ;;  %v591_v30 = vadd.f32 %v4115_v61, %v4188_v25 }
 0x189   : > { %1281 = vrot.lane.b32.xlu2 %v4304_v24, %s3849_s13  ;;  %v850_v52 = vmul.f32 %v722_v13, %v722_v13 }
 0x18a   : > { %v659_v36 = vadd.f32 %v4268_v1, %v591_v30 }
 0x18c   : > { %v682_v39 = vpop.permute.xlu1 %681 }
 0x18d   : > { %v715_v48 = vadd.f32 %v682_v39, %v656_v41  ;;  %v598_v39 = vadd.f32 %v4120_v63, %v4247_v47 }
 0x18f   : > { %v4320_v35 = vpop.f32.mrf.mxu2  ;;  %v843_v16 = vmul.f32 %v715_v48, %v715_v48 }
 0x190   : > { %748 = vrot.lane.b32.xlu0 %v713_v29, %s3849_s13  ;;  %1235 = vrot.lane.b32.xlu1 %v4311_v32, %s3848_s19  ;;  %v966_v29 = vld [vmem:[%s6619_s3] sm:$0xff] }
 0x191   : > { %1237 = vrot.lane.b32.xlu2 %v4320_v35, %s3848_s19  ;;  %1014 = vmatpush.msra.mxu1 %v966_v29 }
 0x194   : > { %v635_v57 = vpop.permute.xlu0 %634  ;;  %v690_v42 = vpop.permute.xlu2 %689 }
 0x195   : > { %v665_v9 = vadd.f32 %v635_v57, %v597_v5 }
 0x197   : > { %v4344_v0 = vpop.f32.mrf.mxu2  ;;  %v724_v40 = vadd.f32 %v4109_v59, %v665_v9 }
 0x198   : > { %1283 = vrot.lane.b32.xlu0 %v4311_v32, %s3849_s13  ;;  %750 = vrot.lane.b32.xlu1 %v714_v51, %s3849_s13 }
 0x199   : > { %752 = vrot.lane.b32.xlu2 %v715_v48, %s3849_s13  ;;  %v852_v23 = vmul.f32 %v724_v40, %v724_v40 }
 0x19c   : > { %v637_v26 = vpop.permute.xlu1 %636  ;;  %v686_v27 = vpop.permute.xlu0 %685 }
 0x19d   : > { %v717_v43 = vadd.f32 %v686_v27, %v658_v38  ;;  %v666_v45 = vadd.f32 %v637_v26, %v598_v39 }
 0x19f   : > { %v4361_v21 = vpop.f32.mrf.mxu2  ;;  %v725_v22 = vadd.f32 %v4109_v59, %v666_v45 }
 0x1a0   : > { %766 = vrot.lane.b32.xlu0 %v722_v13, %s3849_s13  ;;  %894 = vrot.lane.b32.xlu1 %v850_v52, %s3849_s13  ;;  %v592_v52 = vadd.f32 %v4115_v61, %v4197_v28 }
 0x1a1   : > { %880 = vrot.lane.b32.xlu2 %v843_v16, %s3849_s13  ;;  %v853_v51 = vmul.f32 %v725_v22, %v725_v22  ;;  %v845_v16 = vmul.f32 %v717_v43, %v717_v43 }
 0x1a2   : > { %v660_v49 = vadd.f32 %v4283_v12, %v592_v52 }
 0x1a4   : > { %v688_v3 = vpop.permute.xlu1 %687  ;;  %v719_v57 = vadd.f32 %v690_v42, %v660_v49 }
 0x1a5   : > { %v718_v41 = vadd.f32 %v688_v3, %v659_v36 }
 0x1a7   : > { %v4367_v19 = vpop.f32.mrf.mxu2  ;;  %v846_v1 = vmul.f32 %v718_v41, %v718_v41 }
 0x1a8   : > { %878 = vrot.lane.b32.xlu0 %v842_v56, %s3849_s13  ;;  %1285 = vrot.lane.b32.xlu1 %v4320_v35, %s3849_s13 }
 0x1a9   : > { %1287 = vrot.lane.b32.xlu2 %v4344_v0, %s3849_s13 }
 0x1af   : > { %v4394_v47 = vpop.f32.mrf.mxu2 }
 0x1b0   : > { %896 = vrot.lane.b32.xlu0 %v851_v11, %s3849_s13  ;;  %768 = vrot.lane.b32.xlu1 %v723_v8, %s3849_s13  ;;  %v662_v8 = vadd.f32 %v4318_v33, %v594_v55  ;;  %v661_v33 = vadd.f32 %v4292_v15, %v593_v34 }
 0x1b1   : > { %770 = vrot.lane.b32.xlu2 %v724_v40, %s3849_s13  ;;  %v847_v40 = vmul.f32 %v719_v57, %v719_v57 }
 0x1b4   : > { %v692_v48 = vpop.permute.xlu0 %691 }
 0x1b7   : > { %v4415_v5 = vpop.f32.mrf.mxu2 }
 0x1b8   : > { %1239 = vrot.lane.b32.xlu0 %v4344_v0, %s3848_s19  ;;  %882 = vrot.lane.b32.xlu1 %v844_v7, %s3849_s13  ;;  %6655 = vst [vmem:[#allocation8_spill] sm:$0xff] %v4415_v5 }
 0x1b9   : > { %898 = vrot.lane.b32.xlu2 %v852_v23, %s3849_s13 }
 0x1ba   : > { %v4390_v50 = vpop.permute.xlu2 %1225 }
 0x1bc   : > { %v694_v25 = vpop.permute.xlu1 %693  ;;  %v4399_v13 = vpop.permute.xlu0 %1221 }
 0x1bd   : > { %v721_v9 = vadd.f32 %v694_v25, %v662_v8 }
 0x1bf   : > { %v4429_v17 = vpop.f32.mrf.mxu2  ;;  %v849_v44 = vmul.f32 %v721_v9, %v721_v9 }
 0x1c0   : > { %754 = vrot.lane.b32.xlu0 %v716_v20, %s3849_s13  ;;  %1241 = vrot.lane.b32.xlu1 %v4361_v21, %s3848_s19  ;;  %v720_v20 = vadd.f32 %v692_v48, %v661_v33  ;;  %v1194_v33 = vadd.f32 %v4261_v54, %v4117_v62 }
 0x1c1   : > { %1243 = vrot.lane.b32.xlu2 %v4367_v19, %s3848_s19 }
 0x1c2   : > { %v848_v26 = vmul.f32 %v720_v20, %v720_v20 }
 0x1c7   : > { %v4438_v27 = vpop.f32.mrf.mxu2 }
 0x1c8   : > { %1289 = vrot.lane.b32.xlu0 %v4361_v21, %s3849_s13  ;;  %756 = vrot.lane.b32.xlu1 %v717_v43, %s3849_s13 }
 0x1c9   : > { %758 = vrot.lane.b32.xlu2 %v718_v41, %s3849_s13 }
 0x1ca   : > { %v4396_v53 = vpop.permute.xlu1 %1223 }
 0x1cb   : > { %v4403_v37 = vpop.permute.xlu2 %872 }
 0x1cc   : > { %v921_v55 = vsel %vm453_vm0, %v4403_v37, 0.0 }
 0x1d0   : > { %772 = vrot.lane.b32.xlu0 %v725_v22, %s3849_s13  ;;  %900 = vrot.lane.b32.xlu1 %v853_v51, %s3849_s13 }
 0x1d1   : > { %886 = vrot.lane.b32.xlu2 %v846_v1, %s3849_s13 }
 0x1d2   : > { %v871_v28 = vpop.permute.xlu1 %870 }
 0x1d3   : > { %v4418_v11 = vpop.permute.xlu2 %1231  ;;  %v918_v1 = vsel %vm453_vm0, %v871_v28, 0.0  ;;  %v1193_v28 = vadd.f32 %v4244_v46, %v4117_v62  ;;  %v1195_v46 = vadd.f32 %v4266_v60, %v4117_v62 }
 0x1d5   : > { %v1259_v54 = vadd.f32 %v1195_v46, %v4106_v58 }
 0x1d8   : > { %884 = vrot.lane.b32.xlu0 %v845_v16, %s3849_s13  ;;  %1291 = vrot.lane.b32.xlu1 %v4367_v19, %s3849_s13 }
 0x1d9   : > { %1293 = vrot.lane.b32.xlu2 %v4394_v47, %s3849_s13 }
 0x1da   : > { %v4413_v56 = vpop.permute.xlu0 %1227 }
 0x1db   : > { %v4434_v23 = vpop.permute.xlu2 %746 }
 0x1e0   : > { %760 = vrot.lane.b32.xlu0 %v719_v57, %s3849_s13  ;;  %888 = vrot.lane.b32.xlu1 %v847_v40, %s3849_s13  ;;  %v1257_v40 = vadd.f32 %v1193_v28, %v4106_v58 }
 0x1e1   : > { %764 = vrot.lane.b32.xlu2 %v721_v9, %s3849_s13 }
 0x1e2   : > { %v743_v12 = vpop.permute.xlu0 %742  ;;  %v4425_v4 = vpop.permute.xlu1 %1229 }
 0x1e3   : > { %3503 = vmatmul.msk.f32.vlgmr.msra.gmra.mxu1 %vm453_vm0, %v743_v12  ;;  %v1282_v3 = vpop.permute.xlu2 %1281  ;;  %v790_v16 = vsel %vm453_vm0, %v743_v12, 0.0 }
 0x1e8   : > { %1295 = vrot.lane.b32.xlu0 %v4415_v5, %s3849_s13  ;;  %762 = vrot.lane.b32.xlu1 %v720_v20, %s3849_s13  ;;  %v1258_v20 = vadd.f32 %v1194_v33, %v4106_v58 }
 0x1e9   : > { %892 = vrot.lane.b32.xlu2 %v849_v44, %s3849_s13 }
 0x1ea   : > { %v1278_v31 = vpop.permute.xlu0 %1277  ;;  %v745_v7 = vpop.permute.xlu1 %744 }
 0x1eb   : > { %3504 = vmatmul.msk.f32.gmra.mxu1 %vm453_vm0, %v745_v7  ;;  %v4453_v36 = vpop.permute.xlu2 %1237  ;;  %v793_v22 = vsel %vm453_vm0, %v745_v7, 0.0  ;;  %v4499_v44 = vadd.f32 %v1278_v31, %v1257_v40  ;;  %v4519_v31 = vadd.f32 %v1282_v3, %v1259_v54  ;;  %v796_v54 = vsel %vm453_vm0, %v4434_v23, 0.0 }
 0x1ed   : > { %6657 = vst [vmem:[#allocation10_spill] sm:$0xff] %v4499_v44 }
 0x1ee   : > { %6659 = vst [vmem:[#allocation12_spill] sm:$0xff] %v4519_v31 }
 0x1f0   : > { %890 = vrot.lane.b32.xlu0 %v848_v26, %s3849_s13  ;;  %1297 = vrot.lane.b32.xlu1 %v4429_v17, %s3849_s13 }
 0x1f1   : > { %1299 = vrot.lane.b32.xlu2 %v4438_v27, %s3849_s13 }
 0x1f2   : > { %v4445_v15 = vpop.permute.xlu0 %874  ;;  %v1280_v29 = vpop.permute.xlu1 %1279 }
 0x1f3   : > { %3505 = vmatmul.msk.f32.gmra.mxu1 %vm453_vm0, %v4434_v23  ;;  %v4461_v41 = vpop.permute.xlu2 %752  ;;  %v4508_v7 = vadd.f32 %v1280_v29, %v1258_v20 }
 0x1f5   : > { %6658 = vst [vmem:[#allocation11_spill] sm:$0xff] %v4508_v7 }
 0x1fa   : > { %v4449_v30 = vpop.permute.xlu0 %1233  ;;  %v4451_v10 = vpop.permute.xlu1 %876 }
 0x1fb   : > { %v4469_v45 = vpop.permute.xlu2 %880 }
 0x202   : > { %v4455_v38 = vpop.permute.xlu0 %748  ;;  %v4457_v39 = vpop.permute.xlu1 %1235 }
 0x203   : > { %3506 = vmatmul.msk.f32.gmra.mxu1 %vm453_vm0, %v4455_v38  ;;  %v4480_v52 = vpop.permute.xlu2 %1287  ;;  %v799_v5 = vsel %vm453_vm0, %v4455_v38, 0.0  ;;  %v805_v38 = vsel %vm453_vm0, %v4461_v41, 0.0 }
 0x20a   : > { %v4463_v42 = vpop.permute.xlu0 %1283  ;;  %v4465_v43 = vpop.permute.xlu1 %750 }
 0x20b   : > { %3507 = vmatmul.msk.f32.gmra.mxu1 %vm453_vm0, %v4465_v43  ;;  %v4488_v9 = vpop.permute.xlu2 %770 }
 0x212   : > { %v4471_v48 = vpop.permute.xlu0 %766  ;;  %v4473_v25 = vpop.permute.xlu1 %894 }
 0x213   : > { %3508 = vmatmul.msk.f32.gmra.mxu1 %vm453_vm0, %v4461_v41  ;;  %v4503_v37 = vpop.permute.xlu2 %898 }
 0x21a   : > { %794 = vadd.xlane.f32.xlu2 %v793_v22  ;;  %v879_v51 = vpop.permute.xlu0 %878  ;;  %919 = vadd.xlane.f32.xlu0 %v918_v1  ;;  %v4482_v49 = vpop.permute.xlu1 %1285 }
 0x21b   : > { %791 = vadd.xlane.f32.xlu1 %v790_v16  ;;  %v4521_v1 = vpop.permute.xlu2 %1243 }
 0x222   : > { %922 = vadd.xlane.f32.xlu2 %v921_v55  ;;  %v897_v57 = vpop.permute.xlu0 %896  ;;  %v4486_v8 = vpop.permute.xlu1 %768 }
 0x223   : > { %v4533_v55 = vpop.permute.xlu2 %758 }
 0x22a   : > { %v4493_v12 = vpop.permute.xlu0 %1239  ;;  %v4495_v34 = vpop.permute.xlu1 %882 }
 0x22b   : > { %6656 = vst [vmem:[#allocation9_spill] sm:$0xff] %v4493_v12  ;;  %v4543_v33 = vpop.permute.xlu2 %886  ;;  %v927_v12 = vsel %vm453_vm0, %v4451_v10, 0.0  ;;  %v1196_v10 = vadd.f32 %v4278_v6, %v4117_v62  ;;  %v1197_v6 = vadd.f32 %v4285_v14, %v4128_v2 }
 0x22e   : > { %1345 = vrot.lane.b32.xlu0 %v4499_v44, %s3849_s13 }
 0x232   : > { %v4510_v26 = vpop.permute.xlu0 %754  ;;  %v4512_v22 = vpop.permute.xlu1 %1241 }
 0x233   : > { %3509 = vmatmul.msk.f32.gmra.mxu1 %vm453_vm0, %v4510_v26  ;;  %v4553_v44 = vpop.permute.xlu2 %1293 }
 0x234   : > { %1347 = vrot.lane.b32.xlu1 %v4508_v7, %s3849_s13  ;;  %v924_v7 = vsel %vm453_vm0, %v4445_v15, 0.0  ;;  %v930_v15 = vsel %vm453_vm0, %v879_v51, 0.0  ;;  %v1261_v51 = vadd.f32 %v4399_v13, %v1197_v6  ;;  %v954_v6 = vsel %vm453_vm0, %v4473_v25, 0.0 }
 0x235   : > { %v933_v25 = vsel %vm453_vm0, %v4469_v45, 0.0 }
 0x236   : > { %v4593_v41 = vadd.f32 %v4482_v49, %v1261_v51 }
 0x23a   : > { %1349 = vrot.lane.b32.xlu2 %v4519_v31, %s3849_s13  ;;  %v4525_v60 = vpop.permute.xlu0 %1289  ;;  %v4527_v29 = vpop.permute.xlu1 %756 }
 0x23b   : > { %3510 = vmatmul.msk.f32.gmra.mxu1 %vm453_vm0, %v4527_v29  ;;  %v4565_v23 = vpop.permute.xlu2 %764 }
 0x242   : > { %v4531_v16 = vpop.permute.xlu0 %772  ;;  %v4535_v28 = vpop.permute.xlu1 %900 }
 0x243   : > { %3511 = vmatmul.msk.f32.gmra.mxu1 %vm453_vm0, %v4533_v55  ;;  %v4604_v13 = vpop.permute.xlu2 %892 }
 0x24a   : > { %v4539_v3 = vpop.permute.xlu0 %884  ;;  %v4541_v40 = vpop.permute.xlu1 %1291 }
 0x24b   : > { %v939_v45 = vsel %vm453_vm0, %v4539_v3, 0.0 }
 0x252   : > { %v4545_v20 = vpop.permute.xlu0 %760  ;;  %v4547_v46 = vpop.permute.xlu1 %888 }
 0x253   : > { %3512 = vmatmul.msk.f32.gmra.mxu1 %vm453_vm0, %v4545_v20 }
 0x258   : > { %797 = vadd.xlane.f32.xlu0 %v796_v54  ;;  %v802_v54 = vsel %vm453_vm0, %v4465_v43, 0.0  ;;  %v957_v43 = vsel %vm453_vm0, %v897_v57, 0.0  ;;  %v1198_v57 = vadd.f32 %v4294_v18, %v4128_v2  ;;  %v826_v18 = vsel %vm453_vm0, %v4471_v48, 0.0 }
 0x25a   : > { %v4555_v31 = vpop.permute.xlu1 %762  ;;  %v4602_v14 = vpop.permute.xlu0 %1295  ;;  %v1262_v49 = vadd.f32 %v4396_v53, %v1198_v57 }
 0x25b   : > { %3513 = vmatmul.msk.f32.gmra.mxu1 %vm453_vm0, %v4555_v31 }
 0x25e   : > { %925 = vadd.xlane.f32.xlu1 %v924_v7  ;;  %v4610_v7 = vadd.f32 %v4480_v52, %v1262_v49  ;;  %v960_v49 = vsel %vm453_vm0, %v4503_v37, 0.0 }
 0x260   : > { %928 = vadd.xlane.f32.xlu0 %v927_v12 }
 0x263   : > { %800 = vadd.xlane.f32.xlu2 %v799_v5  ;;  %3514 = vmatmul.msk.f32.gmra.mxu1 %vm453_vm0, %v4565_v23  ;;  %v1260_v5 = vadd.f32 %v1196_v10, %v4106_v58  ;;  %v4618_v10 = vpop.permute.xlu1 %1297 }
 0x265   : > { %v4580_v12 = vadd.f32 %v4463_v42, %v1260_v5  ;;  %v3535_v42 = vld [vmem:[%s6619_s3 + $0x10] sm:$0xff] }
 0x266   : > { %803 = vadd.xlane.f32.xlu1 %v802_v54  ;;  %1618 = vmatpush.msra.mxu3 %v3535_v42  ;;  %v4612_v54 = vpop.permute.xlu0 %890  ;;  %v829_v42 = vsel %vm453_vm0, %v4486_v8, 0.0 }
 0x26b   : > { %931 = vadd.xlane.f32.xlu2 %v930_v15  ;;  %3515 = vmatmul.msk.f32.gmra.mxu1 %vm453_vm0, %v4471_v48  ;;  %v4616_v15 = vpop.permute.xlu2 %1299  ;;  %v808_v48 = vsel %vm453_vm0, %v4510_v26, 0.0  ;;  %v832_v26 = vsel %vm453_vm0, %v4488_v9, 0.0 }
 0x273   : > { %806 = vadd.xlane.f32.xlu2 %v805_v38  ;;  %3516 = vmatmul.msk.f32.gmra.mxu1 %vm453_vm0, %v4486_v8  ;;  %v936_v8 = vsel %vm453_vm0, %v4495_v34, 0.0  ;;  %v1199_v34 = vadd.f32 %v4304_v24, %v4128_v2 }
 0x274   : > { %1351 = vrot.lane.b32.xlu0 %v4580_v12, %s3849_s13 }
 0x27b   : > { %958 = vadd.xlane.f32.xlu2 %v957_v43  ;;  %3517 = vmatmul.msk.f32.gmra.mxu1 %vm453_vm0, %v4488_v9  ;;  %v814_v9 = vsel %vm453_vm0, %v4533_v55, 0.0 }
 0x27f   : > { %1353 = vrot.lane.b32.xlu1 %v4593_v41, %s3849_s13 }
 0x283   : > { %3518 = vmatmul.msk.f32.gmra.mxu1 %vm453_vm0, %v4531_v16 }
 0x28d   : > { %v4620_v5 = vpop.xlane.xlu0 %919  ;;  %v4622_v38 = vpop.xlane.xlu2 %794 }
 0x28e   : > { %6660 = vst [vmem:[#allocation13_spill] sm:$0xff] %v4620_v5  ;;  %v4626_v53 = vpop.xlane.xlu1 %791 }
 0x293   : > { %1355 = vrot.lane.b32.xlu2 %v4610_v7, %s3849_s13 }
 0x295   : > { %v4634_v43 = vpop.xlane.xlu2 %922 }
 0x296   : > { %6661 = vst [vmem:[#allocation14_spill] sm:$0xff] %v4634_v43 }
 0x29d   : > { %v4644_v57 = vpop.permute.xlu2 %1349 }
 0x29e   : > { %827 = vadd.xlane.f32.xlu0 %v826_v18  ;;  %v811_v18 = vsel %vm453_vm0, %v4527_v29, 0.0  ;;  %v1200_v29 = vadd.f32 %v4311_v32, %v4128_v2 }
 0x2a0   : > { %v4628_v52 = vpop.permute.xlu0 %1345  ;;  %v1264_v24 = vadd.f32 %v4413_v56, %v1200_v29 }
 0x2a1   : > { %3536 = vmatmul.msk.f32.vlgmr.msra.gmra.mxu3 %vm453_vm0, %v4628_v52 }
 0x2a6   : > { %955 = vadd.xlane.f32.xlu0 %v954_v6  ;;  %v4636_v51 = vpop.permute.xlu1 %1347  ;;  %v1263_v6 = vadd.f32 %v4390_v50, %v1199_v34  ;;  %v4678_v50 = vadd.f32 %v4541_v40, %v1264_v24  ;;  %v817_v34 = vsel %vm453_vm0, %v4545_v20, 0.0  ;;  %v1202_v20 = vadd.f32 %v4344_v0, %v4115_v61 }
 0x2a8   : > { %v4664_v37 = vadd.f32 %v4525_v60, %v1263_v6  ;;  %v1201_v60 = vadd.f32 %v4320_v35, %v4115_v61  ;;  %v948_v6 = vsel %vm453_vm0, %v4612_v54, 0.0  ;;  %v1203_v54 = vadd.f32 %v4361_v21, %v4115_v61 }
 0x2a9   : > { %830 = vadd.xlane.f32.xlu1 %v829_v42  ;;  %3537 = vmatmul.msk.f32.gmra.mxu3 %vm453_vm0, %v4636_v51  ;;  %v1204_v21 = vadd.f32 %v4367_v19, %v4115_v61 }
 0x2aa   : > { %v1265_v32 = vadd.f32 %v4425_v4, %v1201_v60  ;;  %v1208_v60 = vadd.f32 %v4438_v27, %v4120_v63 }
 0x2ac   : > { %v1272_v19 = vadd.f32 %v4521_v1, %v1208_v60 }
 0x2ae   : > { %809 = vadd.xlane.f32.xlu0 %v808_v48  ;;  %v4777_v27 = vadd.f32 %v1272_v19, %v4109_v59 }
 0x2b1   : > { %934 = vadd.xlane.f32.xlu1 %v933_v25  ;;  %3538 = vmatmul.msk.f32.gmra.mxu3 %vm453_vm0, %v4644_v57 }
 0x2b6   : > { %937 = vadd.xlane.f32.xlu0 %v936_v8  ;;  %v4692_v8 = vadd.f32 %v4553_v44, %v1265_v32  ;;  %v835_v44 = vsel %vm453_vm0, %v4531_v16, 0.0  ;;  %v820_v16 = vsel %vm453_vm0, %v4555_v31, 0.0  ;;  %v1266_v31 = vadd.f32 %v4418_v11, %v1202_v20 }
 0x2b7   : > { %v1207_v32 = vadd.f32 %v4429_v17, %v4120_v63  ;;  %v1399_v20 = vsel %vm453_vm0, %v4644_v57, 0.0 }
 0x2b8   : > { %v4738_v29 = vadd.f32 %v4602_v14, %v1266_v31  ;;  %v1396_v31 = vsel %vm453_vm0, %v4636_v51, 0.0 }
 0x2b9   : > { %961 = vadd.xlane.f32.xlu1 %v960_v49 }
 0x2bc   : > { %833 = vadd.xlane.f32.xlu2 %v832_v26 }
 0x2c1   : > { %812 = vadd.xlane.f32.xlu1 %v811_v18  ;;  %v963_v18 = vsel %vm453_vm0, %v4535_v28, 0.0  ;;  %v945_v28 = vsel %vm453_vm0, %v4547_v46, 0.0  ;;  %v1205_v46 = vadd.f32 %v4394_v47, %v4120_v63 }
 0x2c3   : > { %v1269_v0 = vadd.f32 %v4453_v36, %v1205_v46 }
 0x2c4   : > { %940 = vadd.xlane.f32.xlu2 %v939_v45  ;;  %v942_v45 = vsel %vm453_vm0, %v4543_v33, 0.0  ;;  %v823_v33 = vsel %vm453_vm0, %v4565_v23, 0.0  ;;  %v1267_v23 = vadd.f32 %v4449_v30, %v1203_v54  ;;  %v1268_v30 = vadd.f32 %v4457_v39, %v1204_v21  ;;  %v6680_v54 = vld [vmem:[#allocation8_spill] sm:$0xff] }
 0x2c5   : > { %v4758_v47 = vadd.f32 %v1269_v0, %v4109_v59  ;;  %v1271_v39 = vadd.f32 %v4512_v22, %v1207_v32  ;;  %v1206_v46 = vadd.f32 %v6680_v54, %v4120_v63 }
 0x2c6   : > { %v4749_v11 = vadd.f32 %v4618_v10, %v1267_v23  ;;  %v4766_v36 = vadd.f32 %v4616_v15, %v1268_v30  ;;  %v6681_v23 = vld [vmem:[#allocation9_spill] sm:$0xff] }
 0x2c7   : > { %v4784_v15 = vadd.f32 %v1271_v39, %v4109_v59  ;;  %v1270_v0 = vadd.f32 %v6681_v23, %v1206_v46 }
 0x2c9   : > { %v4820_v57 = vadd.f32 %v1270_v0, %v4109_v59 }
 0x2ca   : > { %1357 = vrot.lane.b32.xlu0 %v4664_v37, %s3849_s13 }
 0x2cb   : > { %v4672_v3 = vpop.xlane.xlu0 %797 }
 0x2cc   : > { %815 = vadd.xlane.f32.xlu2 %v814_v9  ;;  %6662 = vst [vmem:[#allocation15_spill] sm:$0xff] %v4672_v3 }
 0x2d1   : > { %v4689_v25 = vpop.xlane.xlu1 %925 }
 0x2d2   : > { %6666 = vst [vmem:[#allocation19_spill] sm:$0xff] %v4689_v25 }
 0x2d3   : > { %v4686_v48 = vpop.xlane.xlu0 %928 }
 0x2d4   : > { %6665 = vst [vmem:[#allocation18_spill] sm:$0xff] %v4686_v48 }
 0x2d6   : > { %v4674_v42 = vpop.xlane.xlu2 %800 }
 0x2d7   : > { %6663 = vst [vmem:[#allocation16_spill] sm:$0xff] %v4674_v42 }
 0x2d9   : > { %v4702_v35 = vpop.xlane.xlu1 %803 }
 0x2da   : > { %1359 = vrot.lane.b32.xlu1 %v4678_v50, %s3849_s13  ;;  %6668 = vst [vmem:[#allocation21_spill] sm:$0xff] %v4702_v35 }
 0x2de   : > { %v4684_v55 = vpop.xlane.xlu2 %931 }
 0x2df   : > { %6664 = vst [vmem:[#allocation17_spill] sm:$0xff] %v4684_v55 }
 0x2e4   : > { %1361 = vrot.lane.b32.xlu2 %v4692_v8, %s3849_s13 }
 0x2e6   : > { %v4696_v56 = vpop.xlane.xlu2 %806  ;;  %v4698_v40 = vpop.permute.xlu0 %1351 }
 0x2e7   : > { %6667 = vst [vmem:[#allocation20_spill] sm:$0xff] %v4696_v56  ;;  %3539 = vmatmul.msk.f32.gmra.mxu3 %vm453_vm0, %v4698_v40  ;;  %v1402_v23 = vsel %vm453_vm0, %v4698_v40, 0.0 }
 0x2ee   : > { %v4704_v49 = vpop.xlane.xlu2 %958 }
 0x2ef   : > { %6669 = vst [vmem:[#allocation22_spill] sm:$0xff] %v4704_v49 }
 0x2f1   : > { %v4706_v4 = vpop.permute.xlu1 %1353 }
 0x2f2   : > { %3540 = vmatmul.msk.f32.gmra.mxu3 %vm453_vm0, %v4706_v4  ;;  %v1405_v21 = vsel %vm453_vm0, %v4706_v4, 0.0 }
 0x2f4   : > { %836 = vadd.xlane.f32.xlu0 %v835_v44 }
 0x2f6   : > { %v4712_v26 = vpop.permute.xlu2 %1355 }
 0x2fa   : > { %3541 = vmatmul.msk.f32.gmra.mxu3 %vm453_vm0, %v4712_v26 }
 0x2fc   : > { %964 = vadd.xlane.f32.xlu0 %v963_v18 }
 0x304   : > { %943 = vadd.xlane.f32.xlu1 %v942_v45  ;;  %818 = vadd.xlane.f32.xlu0 %v817_v34 }
 0x30c   : > { %821 = vadd.xlane.f32.xlu1 %v820_v16  ;;  %946 = vadd.xlane.f32.xlu0 %v945_v28  ;;  %v951_v28 = vsel %vm453_vm0, %v4604_v13, 0.0  ;;  %v1408_v13 = vsel %vm453_vm0, %v4712_v26, 0.0 }
 0x30d   : > { %949 = vadd.xlane.f32.xlu2 %v948_v6 }
 0x311   : > { %v4730_v9 = vpop.xlane.xlu0 %827 }
 0x312   : > { %6670 = vst [vmem:[#allocation23_spill] sm:$0xff] %v4730_v9 }
 0x315   : > { %824 = vadd.xlane.f32.xlu2 %v823_v33 }
 0x319   : > { %v4740_v24 = vpop.xlane.xlu0 %955 }
 0x31a   : > { %6671 = vst [vmem:[#allocation24_spill] sm:$0xff] %v4740_v24 }
 0x31c   : > { %v4755_v14 = vpop.xlane.xlu1 %830 }
 0x320   : > { %1363 = vrot.lane.b32.xlu0 %v4738_v29, %s3849_s13 }
 0x321   : > { %v4768_v10 = vpop.xlane.xlu0 %809 }
 0x322   : > { %6672 = vst [vmem:[#allocation25_spill] sm:$0xff] %v4768_v10 }
 0x324   : > { %v4779_v44 = vpop.xlane.xlu1 %934 }
 0x325   : > { %1365 = vrot.lane.b32.xlu1 %v4749_v11, %s3849_s13  ;;  %6673 = vst [vmem:[#allocation26_spill] sm:$0xff] %v4779_v44 }
 0x328   : > { %1369 = vrot.lane.b32.xlu0 %v4758_v47, %s3849_s13 }
 0x329   : > { %v4786_v1 = vpop.xlane.xlu0 %937 }
 0x32a   : > { %6674 = vst [vmem:[#allocation27_spill] sm:$0xff] %v4786_v1 }
 0x32c   : > { %v4792_v18 = vpop.xlane.xlu1 %961 }
 0x32d   : > { %1367 = vrot.lane.b32.xlu2 %v4766_v36, %s3849_s13  ;;  %6676 = vst [vmem:[#allocation29_spill] sm:$0xff] %v4792_v18 }
 0x32f   : > { %v4790_v17 = vpop.xlane.xlu2 %833 }
 0x330   : > { %1375 = vrot.lane.b32.xlu0 %v4777_v27, %s3849_s13  ;;  %6675 = vst [vmem:[#allocation28_spill] sm:$0xff] %v4790_v17 }
 0x334   : > { %v4797_v34 = vpop.xlane.xlu1 %812 }
 0x335   : > { %1373 = vrot.lane.b32.xlu2 %v4784_v15, %s3849_s13  ;;  %6678 = vst [vmem:[#allocation31_spill] sm:$0xff] %v4797_v34 }
 0x337   : > { %v4795_v45 = vpop.xlane.xlu2 %940 }
 0x338   : > { %6677 = vst [vmem:[#allocation30_spill] sm:$0xff] %v4795_v45 }
 0x33c   : > { %v1358_v22 = vpop.permute.xlu0 %1357 }
 0x33d   : > { %3542 = vmatmul.msk.f32.gmra.mxu3 %vm453_vm0, %v1358_v22 }
 0x33f   : > { %v4799_v16 = vpop.xlane.xlu2 %815 }
 0x340   : > { %6679 = vst [vmem:[#allocation32_spill] sm:$0xff] %v4799_v16 }
 0x347   : > { %v1362_v33 = vpop.permute.xlu2 %1361 }
 0x34c   : > { %v4801_v6 = vpop.permute.xlu1 %1359 }
 0x34d   : > { %3543 = vmatmul.msk.f32.gmra.mxu3 %vm453_vm0, %v4801_v6 }
 0x34f   : > { %952 = vadd.xlane.f32.xlu1 %v951_v28  ;;  %v1393_v28 = vsel %vm453_vm0, %v4628_v52, 0.0 }
 0x355   : > { %3544 = vmatmul.msk.f32.gmra.mxu3 %vm453_vm0, %v1362_v33 }
 0x35a   : > { %1400 = vadd.xlane.f32.xlu0 %v1399_v20 }
 0x35e   : > { %1397 = vadd.xlane.f32.xlu2 %v1396_v31 }
 0x362   : > { %1409 = vadd.xlane.f32.xlu0 %v1408_v13 }
 0x366   : > { %1406 = vadd.xlane.f32.xlu2 %v1405_v21  ;;  %v1411_v21 = vsel %vm453_vm0, %v1358_v22, 0.0  ;;  %v1417_v22 = vsel %vm453_vm0, %v1362_v33, 0.0  ;;  %v1414_v33 = vsel %vm453_vm0, %v4801_v6, 0.0 }
 0x367   : > { %v4824_v51 = vpop.xlane.xlu0 %836 }
 0x368   : > { %1371 = vrot.lane.b32.xlu1 %v4820_v57, %s3849_s13  ;;  %6682 = vst [vmem:[#allocation8_spill] sm:$0xff] %v4824_v51 }
 0x36f   : > { %v4826_v30 = vpop.xlane.xlu0 %964 }
 0x370   : > { %6683 = vst [vmem:[#allocation9_spill] sm:$0xff] %v4826_v30 }
 0x377   : > { %v4830_v19 = vpop.xlane.xlu0 %818  ;;  %v4834_v32 = vpop.xlane.xlu1 %943 }
 0x378   : > { %6685 = vst [vmem:[#allocation34_spill] sm:$0xff] %v4830_v19 }
 0x379   : > { %6687 = vst [vmem:[#allocation36_spill] sm:$0xff] %v4834_v32 }
 0x37f   : > { %v4836_v4 = vpop.xlane.xlu0 %946  ;;  %v4840_v20 = vpop.xlane.xlu1 %821 }
 0x380   : > { %v4828_v60 = vpop.xlane.xlu2 %949  ;;  %6688 = vst [vmem:[#allocation37_spill] sm:$0xff] %v4836_v4 }
 0x381   : > { %6684 = vst [vmem:[#allocation33_spill] sm:$0xff] %v4828_v60 }
 0x388   : > { %v4832_v26 = vpop.xlane.xlu2 %824 }
 0x389   : > { %6686 = vst [vmem:[#allocation35_spill] sm:$0xff] %v4832_v26 }
 0x390   : > { %v1368_v39 = vpop.permute.xlu2 %1367 }
 0x392   : > { %1394 = vadd.xlane.f32.xlu1 %v1393_v28  ;;  %v1364_v31 = vpop.permute.xlu0 %1363  ;;  %v6689_v28 = vld [vmem:[#allocation11_spill] sm:$0xff] }
 0x393   : > { %3545 = vmatmul.msk.f32.gmra.mxu3 %vm453_vm0, %v1364_v31  ;;  %v1442_v49 = vmul.f32 %v6689_v28, %v6689_v28 }
 0x397   : > { %v1366_v0 = vpop.permute.xlu1 %1365 }
 0x398   : > { %v1374_v54 = vpop.permute.xlu2 %1373 }
 0x399   : > { %v1435_v46 = vsel %vm453_vm0, %v1374_v54, 0.0 }
 0x39a   : > { %1436 = vadd.xlane.f32.xlu0 %v1435_v46  ;;  %1403 = vadd.xlane.f32.xlu1 %v1402_v23  ;;  %v1370_v13 = vpop.permute.xlu0 %1369  ;;  %v1420_v23 = vsel %vm453_vm0, %v1364_v31, 0.0 }
 0x39b   : > { %3546 = vmatmul.msk.f32.gmra.mxu3 %vm453_vm0, %v1366_v0  ;;  %v1429_v52 = vsel %vm453_vm0, %v1370_v13, 0.0 }
 0x3a2   : > { %1430 = vadd.xlane.f32.xlu1 %v1429_v52  ;;  %v1376_v40 = vpop.permute.xlu0 %1375  ;;  %v6690_v52 = vld [vmem:[#allocation12_spill] sm:$0xff] }
 0x3a3   : > { %3547 = vmatmul.msk.f32.gmra.mxu3 %vm453_vm0, %v1368_v39  ;;  %v1438_v46 = vsel %vm453_vm0, %v1376_v40, 0.0  ;;  %v1443_v30 = vmul.f32 %v6690_v52, %v6690_v52 }
 0x3aa   : > { %1412 = vadd.xlane.f32.xlu1 %v1411_v21  ;;  %v1449_v21 = vmul.f32 %v4692_v8, %v4692_v8  ;;  %v1455_v8 = vmul.f32 %v4784_v15, %v4784_v15 }
 0x3ab   : > { %3548 = vmatmul.msk.f32.gmra.mxu3 %vm453_vm0, %v1370_v13 }
 0x3ae   : > { %1475 = vrot.lane.b32.xlu0 %v1442_v49, %s3849_s13  ;;  %v1446_v49 = vmul.f32 %v4610_v7, %v4610_v7  ;;  %v1452_v7 = vmul.f32 %v4766_v36, %v4766_v36  ;;  %v6692_v36 = vld [vmem:[#allocation10_spill] sm:$0xff] }
 0x3af   : > { %v1441_v6 = vmul.f32 %v6692_v36, %v6692_v36 }
 0x3b2   : > { %1439 = vadd.xlane.f32.xlu1 %v1438_v46 }
 0x3ba   : > { %1421 = vadd.xlane.f32.xlu1 %v1420_v23 }
 0x3c2   : > { %v4858_v60 = vpop.xlane.xlu1 %952 }
 0x3c3   : > { %6691 = vst [vmem:[#allocation11_spill] sm:$0xff] %v4858_v60 }
 0x3cd   : > { %v4892_v28 = vpop.xlane.xlu0 %1400 }
 0x3ce   : > { %6693 = vst [vmem:[#allocation12_spill] sm:$0xff] %v4892_v28 }
 0x3d3   : > { %1477 = vrot.lane.b32.xlu1 %v1443_v30, %s3849_s13  ;;  %v1444_v30 = vmul.f32 %v4580_v12, %v4580_v12  ;;  %v1445_v12 = vmul.f32 %v4593_v41, %v4593_v41  ;;  %v1450_v41 = vmul.f32 %v4738_v29, %v4738_v29  ;;  %v1448_v29 = vmul.f32 %v4678_v50, %v4678_v50 }
 0x3d5   : > { %v4894_v15 = vpop.xlane.xlu0 %1409 }
 0x3d6   : > { %6694 = vst [vmem:[#allocation10_spill] sm:$0xff] %v4894_v15 }
 0x3d8   : > { %1418 = vadd.xlane.f32.xlu0 %v1417_v22  ;;  %v1423_v22 = vsel %vm453_vm0, %v1366_v0, 0.0  ;;  %v1456_v0 = vmul.f32 %v4777_v27, %v4777_v27  ;;  %v1454_v27 = vmul.f32 %v4820_v57, %v4820_v57 }
 0x3da   : > { %v1372_v13 = vpop.permute.xlu1 %1371 }
 0x3db   : > { %1483 = vrot.lane.b32.xlu1 %v1446_v49, %s3849_s13  ;;  %3549 = vmatmul.msk.f32.gmra.mxu3 %vm453_vm0, %v1372_v13  ;;  %v1432_v31 = vsel %vm453_vm0, %v1372_v13, 0.0 }
 0x3dc   : > { %1433 = vadd.xlane.f32.xlu2 %v1432_v31  ;;  %v4913_v31 = vpop.xlane.xlu2 %1397 }
 0x3e3   : > { %1489 = vrot.lane.b32.xlu1 %v1449_v21, %s3849_s13  ;;  %3550 = vmatmul.msk.f32.gmra.mxu3 %vm453_vm0, %v1374_v54  ;;  %v1447_v54 = vmul.f32 %v4664_v37, %v4664_v37  ;;  %v1426_v37 = vsel %vm453_vm0, %v1368_v39, 0.0  ;;  %v1453_v39 = vmul.f32 %v4758_v47, %v4758_v47  ;;  %v1451_v47 = vmul.f32 %v4749_v11, %v4749_v11 }
 0x3e4   : > { %1415 = vadd.xlane.f32.xlu2 %v1414_v33  ;;  %v4923_v33 = vpop.xlane.xlu2 %1406 }
 0x3e5   : > { %6699 = vst [vmem:[#allocation42_spill] sm:$0xff] %v4923_v33 }
 0x3eb   : > { %1495 = vrot.lane.b32.xlu1 %v1452_v7, %s3849_s13  ;;  %3551 = vmatmul.msk.f32.gmra.mxu3 %vm453_vm0, %v1376_v40 }
 0x3ec   : > { %1479 = vrot.lane.b32.xlu0 %v1444_v30, %s3849_s13 }
 0x3f3   : > { %1501 = vrot.lane.b32.xlu1 %v1455_v8, %s3849_s13  ;;  %v4934_v8 = vpop.f32.mrf.mxu0 }
 0x3f4   : > { %1485 = vrot.lane.b32.xlu0 %v1447_v54, %s3849_s13 }
 0x3fb   : > { %v4941_v36 = vpop.f32.mrf.mxu0 }
 0x3fc   : > { %1473 = vrot.lane.b32.xlu2 %v1441_v6, %s3849_s13 }
 0x404   : > { %1481 = vrot.lane.b32.xlu2 %v1445_v12, %s3849_s13 }
 0x405   : > { %v4900_v52 = vpop.xlane.xlu1 %1394 }
 0x40d   : > { %v4896_v40 = vpop.xlane.xlu0 %1436  ;;  %v4905_v49 = vpop.xlane.xlu1 %1403 }
 0x40e   : > { %6695 = vst [vmem:[#allocation38_spill] sm:$0xff] %v4896_v40 }
 0x40f   : > { %6696 = vst [vmem:[#allocation39_spill] sm:$0xff] %v4905_v49 }
 0x415   : > { %v4910_v13 = vpop.xlane.xlu1 %1430 }
 0x416   : > { %6697 = vst [vmem:[#allocation40_spill] sm:$0xff] %v4910_v13 }
 0x41d   : > { %v4920_v21 = vpop.xlane.xlu1 %1412 }
 0x41e   : > { %1427 = vadd.xlane.f32.xlu0 %v1426_v37  ;;  %6698 = vst [vmem:[#allocation41_spill] sm:$0xff] %v4920_v21 }
 0x420   : > { %v1476_v46 = vpop.permute.xlu0 %1475 }
 0x421   : > { %v1524_v23 = vsel %vm453_vm0, %v1476_v46, 0.0  ;;  %v4944_v46 = vpop.f32.mrf.mxu0 }
 0x422   : > { %1525 = vadd.xlane.f32.xlu1 %v1524_v23  ;;  %v1848_v10 = vadd.f32 %v4944_v46, %v4117_v62 }
 0x425   : > { %v4928_v7 = vpop.xlane.xlu1 %1439 }
 0x426   : > { %6700 = vst [vmem:[#allocation43_spill] sm:$0xff] %v4928_v7 }
 0x42d   : > { %1424 = vadd.xlane.f32.xlu2 %v1423_v22  ;;  %v4939_v54 = vpop.xlane.xlu1 %1421  ;;  %v4947_v22 = vpop.f32.mrf.mxu0 }
 0x42e   : > { %6702 = vst [vmem:[#allocation45_spill] sm:$0xff] %v4939_v54 }
 0x432   : > { %1491 = vrot.lane.b32.xlu0 %v1450_v41, %s3849_s13 }
 0x43a   : > { %1497 = vrot.lane.b32.xlu0 %v1453_v39, %s3849_s13 }
 0x442   : > { %1503 = vrot.lane.b32.xlu0 %v1456_v0, %s3849_s13 }
 0x445   : > { %1487 = vrot.lane.b32.xlu2 %v1448_v29, %s3849_s13  ;;  %v1478_v6 = vpop.permute.xlu1 %1477 }
 0x446   : > { %v1527_v57 = vsel %vm453_vm0, %v1478_v6, 0.0 }
 0x44b   : > { %v4950_v0 = vpop.xlane.xlu0 %1418 }
 0x44c   : > { %6703 = vst [vmem:[#allocation46_spill] sm:$0xff] %v4950_v0 }
 0x44d   : > { %1493 = vrot.lane.b32.xlu2 %v1451_v47, %s3849_s13  ;;  %v1484_v23 = vpop.permute.xlu1 %1483  ;;  %v4953_v47 = vpop.f32.mrf.mxu0 }
 0x44e   : > { %v1536_v41 = vsel %vm453_vm0, %v1484_v23, 0.0 }
 0x44f   : > { %v4930_v30 = vpop.xlane.xlu2 %1433 }
 0x455   : > { %1499 = vrot.lane.b32.xlu2 %v1454_v27, %s3849_s13  ;;  %v1490_v39 = vpop.permute.xlu1 %1489  ;;  %v4958_v23 = vpop.f32.mrf.mxu0 }
 0x456   : > { %v1545_v29 = vsel %vm453_vm0, %v1490_v39, 0.0 }
 0x457   : > { %v4937_v50 = vpop.xlane.xlu2 %1415 }
 0x458   : > { %6701 = vst [vmem:[#allocation44_spill] sm:$0xff] %v4937_v50 }
 0x45f   : > { %v1474_v11 = vpop.permute.xlu2 %1473 }
 0x460   : > { %v1521_v27 = vsel %vm453_vm0, %v1474_v11, 0.0  ;;  %v4962_v11 = vpop.f32.mrf.mxu0 }
 0x467   : > { %v1482_v12 = vpop.permute.xlu2 %1481 }
 0x468   : > { %v1533_v37 = vsel %vm453_vm0, %v1482_v12, 0.0  ;;  %v1496_v12 = vpop.permute.xlu1 %1495 }
 0x469   : > { %1534 = vadd.xlane.f32.xlu1 %v1533_v37  ;;  %v1480_v37 = vpop.permute.xlu0 %1479  ;;  %v1554_v6 = vsel %vm453_vm0, %v1496_v12, 0.0 }
 0x46c   : > { %1528 = vadd.xlane.f32.xlu0 %v1527_v57  ;;  %v1530_v57 = vsel %vm453_vm0, %v1480_v37, 0.0 }
 0x471   : > { %v1486_v24 = vpop.permute.xlu0 %1485 }
 0x474   : > { %1537 = vadd.xlane.f32.xlu0 %v1536_v41  ;;  %v1502_v41 = vpop.permute.xlu1 %1501 }
 0x475   : > { %v1563_v39 = vsel %vm453_vm0, %v1502_v41, 0.0 }
 0x47c   : > { %1546 = vadd.xlane.f32.xlu0 %v1545_v29  ;;  %v1539_v29 = vsel %vm453_vm0, %v1486_v24, 0.0 }
 0x47e   : > { %1522 = vadd.xlane.f32.xlu2 %v1521_v27  ;;  %v4964_v27 = vpop.f32.mrf.mxu0 }
 0x484   : > { %1555 = vadd.xlane.f32.xlu0 %v1554_v6 }
 0x486   : > { %1531 = vadd.xlane.f32.xlu2 %v1530_v57  ;;  %v4972_v6 = vpop.f32.mrf.mxu0 }
 0x48c   : > { %1564 = vadd.xlane.f32.xlu0 %v1563_v39 }
 0x48e   : > { %1540 = vadd.xlane.f32.xlu2 %v1539_v29  ;;  %v4979_v4 = vpop.f32.mrf.mxu0 }
 0x491   : > { %v4966_v45 = vpop.xlane.xlu0 %1427 }
 0x492   : > { %6704 = vst [vmem:[#allocation47_spill] sm:$0xff] %v4966_v45  ;;  %v1912_v45 = vadd.f32 %v1848_v10, %v4106_v58 }
 0x495   : > { %v5056_v44 = vpop.xlane.xlu1 %1525 }
 0x496   : > { %6713 = vst [vmem:[#allocation56_spill] sm:$0xff] %v5056_v44 }
 0x4a0   : > { %v4968_v12 = vpop.xlane.xlu2 %1424  ;;  %1876 = vrot.lane.b32.xlu0 %v4941_v36, %s3848_s19 }
 0x4a4   : > { %v1492_v37 = vpop.permute.xlu0 %1491 }
 0x4a5   : > { %v1548_v57 = vsel %vm453_vm0, %v1492_v37, 0.0 }
 0x4a6   : > { %1549 = vadd.xlane.f32.xlu2 %v1548_v57 }
 0x4a8   : > { %v1488_v41 = vpop.permute.xlu2 %1487  ;;  %1880 = vrot.lane.b32.xlu0 %v4947_v22, %s3848_s19 }
 0x4a9   : > { %v1542_v24 = vsel %vm453_vm0, %v1488_v41, 0.0  ;;  %v4987_v41 = vpop.f32.mrf.mxu0 }
 0x4aa   : > { %1543 = vadd.xlane.f32.xlu1 %v1542_v24 }
 0x4ac   : > { %v1498_v39 = vpop.permute.xlu0 %1497 }
 0x4ad   : > { %v1557_v29 = vsel %vm453_vm0, %v1498_v39, 0.0 }
 0x4ae   : > { %1558 = vadd.xlane.f32.xlu2 %v1557_v29 }
 0x4b0   : > { %v1494_v1 = vpop.permute.xlu2 %1493  ;;  %1886 = vrot.lane.b32.xlu0 %v4962_v11, %s3848_s19 }
 0x4b1   : > { %v1551_v37 = vsel %vm453_vm0, %v1494_v1, 0.0  ;;  %v4992_v39 = vpop.f32.mrf.mxu0 }
 0x4b2   : > { %1552 = vadd.xlane.f32.xlu1 %v1551_v37 }
 0x4b4   : > { %v1504_v57 = vpop.permute.xlu0 %1503 }
 0x4b5   : > { %v1566_v18 = vsel %vm453_vm0, %v1504_v57, 0.0 }
 0x4b6   : > { %1567 = vadd.xlane.f32.xlu2 %v1566_v18 }
 0x4b8   : > { %v1500_v48 = vpop.permute.xlu2 %1499  ;;  %1892 = vrot.lane.b32.xlu0 %v4979_v4, %s3848_s19 }
 0x4b9   : > { %v1560_v24 = vsel %vm453_vm0, %v1500_v48, 0.0  ;;  %v4996_v1 = vpop.f32.mrf.mxu0 }
 0x4ba   : > { %1561 = vadd.xlane.f32.xlu1 %v1560_v24 }
 0x4c0   : > { %1930 = vrot.lane.b32.xlu0 %v4953_v47, %s3849_s13 }
 0x4c1   : > { %v5006_v48 = vpop.f32.mrf.mxu0 }
 0x4c8   : > { %1936 = vrot.lane.b32.xlu0 %v4964_v27, %s3849_s13 }
 0x4c9   : > { %v5032_v57 = vpop.f32.mrf.mxu0 }
 0x4ce   : > { %1878 = vrot.lane.b32.xlu2 %v4944_v46, %s3848_s19 }
 0x4d0   : > { %1942 = vrot.lane.b32.xlu0 %v4987_v41, %s3849_s13 }
 0x4d1   : > { %v5044_v5 = vpop.f32.mrf.mxu0 }
 0x4d3   : > { %1874 = vrot.lane.b32.xlu1 %v4934_v8, %s3848_s19 }
 0x4d6   : > { %1884 = vrot.lane.b32.xlu2 %v4958_v23, %s3848_s19 }
 0x4d8   : > { %1948 = vrot.lane.b32.xlu0 %v5006_v48, %s3849_s13 }
 0x4db   : > { %1882 = vrot.lane.b32.xlu1 %v4953_v47, %s3848_s19 }
 0x4dc   : > { %v5062_v25 = vpop.xlane.xlu1 %1534 }
 0x4dd   : > { %6715 = vst [vmem:[#allocation58_spill] sm:$0xff] %v5062_v25 }
 0x4de   : > { %1890 = vrot.lane.b32.xlu2 %v4972_v6, %s3848_s19 }
 0x4df   : > { %v5014_v18 = vpop.xlane.xlu0 %1528 }
 0x4e0   : > { %6705 = vst [vmem:[#allocation48_spill] sm:$0xff] %v5014_v18 }
 0x4e3   : > { %1888 = vrot.lane.b32.xlu1 %v4964_v27, %s3848_s19 }
 0x4e6   : > { %1896 = vrot.lane.b32.xlu2 %v4992_v39, %s3848_s19 }
 0x4e7   : > { %v5022_v29 = vpop.xlane.xlu0 %1537 }
 0x4e8   : > { %6706 = vst [vmem:[#allocation49_spill] sm:$0xff] %v5022_v29 }
 0x4eb   : > { %1894 = vrot.lane.b32.xlu1 %v4987_v41, %s3848_s19 }
 0x4ee   : > { %1934 = vrot.lane.b32.xlu2 %v4962_v11, %s3849_s13 }
 0x4ef   : > { %v5028_v37 = vpop.xlane.xlu0 %1546 }
 0x4f0   : > { %6707 = vst [vmem:[#allocation50_spill] sm:$0xff] %v5028_v37 }
 0x4f1   : > { %v5036_v24 = vpop.xlane.xlu2 %1522 }
 0x4f2   : > { %6708 = vst [vmem:[#allocation51_spill] sm:$0xff] %v5036_v24 }
 0x4f3   : > { %1932 = vrot.lane.b32.xlu1 %v4958_v23, %s3849_s13 }
 0x4f6   : > { %1940 = vrot.lane.b32.xlu2 %v4979_v4, %s3849_s13 }
 0x4f7   : > { %v5040_v60 = vpop.xlane.xlu0 %1555 }
 0x4f8   : > { %6709 = vst [vmem:[#allocation52_spill] sm:$0xff] %v5040_v60 }
 0x4f9   : > { %v5048_v37 = vpop.xlane.xlu2 %1531 }
 0x4fa   : > { %6710 = vst [vmem:[#allocation53_spill] sm:$0xff] %v5048_v37 }
 0x4fb   : > { %1938 = vrot.lane.b32.xlu1 %v4972_v6, %s3849_s13 }
 0x4fe   : > { %1946 = vrot.lane.b32.xlu2 %v4996_v1, %s3849_s13 }
 0x4ff   : > { %v5050_v32 = vpop.xlane.xlu0 %1564 }
 0x500   : > { %6711 = vst [vmem:[#allocation54_spill] sm:$0xff] %v5050_v32 }
 0x501   : > { %v5054_v24 = vpop.xlane.xlu2 %1540 }
 0x502   : > { %6712 = vst [vmem:[#allocation55_spill] sm:$0xff] %v5054_v24  ;;  %v1846_v24 = vadd.f32 %v4934_v8, %v4117_v62 }
 0x503   : > { %1944 = vrot.lane.b32.xlu1 %v4992_v39, %s3849_s13 }
 0x506   : > { %1952 = vrot.lane.b32.xlu2 %v5044_v5, %s3849_s13 }
 0x50b   : > { %1950 = vrot.lane.b32.xlu1 %v5032_v57, %s3849_s13 }
 0x512   : > { %v1877_v29 = vpop.permute.xlu0 %1876 }
 0x519   : > { %v5058_v60 = vpop.xlane.xlu2 %1549 }
 0x51a   : > { %6714 = vst [vmem:[#allocation57_spill] sm:$0xff] %v5058_v60  ;;  %v5060_v18 = vpop.permute.xlu0 %1880  ;;  %v1910_v60 = vadd.f32 %v1846_v24, %v4106_v58 }
 0x51d   : > { %v5068_v37 = vpop.xlane.xlu1 %1543 }
 0x51e   : > { %6717 = vst [vmem:[#allocation60_spill] sm:$0xff] %v5068_v37 }
 0x521   : > { %v5064_v55 = vpop.xlane.xlu2 %1558 }
 0x522   : > { %6716 = vst [vmem:[#allocation59_spill] sm:$0xff] %v5064_v55  ;;  %v5066_v43 = vpop.permute.xlu0 %1886  ;;  %v1849_v55 = vadd.f32 %v4947_v22, %v4117_v62 }
 0x524   : > { %v1913_v37 = vadd.f32 %v1849_v55, %v4106_v58  ;;  %v3763_v55 = vld [vmem:[%s4056_s9 + $0x18] sm:$0xff] }
 0x525   : > { %v5075_v7 = vpop.xlane.xlu1 %1552 }
 0x526   : > { %6719 = vst [vmem:[#allocation62_spill] sm:$0xff] %v5075_v7 }
 0x529   : > { %v5070_v32 = vpop.xlane.xlu2 %1567 }
 0x52a   : > { %6718 = vst [vmem:[#allocation61_spill] sm:$0xff] %v5070_v32  ;;  %v1893_v50 = vpop.permute.xlu0 %1892 }
 0x52d   : > { %v5086_v21 = vpop.xlane.xlu1 %1561 }
 0x52e   : > { %6720 = vst [vmem:[#allocation63_spill] sm:$0xff] %v5086_v21 }
 0x531   : > { %v1879_v44 = vpop.permute.xlu2 %1878 }
 0x532   : > { %v1931_v34 = vpop.permute.xlu0 %1930 }
 0x533   : > { %v5077_v25 = vadd.f32 %v1931_v34, %v1910_v60  ;;  %v3762_v60 = vld [vmem:[%s4056_s9 + $0x8] sm:$0xff] }
 0x535   : > { %1998 = vrot.lane.b32.xlu0 %v5077_v25, %s3849_s13 }
 0x539   : > { %v1885_v32 = vpop.permute.xlu2 %1884 }
 0x53a   : > { %v1937_v51 = vpop.permute.xlu0 %1936 }
 0x53b   : > { %v5084_v8 = vadd.f32 %v1937_v51, %v1913_v37  ;;  %v1855_v37 = vadd.f32 %v4979_v4, %v4115_v61 }
 0x53d   : > { %2004 = vrot.lane.b32.xlu0 %v5084_v8, %s3849_s13  ;;  %v1919_v26 = vadd.f32 %v1885_v32, %v1855_v37 }
 0x541   : > { %v5090_v34 = vpop.permute.xlu2 %1890 }
 0x542   : > { %v1943_v24 = vpop.permute.xlu0 %1942 }
 0x545   : > { %2369 = vrot.lane.b32.xlu0 %v3762_v60, %s3849_s13  ;;  %v1875_v22 = vpop.permute.xlu1 %1874 }
 0x549   : > { %v1897_v7 = vpop.permute.xlu2 %1896 }
 0x54a   : > { %v1949_v21 = vpop.permute.xlu0 %1948 }
 0x54b   : > { %v5103_v60 = vadd.f32 %v1949_v21, %v1919_v26  ;;  %v1857_v21 = vadd.f32 %v4992_v39, %v4115_v61 }
 0x54d   : > { %2371 = vrot.lane.b32.xlu0 %v3763_v55, %s3849_s13  ;;  %v1883_v51 = vpop.permute.xlu1 %1882  ;;  %v1851_v55 = vadd.f32 %v4958_v23, %v4128_v2 }
 0x54f   : > { %v1915_v4 = vadd.f32 %v1877_v29, %v1851_v55  ;;  %v1850_v29 = vadd.f32 %v4953_v47, %v4128_v2  ;;  %v1853_v47 = vadd.f32 %v4964_v27, %v4128_v2 }
 0x551   : > { %v1935_v13 = vpop.permute.xlu2 %1934 }
 0x552   : > { %v5101_v9 = vadd.f32 %v1935_v13, %v1912_v45  ;;  %v1847_v45 = vadd.f32 %v4941_v36, %v4117_v62  ;;  %v1859_v36 = vadd.f32 %v5006_v48, %v4120_v63  ;;  %v1861_v48 = vadd.f32 %v5044_v5, %v4120_v63 }
 0x553   : > { %v1854_v5 = vadd.f32 %v4972_v6, %v4115_v61  ;;  %v1856_v6 = vadd.f32 %v4987_v41, %v4115_v61  ;;  %v3767_v41 = vld [vmem:[%s4056_s9 + $0x98] sm:$0xff] }
 0x554   : > { %2002 = vrot.lane.b32.xlu2 %v5101_v9, %s3849_s13  ;;  %v1911_v32 = vadd.f32 %v1847_v45, %v4106_v58  ;;  %v1923_v45 = vadd.f32 %v1893_v50, %v1859_v36  ;;  %v1917_v50 = vadd.f32 %v5060_v18, %v1853_v47  ;;  %v3764_v18 = vld [vmem:[%s4056_s9 + $0x28] sm:$0xff] }
 0x555   : > { %2016 = vrot.lane.b32.xlu0 %v5103_v60, %s3849_s13  ;;  %v1889_v46 = vpop.permute.xlu1 %1888  ;;  %v1918_v27 = vadd.f32 %v1883_v51, %v1854_v5  ;;  %v3765_v51 = vld [vmem:[%s4056_s9 + $0x78] sm:$0xff] }
 0x556   : > { %v1921_v23 = vadd.f32 %v1889_v46, %v1857_v21  ;;  %v1852_v46 = vadd.f32 %v4962_v11, %v4128_v2  ;;  %v1925_v11 = vadd.f32 %v1897_v7, %v1861_v48 }
 0x559   : > { %v1941_v49 = vpop.permute.xlu2 %1940 }
 0x55a   : > { %v5111_v42 = vadd.f32 %v1941_v49, %v1915_v4  ;;  %v1914_v4 = vadd.f32 %v1875_v22, %v1850_v29  ;;  %v1916_v22 = vadd.f32 %v1879_v44, %v1852_v46  ;;  %v5159_v44 = vadd.f32 %v1925_v11, %v4109_v59  ;;  %v3768_v46 = vld [vmem:[%s4056_s9 + $0x48] sm:$0xff] }
 0x55b   : > { %v1920_v29 = vadd.f32 %v5066_v43, %v1856_v6  ;;  %v3774_v11 = vld [vmem:[%s4056_s9 + $0x88] sm:$0xff] }
 0x55c   : > { %2008 = vrot.lane.b32.xlu2 %v5111_v42, %s3849_s13 }
 0x55d   : > { %v1895_v10 = vpop.permute.xlu1 %1894 }
 0x561   : > { %v1947_v26 = vpop.permute.xlu2 %1946 }
 0x562   : > { %v5163_v7 = vadd.f32 %v1947_v26, %v1918_v27  ;;  %v3584_v26 = vld [vmem:[%s6619_s3 + $0x8] sm:$0xff] }
 0x563   : > { %2271 = vmatpush.msrb.mxu1 %v3584_v26 }
 0x565   : > { %v1933_v13 = vpop.permute.xlu1 %1932 }
 0x566   : > { %v5120_v37 = vadd.f32 %v1933_v13, %v1911_v32  ;;  %v5141_v13 = vadd.f32 %v1923_v45, %v4109_v59 }
 0x568   : > { %2000 = vrot.lane.b32.xlu1 %v5120_v37, %s3849_s13 }
 0x569   : > { %v1953_v49 = vpop.permute.xlu2 %1952 }
 0x56a   : > { %v5126_v55 = vadd.f32 %v1953_v49, %v1921_v23  ;;  %v5148_v23 = vadd.f32 %v1943_v24, %v1916_v22  ;;  %v3772_v22 = vld [vmem:[%s4056_s9 + $0x68] sm:$0xff] }
 0x56c   : > { %2020 = vrot.lane.b32.xlu0 %v5126_v55, %s3849_s13 }
 0x56d   : > { %v1939_v39 = vpop.permute.xlu1 %1938 }
 0x56e   : > { %v5132_v32 = vadd.f32 %v1939_v39, %v1914_v4  ;;  %v1858_v4 = vadd.f32 %v4996_v1, %v4120_v63  ;;  %v3766_v39 = vld [vmem:[%s4056_s9 + $0x38] sm:$0xff]  ;;  %v1860_v1 = vadd.f32 %v5032_v57, %v4120_v63 }
 0x56f   : > { %v3771_v57 = vld [vmem:[%s4056_s9 + $0xb8] sm:$0xff] }
 0x570   : > { %2006 = vrot.lane.b32.xlu1 %v5132_v32, %s3849_s13  ;;  %v1922_v43 = vadd.f32 %v5090_v34, %v1858_v4  ;;  %v1924_v47 = vadd.f32 %v1895_v10, %v1860_v1  ;;  %v3769_v34 = vld [vmem:[%s4056_s9 + $0xa8] sm:$0xff] }
 0x572   : > { %v5189_v45 = vadd.f32 %v1922_v43, %v4109_v59  ;;  %v5200_v48 = vadd.f32 %v1924_v47, %v4109_v59 }
 0x574   : > { %2024 = vrot.lane.b32.xlu0 %v5141_v13, %s3849_s13 }
 0x575   : > { %v1945_v21 = vpop.permute.xlu1 %1944 }
 0x576   : > { %v5150_v49 = vadd.f32 %v1945_v21, %v1917_v50  ;;  %v3770_v50 = vld [vmem:[%s4056_s9 + $0x58] sm:$0xff]  ;;  %v3773_v21 = vld [vmem:[%s4056_s9 + $0xc8] sm:$0xff] }
 0x578   : > { %2010 = vrot.lane.b32.xlu1 %v5148_v23, %s3849_s13  ;;  %2012 = vrot.lane.b32.xlu2 %v5150_v49, %s3849_s13 }
 0x57c   : > { %2028 = vrot.lane.b32.xlu0 %v5159_v44, %s3849_s13 }
 0x57d   : > { %v1951_v24 = vpop.permute.xlu1 %1950 }
 0x57e   : > { %v5177_v36 = vadd.f32 %v1951_v24, %v1920_v29 }
 0x580   : > { %2014 = vrot.lane.b32.xlu1 %v5163_v7, %s3849_s13  ;;  %2373 = vrot.lane.b32.xlu2 %v3764_v18, %s3849_s13 }
 0x584   : > { %2383 = vrot.lane.b32.xlu0 %v3765_v51, %s3849_s13 }
 0x588   : > { %2375 = vrot.lane.b32.xlu2 %v3766_v39, %s3849_s13  ;;  %2018 = vrot.lane.b32.xlu1 %v5177_v36, %s3849_s13  ;;  %v3775_v39 = vld [vmem:[%s4056_s9 + $0xd8] sm:$0xff] }
 0x58c   : > { %2387 = vrot.lane.b32.xlu0 %v3767_v41, %s3849_s13 }
 0x590   : > { %2377 = vrot.lane.b32.xlu2 %v3768_v46, %s3849_s13  ;;  %2022 = vrot.lane.b32.xlu1 %v5189_v45, %s3849_s13  ;;  %v3776_v46 = vld [vmem:[%s4056_s9 + $0xf8] sm:$0xff] }
 0x594   : > { %2389 = vrot.lane.b32.xlu0 %v3769_v34, %s3849_s13 }
 0x598   : > { %2026 = vrot.lane.b32.xlu2 %v5200_v48, %s3849_s13  ;;  %2379 = vrot.lane.b32.xlu1 %v3770_v50, %s3849_s13 }
 0x59c   : > { %2391 = vrot.lane.b32.xlu0 %v3771_v57, %s3849_s13 }
 0x5a0   : > { %2381 = vrot.lane.b32.xlu1 %v3772_v22, %s3849_s13 }
 0x5a4   : > { %2393 = vrot.lane.b32.xlu0 %v3773_v21, %s3849_s13 }
 0x5a7   : > { %v1999_v10 = vpop.permute.xlu0 %1998 }
 0x5a8   : > { %3585 = vmatmul.msk.f32.vlgmr.msrb.gmra.mxu1 %vm453_vm0, %v1999_v10  ;;  %2385 = vrot.lane.b32.xlu1 %v3774_v11, %s3849_s13  ;;  %v2046_v24 = vsel %vm453_vm0, %v1999_v10, 0.0 }
 0x5ae   : > { %v2003_v6 = vpop.permute.xlu2 %2002 }
 0x5af   : > { %v2005_v5 = vpop.permute.xlu0 %2004  ;;  %v2052_v51 = vsel %vm453_vm0, %v2003_v6, 0.0 }
 0x5b6   : > { %v2009_v29 = vpop.permute.xlu2 %2008 }
 0x5b7   : > { %v2370_v27 = vpop.permute.xlu0 %2369  ;;  %v2061_v4 = vsel %vm453_vm0, %v2009_v29, 0.0 }
 0x5b8   : > { %3601 = vmatmul.msk.f32.vlgmr.msrb.gmra.mxu2 %vm453_vm0, %v2370_v27  ;;  %v3777_v27 = vld [vmem:[%s4056_s9 + $0xe8] sm:$0xff] }
 0x5bf   : > { %v2372_v18 = vpop.permute.xlu0 %2371 }
 0x5c0   : > { %3602 = vmatmul.msk.f32.gmra.mxu2 %vm453_vm0, %v2372_v18 }
 0x5c1   : > { %2047 = vadd.xlane.f32.xlu2 %v2046_v24 }
 0x5c7   : > { %v2017_v11 = vpop.permute.xlu0 %2016 }
 0x5ce   : > { %2053 = vadd.xlane.f32.xlu0 %v2052_v51 }
 0x5d2   : > { %v2013_v26 = vpop.permute.xlu2 %2012 }
 0x5d3   : > { %v2067_v10 = vsel %vm453_vm0, %v2013_v26, 0.0 }
 0x5d6   : > { %2062 = vadd.xlane.f32.xlu0 %v2061_v4 }
 0x5d9   : > { %2395 = vrot.lane.b32.xlu2 %v3775_v39, %s3849_s13 }
 0x5da   : > { %v2374_v43 = vpop.permute.xlu2 %2373  ;;  %v2001_v41 = vpop.permute.xlu1 %2000 }
 0x5db   : > { %3586 = vmatmul.msk.f32.gmra.mxu1 %vm453_vm0, %v2001_v41  ;;  %3603 = vmatmul.msk.f32.gmra.mxu2 %vm453_vm0, %v2374_v43  ;;  %v2049_v1 = vsel %vm453_vm0, %v2001_v41, 0.0  ;;  %v5240_v43 = vpop.f32.mrf.mxu1  ;;  %v2055_v41 = vsel %vm453_vm0, %v2005_v5, 0.0 }
 0x5dc   : > { %2050 = vadd.xlane.f32.xlu1 %v2049_v1 }
 0x5de   : > { %v2021_v24 = vpop.permute.xlu0 %2020 }
 0x5e1   : > { %2399 = vrot.lane.b32.xlu2 %v3776_v46, %s3849_s13 }
 0x5e2   : > { %v2376_v47 = vpop.permute.xlu2 %2375  ;;  %v2007_v34 = vpop.permute.xlu1 %2006 }
 0x5e3   : > { %3587 = vmatmul.msk.f32.gmra.mxu1 %vm453_vm0, %v2003_v6  ;;  %3604 = vmatmul.msk.f32.gmra.mxu2 %vm453_vm0, %v2376_v47  ;;  %v2073_v47 = vsel %vm453_vm0, %v2017_v11, 0.0 }
 0x5e6   : > { %v2025_v39 = vpop.permute.xlu0 %2024 }
 0x5ea   : > { %v2378_v50 = vpop.permute.xlu2 %2377  ;;  %v2011_v57 = vpop.permute.xlu1 %2010 }
 0x5eb   : > { %3588 = vmatmul.msk.f32.gmra.mxu1 %vm453_vm0, %v2005_v5  ;;  %3605 = vmatmul.msk.f32.gmra.mxu2 %vm453_vm0, %v2378_v50  ;;  %v2064_v22 = vsel %vm453_vm0, %v2011_v57, 0.0 }
 0x5ec   : > { %2065 = vadd.xlane.f32.xlu0 %v2064_v22  ;;  %v2079_v22 = vsel %vm453_vm0, %v2021_v24, 0.0 }
 0x5ee   : > { %v2029_v46 = vpop.permute.xlu0 %2028 }
 0x5f2   : > { %v2015_v21 = vpop.permute.xlu1 %2014 }
 0x5f3   : > { %3589 = vmatmul.msk.f32.gmra.mxu1 %vm453_vm0, %v2007_v34  ;;  %v2070_v6 = vsel %vm453_vm0, %v2015_v21, 0.0 }
 0x5f4   : > { %2068 = vadd.xlane.f32.xlu0 %v2067_v10  ;;  %v2094_v10 = vmul.f32 %v5077_v25, %v5077_v25  ;;  %v2097_v25 = vmul.f32 %v5084_v8, %v5084_v8  ;;  %v2100_v8 = vmul.f32 %v5148_v23, %v5148_v23  ;;  %v2099_v23 = vmul.f32 %v5111_v42, %v5111_v42 }
 0x5f5   : > { %2397 = vrot.lane.b32.xlu1 %v3777_v27, %s3849_s13  ;;  %v2027_v27 = vpop.permute.xlu2 %2026 }
 0x5f6   : > { %v2384_v5 = vpop.permute.xlu0 %2383 }
 0x5fa   : > { %v2019_v18 = vpop.permute.xlu1 %2018 }
 0x5fb   : > { %3590 = vmatmul.msk.f32.gmra.mxu1 %vm453_vm0, %v2009_v29  ;;  %v2076_v4 = vsel %vm453_vm0, %v2019_v18, 0.0  ;;  %v2085_v29 = vsel %vm453_vm0, %v2025_v39, 0.0 }
 0x5fc   : > { %2071 = vadd.xlane.f32.xlu0 %v2070_v6  ;;  %v2058_v6 = vsel %vm453_vm0, %v2007_v34, 0.0  ;;  %v2098_v34 = vmul.f32 %v5132_v32, %v5132_v32 }
 0x602   : > { %v2023_v51 = vpop.permute.xlu1 %2022 }
 0x603   : > { %3591 = vmatmul.msk.f32.gmra.mxu1 %vm453_vm0, %v2011_v57  ;;  %v5247_v57 = vpop.f32.mrf.mxu1 }
 0x604   : > { %2077 = vadd.xlane.f32.xlu0 %v2076_v4  ;;  %v2088_v4 = vsel %vm453_vm0, %v2027_v27, 0.0 }
 0x60a   : > { %2056 = vadd.xlane.f32.xlu2 %v2055_v41  ;;  %v2380_v1 = vpop.permute.xlu1 %2379 }
 0x60b   : > { %3592 = vmatmul.msk.f32.gmra.mxu1 %vm453_vm0, %v2013_v26  ;;  %3606 = vmatmul.msk.f32.gmra.mxu2 %vm453_vm0, %v2380_v1  ;;  %v5254_v26 = vpop.f32.mrf.mxu1  ;;  %v2082_v1 = vsel %vm453_vm0, %v2023_v51, 0.0 }
 0x60c   : > { %2086 = vadd.xlane.f32.xlu0 %v2085_v29  ;;  %v2091_v29 = vsel %vm453_vm0, %v2029_v46, 0.0 }
 0x612   : > { %2074 = vadd.xlane.f32.xlu2 %v2073_v47  ;;  %v2382_v50 = vpop.permute.xlu1 %2381 }
 0x613   : > { %3593 = vmatmul.msk.f32.gmra.mxu1 %vm453_vm0, %v2015_v21  ;;  %3607 = vmatmul.msk.f32.gmra.mxu2 %vm453_vm0, %v2382_v50  ;;  %v5263_v41 = vpop.f32.mrf.mxu1 }
 0x614   : > { %6721 = vst [vmem:[#allocation64_spill] sm:$0xff] %v5263_v41 }
 0x61a   : > { %2080 = vadd.xlane.f32.xlu2 %v2079_v22  ;;  %v2386_v21 = vpop.permute.xlu1 %2385 }
 0x61b   : > { %3594 = vmatmul.msk.f32.gmra.mxu1 %vm453_vm0, %v2017_v11  ;;  %3608 = vmatmul.msk.f32.gmra.mxu2 %vm453_vm0, %v2384_v5  ;;  %v2388_v11 = vpop.permute.xlu0 %2387  ;;  %v5274_v47 = vpop.f32.mrf.mxu1 }
 0x61c   : > { %6722 = vst [vmem:[#allocation65_spill] sm:$0xff] %v5274_v47 }
 0x61f   : > { %2059 = vadd.xlane.f32.xlu1 %v2058_v6 }
 0x620   : > { %2126 = vrot.lane.b32.xlu0 %v2094_v10, %s3849_s13 }
 0x622   : > { %2089 = vadd.xlane.f32.xlu2 %v2088_v4 }
 0x623   : > { %3595 = vmatmul.msk.f32.gmra.mxu1 %vm453_vm0, %v2019_v18  ;;  %3609 = vmatmul.msk.f32.gmra.mxu2 %vm453_vm0, %v2386_v21  ;;  %v2390_v18 = vpop.permute.xlu0 %2389  ;;  %v5284_v32 = vpop.f32.mrf.mxu1 }
 0x624   : > { %6723 = vst [vmem:[#allocation66_spill] sm:$0xff] %v5284_v32 }
 0x627   : > { %2083 = vadd.xlane.f32.xlu1 %v2082_v1  ;;  %v2103_v1 = vmul.f32 %v5103_v60, %v5103_v60 }
 0x628   : > { %2132 = vrot.lane.b32.xlu0 %v2097_v25, %s3849_s13  ;;  %v2101_v25 = vmul.f32 %v5150_v49, %v5150_v49 }
 0x62b   : > { %3596 = vmatmul.msk.f32.gmra.mxu1 %vm453_vm0, %v2021_v24  ;;  %3610 = vmatmul.msk.f32.gmra.mxu2 %vm453_vm0, %v2388_v11  ;;  %v2095_v24 = vmul.f32 %v5120_v37, %v5120_v37  ;;  %v2392_v50 = vpop.permute.xlu0 %2391  ;;  %v5296_v37 = vpop.f32.mrf.mxu1 }
 0x62c   : > { %6724 = vst [vmem:[#allocation67_spill] sm:$0xff] %v5296_v37 }
 0x62f   : > { %2092 = vadd.xlane.f32.xlu1 %v2091_v29 }
 0x630   : > { %2134 = vrot.lane.b32.xlu0 %v2098_v34, %s3849_s13 }
 0x633   : > { %3597 = vmatmul.msk.f32.gmra.mxu1 %vm453_vm0, %v2023_v51  ;;  %3611 = vmatmul.msk.f32.gmra.mxu2 %vm453_vm0, %v2390_v18  ;;  %v2102_v51 = vmul.f32 %v5163_v7, %v5163_v7  ;;  %v2394_v22 = vpop.permute.xlu0 %2393  ;;  %v2104_v7 = vmul.f32 %v5177_v36, %v5177_v36  ;;  %v5307_v10 = vpop.f32.mrf.mxu1  ;;  %v2105_v18 = vmul.f32 %v5126_v55, %v5126_v55 }
 0x634   : > { %v5293_v5 = vpop.xlane.xlu2 %2047  ;;  %6725 = vst [vmem:[#allocation68_spill] sm:$0xff] %v5307_v10 }
 0x638   : > { %2138 = vrot.lane.b32.xlu0 %v2100_v8, %s3849_s13 }
 0x63a   : > { %2128 = vrot.lane.b32.xlu2 %v2095_v24, %s3849_s13 }
 0x63b   : > { %3598 = vmatmul.msk.f32.gmra.mxu1 %vm453_vm0, %v2025_v39  ;;  %3612 = vmatmul.msk.f32.gmra.mxu2 %vm453_vm0, %v2392_v50  ;;  %v2096_v39 = vmul.f32 %v5101_v9, %v5101_v9 }
 0x63c   : > { %v2396_v42 = vpop.permute.xlu2 %2395 }
 0x640   : > { %2142 = vrot.lane.b32.xlu0 %v2102_v51, %s3849_s13 }
 0x641   : > { %v5334_v34 = vpop.xlane.xlu0 %2053 }
 0x642   : > { %2136 = vrot.lane.b32.xlu2 %v2099_v23, %s3849_s13  ;;  %6726 = vst [vmem:[#allocation69_spill] sm:$0xff] %v5334_v34 }
 0x643   : > { %3599 = vmatmul.msk.f32.gmra.mxu1 %vm453_vm0, %v2027_v27  ;;  %3613 = vmatmul.msk.f32.gmra.mxu2 %vm453_vm0, %v2394_v22  ;;  %v5311_v27 = vpop.f32.mrf.mxu2 }
 0x644   : > { %v2400_v11 = vpop.permute.xlu2 %2399  ;;  %v2498_v17 = vadd.f32 %v5311_v27, %v4117_v62 }
 0x648   : > { %2146 = vrot.lane.b32.xlu0 %v2104_v7, %s3849_s13  ;;  %2130 = vrot.lane.b32.xlu1 %v2096_v39, %s3849_s13 }
 0x649   : > { %v5340_v29 = vpop.xlane.xlu0 %2062 }
 0x64a   : > { %6727 = vst [vmem:[#allocation70_spill] sm:$0xff] %v5340_v29 }
 0x64b   : > { %3600 = vmatmul.msk.f32.gmra.mxu1 %vm453_vm0, %v2029_v46  ;;  %3614 = vmatmul.msk.f32.gmra.mxu2 %vm453_vm0, %v2396_v42  ;;  %v5315_v9 = vpop.f32.mrf.mxu2 }
 0x64f   : > { %v5319_v36 = vpop.xlane.xlu1 %2050 }
 0x650   : > { %2526 = vrot.lane.b32.xlu0 %v5311_v27, %s3848_s19 }
 0x65e   : > { %v5317_v6 = vpop.f32.mrf.mxu2 }
 0x65f   : > { %v5348_v60 = vpop.xlane.xlu0 %2065 }
 0x660   : > { %6728 = vst [vmem:[#allocation71_spill] sm:$0xff] %v5348_v60 }
 0x666   : > { %v5321_v21 = vpop.f32.mrf.mxu2 }
 0x667   : > { %v2398_v4 = vpop.permute.xlu1 %2397  ;;  %v5356_v55 = vpop.xlane.xlu0 %2068 }
 0x668   : > { %3615 = vmatmul.msk.f32.gmra.mxu2 %vm453_vm0, %v2398_v4  ;;  %6729 = vst [vmem:[#allocation72_spill] sm:$0xff] %v5356_v55 }
 0x66e   : > { %v5324_v46 = vpop.f32.mrf.mxu2 }
 0x66f   : > { %2582 = vrot.lane.b32.xlu1 %v5324_v46, %s3849_s13  ;;  %v5364_v50 = vpop.xlane.xlu0 %2071 }
 0x670   : > { %3616 = vmatmul.msk.f32.gmra.mxu2 %vm453_vm0, %v2400_v11  ;;  %6730 = vst [vmem:[#allocation73_spill] sm:$0xff] %v5364_v50 }
 0x677   : > { %2140 = vrot.lane.b32.xlu1 %v2101_v25, %s3849_s13  ;;  %v5372_v23 = vpop.xlane.xlu0 %2077 }
 0x67d   : > { %v5376_v39 = vpop.xlane.xlu2 %2056 }
 0x67e   : > { %6731 = vst [vmem:[#allocation74_spill] sm:$0xff] %v5376_v39 }
 0x67f   : > { %2144 = vrot.lane.b32.xlu1 %v2103_v1, %s3849_s13  ;;  %v5388_v42 = vpop.xlane.xlu0 %2086 }
 0x680   : > { %6732 = vst [vmem:[#allocation75_spill] sm:$0xff] %v5388_v42 }
 0x685   : > { %v5390_v4 = vpop.xlane.xlu2 %2074 }
 0x686   : > { %6733 = vst [vmem:[#allocation76_spill] sm:$0xff] %v5390_v4 }
 0x687   : > { %2148 = vrot.lane.b32.xlu1 %v2105_v18, %s3849_s13 }
 0x68d   : > { %v5402_v18 = vpop.xlane.xlu2 %2080 }
 0x68e   : > { %v5342_v8 = vpop.f32.mrf.mxu2  ;;  %6735 = vst [vmem:[#allocation78_spill] sm:$0xff] %v5402_v18 }
 0x68f   : > { %2528 = vrot.lane.b32.xlu1 %v5315_v9, %s3848_s19  ;;  %2584 = vrot.lane.b32.xlu2 %v5342_v8, %s3849_s13  ;;  %v2503_v16 = vadd.f32 %v5342_v8, %v4128_v2 }
 0x692   : > { %v5392_v11 = vpop.xlane.xlu1 %2059  ;;  %v5400_v1 = vpop.permute.xlu0 %2126 }
 0x693   : > { %6734 = vst [vmem:[#allocation77_spill] sm:$0xff] %v5392_v11 }
 0x695   : > { %v5414_v60 = vpop.xlane.xlu2 %2089 }
 0x696   : > { %v5350_v49 = vpop.f32.mrf.mxu2  ;;  %6737 = vst [vmem:[#allocation80_spill] sm:$0xff] %v5414_v60  ;;  %v2562_v60 = vadd.f32 %v2498_v17, %v4106_v58 }
 0x697   : > { %2530 = vrot.lane.b32.xlu1 %v5317_v6, %s3848_s19  ;;  %2586 = vrot.lane.b32.xlu2 %v5350_v49, %s3849_s13 }
 0x69a   : > { %v5406_v55 = vpop.xlane.xlu1 %2083  ;;  %v5412_v11 = vpop.permute.xlu0 %2132 }
 0x69b   : > { %6736 = vst [vmem:[#allocation79_spill] sm:$0xff] %v5406_v55 }
 0x69d   : > { %v5424_v55 = vpop.permute.xlu2 %2128 }
 0x69e   : > { %v5358_v24 = vpop.f32.mrf.mxu2 }
 0x69f   : > { %2532 = vrot.lane.b32.xlu1 %v5321_v21, %s3848_s19  ;;  %2588 = vrot.lane.b32.xlu2 %v5358_v24, %s3849_s13 }
 0x6a2   : > { %v5420_v18 = vpop.xlane.xlu1 %2092  ;;  %v5422_v4 = vpop.permute.xlu0 %2134 }
 0x6a3   : > { %6738 = vst [vmem:[#allocation81_spill] sm:$0xff] %v5420_v18  ;;  %v2499_v18 = vadd.f32 %v5315_v9, %v4117_v62 }
 0x6a5   : > { %v5433_v35 = vpop.permute.xlu2 %2136  ;;  %v2563_v56 = vadd.f32 %v2499_v18, %v4106_v58 }
 0x6a6   : > { %v5366_v51 = vpop.f32.mrf.mxu2 }
 0x6a7   : > { %2534 = vrot.lane.b32.xlu1 %v5324_v46, %s3848_s19  ;;  %2590 = vrot.lane.b32.xlu2 %v5366_v51, %s3849_s13 }
 0x6aa   : > { %v5430_v33 = vpop.permute.xlu0 %2138 }
 0x6ae   : > { %v5374_v22 = vpop.f32.mrf.mxu2 }
 0x6af   : > { %2536 = vrot.lane.b32.xlu1 %v5342_v8, %s3848_s19  ;;  %2592 = vrot.lane.b32.xlu0 %v5374_v22, %s3849_s13 }
 0x6b2   : > { %v5441_v15 = vpop.permute.xlu0 %2142 }
 0x6b6   : > { %v5382_v7 = vpop.f32.mrf.mxu2 }
 0x6b7   : > { %2538 = vrot.lane.b32.xlu1 %v5350_v49, %s3848_s19  ;;  %2594 = vrot.lane.b32.xlu0 %v5382_v7, %s3849_s13 }
 0x6ba   : > { %v5426_v40 = vpop.permute.xlu1 %2130 }
 0x6be   : > { %v5394_v25 = vpop.f32.mrf.mxu2 }
 0x6bf   : > { %2540 = vrot.lane.b32.xlu1 %v5358_v24, %s3848_s19  ;;  %2596 = vrot.lane.b32.xlu0 %v5394_v25, %s3849_s13 }
 0x6c6   : > { %v5404_v39 = vpop.f32.mrf.mxu2 }
 0x6c7   : > { %2542 = vrot.lane.b32.xlu1 %v5366_v51, %s3848_s19  ;;  %2598 = vrot.lane.b32.xlu0 %v5404_v39, %s3849_s13 }
 0x6ce   : > { %v5416_v29 = vpop.f32.mrf.mxu2 }
 0x6cf   : > { %2600 = vrot.lane.b32.xlu0 %v5416_v29, %s3849_s13 }
 0x6e1   : > { %v2583_v54 = vpop.permute.xlu1 %2582 }
 0x6e2   : > { %v5435_v19 = vadd.f32 %v2583_v54, %v2562_v60  ;;  %v2500_v54 = vadd.f32 %v5317_v6, %v4117_v62  ;;  %v2501_v6 = vadd.f32 %v5321_v21, %v4117_v62  ;;  %v2502_v62 = vadd.f32 %v5324_v46, %v4128_v2 }
 0x6e4   : > { %2650 = vrot.lane.b32.xlu2 %v5435_v19, %s3849_s13  ;;  %v2564_v9 = vadd.f32 %v2500_v54, %v4106_v58  ;;  %v2565_v54 = vadd.f32 %v2501_v6, %v4106_v58 }
 0x6e9   : > { %v2585_v27 = vpop.permute.xlu2 %2584  ;;  %v5444_v10 = vpop.permute.xlu1 %2140 }
 0x6ea   : > { %v5446_v37 = vadd.f32 %v2585_v27, %v2563_v56  ;;  %v5461_v56 = vpop.permute.xlu0 %2146 }
 0x6eb   : > { %v5448_v17 = vpop.f32.mrf.mxu2 }
 0x6ec   : > { %2602 = vrot.lane.b32.xlu0 %v5448_v17, %s3849_s13  ;;  %2652 = vrot.lane.b32.xlu2 %v5446_v37, %s3849_s13 }
 0x6f1   : > { %v2587_v60 = vpop.permute.xlu2 %2586  ;;  %v5457_v18 = vpop.permute.xlu1 %2144 }
 0x6f2   : > { %v5459_v32 = vadd.f32 %v2587_v60, %v2564_v9  ;;  %v2527_v60 = vpop.permute.xlu0 %2526 }
 0x6f3   : > { %v5463_v27 = vpop.f32.mrf.mxu2  ;;  %v2566_v21 = vadd.f32 %v2527_v60, %v2502_v62  ;;  %v2504_v62 = vadd.f32 %v5350_v49, %v4128_v2 }
 0x6f4   : > { %2604 = vrot.lane.b32.xlu0 %v5463_v27, %s3849_s13  ;;  %2654 = vrot.lane.b32.xlu2 %v5459_v32, %s3849_s13 }
 0x6f9   : > { %v2589_v47 = vpop.permute.xlu2 %2588  ;;  %v5474_v9 = vpop.permute.xlu1 %2148 }
 0x6fa   : > { %v5472_v41 = vadd.f32 %v2589_v47, %v2565_v54  ;;  %v3617_v54 = vld [vmem:[%s6619_s3 + $0x18] sm:$0xff] }
 0x6fb   : > { %2923 = vmatpush.msrb.mxu3 %v3617_v54 }
 0x6fc   : > { %2656 = vrot.lane.b32.xlu2 %v5472_v41, %s3849_s13 }
 0x701   : > { %v2591_v50 = vpop.permute.xlu2 %2590  ;;  %v2529_v58 = vpop.permute.xlu1 %2528 }
 0x702   : > { %v5480_v0 = vadd.f32 %v2591_v50, %v2566_v21  ;;  %v2567_v34 = vadd.f32 %v2529_v58, %v2503_v16  ;;  %v2505_v16 = vadd.f32 %v5358_v24, %v4128_v2 }
 0x704   : > { %2658 = vrot.lane.b32.xlu2 %v5480_v0, %s3849_s13 }
 0x709   : > { %v2531_v6 = vpop.permute.xlu1 %2530 }
 0x70a   : > { %v2568_v21 = vadd.f32 %v2531_v6, %v2504_v62 }
 0x711   : > { %v2533_v47 = vpop.permute.xlu1 %2532 }
 0x712   : > { %v2569_v58 = vadd.f32 %v2533_v47, %v2505_v16  ;;  %v2507_v47 = vadd.f32 %v5374_v22, %v4115_v61 }
 0x719   : > { %v2535_v50 = vpop.permute.xlu1 %2534 }
 0x721   : > { %v2593_v46 = vpop.permute.xlu0 %2592  ;;  %v2537_v8 = vpop.permute.xlu1 %2536 }
 0x722   : > { %v5489_v60 = vadd.f32 %v2593_v46, %v2567_v34  ;;  %v5501_v34 = vpop.f32.mrf.mxu3 }
 0x724   : > { %2660 = vrot.lane.b32.xlu2 %v5489_v60, %s3849_s13 }
 0x729   : > { %v2595_v28 = vpop.permute.xlu0 %2594  ;;  %v2539_v49 = vpop.permute.xlu1 %2538 }
 0x72a   : > { %v5495_v3 = vadd.f32 %v2595_v28, %v2568_v21  ;;  %v2506_v28 = vadd.f32 %v5366_v51, %v4115_v61  ;;  %v5511_v62 = vpop.f32.mrf.mxu3  ;;  %v2571_v51 = vadd.f32 %v2537_v8, %v2507_v47  ;;  %v2106_v8 = vmul.f32 %v5189_v45, %v5189_v45 }
 0x72b   : > { %v2510_v47 = vadd.f32 %v5404_v39, %v4120_v63 }
 0x72c   : > { %2662 = vrot.lane.b32.xlu2 %v5495_v3, %s3849_s13  ;;  %v2570_v6 = vadd.f32 %v2535_v50, %v2506_v28 }
 0x731   : > { %v2597_v54 = vpop.permute.xlu0 %2596  ;;  %v2541_v50 = vpop.permute.xlu1 %2540 }
 0x732   : > { %v5503_v46 = vadd.f32 %v2597_v54, %v2569_v58  ;;  %v5527_v54 = vpop.f32.mrf.mxu3 }
 0x734   : > { %2544 = vrot.lane.b32.xlu2 %v5374_v22, %s3848_s19  ;;  %2664 = vrot.lane.b32.xlu0 %v5503_v46, %s3849_s13  ;;  %v2107_v22 = vmul.f32 %v5141_v13, %v5141_v13  ;;  %v2108_v13 = vmul.f32 %v5200_v48, %v5200_v48 }
 0x739   : > { %v2599_v2 = vpop.permute.xlu0 %2598 }
 0x73a   : > { %v5513_v24 = vadd.f32 %v2599_v2, %v2570_v6  ;;  %v5541_v6 = vpop.f32.mrf.mxu3  ;;  %v2543_v2 = vpop.permute.xlu1 %2542 }
 0x73b   : > { %6739 = vst [vmem:[#allocation82_spill] sm:$0xff] %v5541_v6 }
 0x73c   : > { %2546 = vrot.lane.b32.xlu0 %v5382_v7, %s3848_s19  ;;  %2666 = vrot.lane.b32.xlu1 %v5513_v24, %s3849_s13 }
 0x73e   : > { %v5521_v21 = vpop.permute.xlu2 %2650 }
 0x73f   : > { %3618 = vmatmul.msk.f32.vlgmr.msrb.gmra.mxu3 %vm453_vm0, %v5521_v21 }
 0x741   : > { %v2601_v16 = vpop.permute.xlu0 %2600 }
 0x742   : > { %v5525_v58 = vadd.f32 %v2601_v16, %v2571_v51  ;;  %v2574_v51 = vadd.f32 %v2543_v2, %v2510_v47  ;;  %v5556_v6 = vpop.f32.mrf.mxu3 }
 0x743   : > { %6740 = vst [vmem:[#allocation83_spill] sm:$0xff] %v5556_v6 }
 0x744   : > { %2548 = vrot.lane.b32.xlu1 %v5394_v25, %s3848_s19  ;;  %2668 = vrot.lane.b32.xlu2 %v5525_v58, %s3849_s13  ;;  %v5554_v45 = vadd.f32 %v2574_v51, %v4109_v59 }
 0x746   : > { %v5533_v28 = vpop.permute.xlu2 %2652 }
 0x747   : > { %3619 = vmatmul.msk.f32.gmra.mxu3 %vm453_vm0, %v5533_v28 }
 0x74c   : > { %2152 = vrot.lane.b32.xlu1 %v2107_v22, %s3849_s13  ;;  %2150 = vrot.lane.b32.xlu2 %v2106_v8, %s3849_s13  ;;  %v2508_v22 = vadd.f32 %v5382_v7, %v4115_v61  ;;  %v5567_v8 = vpop.f32.mrf.mxu3 }
 0x74d   : > { %6741 = vst [vmem:[#allocation84_spill] sm:$0xff] %v5567_v8 }
 0x74e   : > { %v5547_v16 = vpop.permute.xlu2 %2654  ;;  %v2572_v48 = vadd.f32 %v2539_v49, %v2508_v22  ;;  %v2109_v22 = vmul.f32 %v5159_v44, %v5159_v44 }
 0x74f   : > { %3620 = vmatmul.msk.f32.gmra.mxu3 %vm453_vm0, %v5547_v16 }
 0x754   : > { %2154 = vrot.lane.b32.xlu2 %v2108_v13, %s3849_s13  ;;  %2674 = vrot.lane.b32.xlu1 %v5554_v45, %s3849_s13  ;;  %v2509_v13 = vadd.f32 %v5394_v25, %v4115_v61  ;;  %v5579_v6 = vpop.f32.mrf.mxu3 }
 0x755   : > { %6742 = vst [vmem:[#allocation85_spill] sm:$0xff] %v5579_v6 }
 0x756   : > { %v5561_v39 = vpop.permute.xlu2 %2656  ;;  %v2573_v7 = vadd.f32 %v2541_v50, %v2509_v13  ;;  %v2183_v13 = vsel %vm453_vm0, %v5412_v11, 0.0 }
 0x757   : > { %3621 = vmatmul.msk.f32.gmra.mxu3 %vm453_vm0, %v5561_v39 }
 0x75c   : > { %v5585_v49 = vpop.f32.mrf.mxu3 }
 0x75d   : > { %6743 = vst [vmem:[#allocation86_spill] sm:$0xff] %v5585_v49 }
 0x75e   : > { %v2603_v2 = vpop.permute.xlu0 %2602  ;;  %v5569_v47 = vpop.permute.xlu2 %2658 }
 0x75f   : > { %v5571_v51 = vadd.f32 %v2603_v2, %v2572_v48  ;;  %3622 = vmatmul.msk.f32.gmra.mxu3 %vm453_vm0, %v5569_v47  ;;  %v5589_v48 = vpop.f32.mrf.mxu1 }
 0x760   : > { %6744 = vst [vmem:[#allocation87_spill] sm:$0xff] %v5589_v48 }
 0x761   : > { %2670 = vrot.lane.b32.xlu0 %v5571_v51, %s3849_s13 }
 0x764   : > { %v5592_v2 = vpop.f32.mrf.mxu3 }
 0x765   : > { %6745 = vst [vmem:[#allocation88_spill] sm:$0xff] %v5592_v2 }
 0x766   : > { %v2605_v42 = vpop.permute.xlu0 %2604 }
 0x767   : > { %v5581_v8 = vadd.f32 %v2605_v42, %v2573_v7  ;;  %v5594_v61 = vpop.f32.mrf.mxu1  ;;  %v2174_v42 = vsel %vm453_vm0, %v5400_v1, 0.0 }
 0x768   : > { %6746 = vst [vmem:[#allocation89_spill] sm:$0xff] %v5594_v61 }
 0x769   : > { %2672 = vrot.lane.b32.xlu0 %v5581_v8, %s3849_s13 }
 0x76c   : > { %v5600_v50 = vpop.f32.mrf.mxu3 }
 0x76d   : > { %6747 = vst [vmem:[#allocation90_spill] sm:$0xff] %v5600_v50  ;;  %v2511_v50 = vadd.f32 %v5416_v29, %v4120_v63  ;;  %v2198_v29 = vsel %vm453_vm0, %v5441_v15, 0.0 }
 0x76f   : > { %v5604_v44 = vpop.f32.mrf.mxu1 }
 0x771   : > { %2156 = vrot.lane.b32.xlu0 %v2109_v22, %s3849_s13 }
 0x774   : > { %v5612_v1 = vpop.f32.mrf.mxu3 }
 0x777   : > { %v5614_v22 = vpop.f32.mrf.mxu1 }
 0x778   : > { %6748 = vst [vmem:[#allocation91_spill] sm:$0xff] %v5614_v22  ;;  %v2189_v22 = vsel %vm453_vm0, %v5433_v35, 0.0 }
 0x77d   : > { %2175 = vadd.xlane.f32.xlu2 %v2174_v42  ;;  %v2186_v42 = vsel %vm453_vm0, %v5422_v4, 0.0 }
 0x77e   : > { %v5598_v25 = vpop.permute.xlu2 %2660 }
 0x77f   : > { %3623 = vmatmul.msk.f32.gmra.mxu3 %vm453_vm0, %v5598_v25  ;;  %v5629_v6 = vpop.f32.mrf.mxu1 }
 0x780   : > { %6750 = vst [vmem:[#allocation93_spill] sm:$0xff] %v5629_v6 }
 0x785   : > { %2184 = vadd.xlane.f32.xlu2 %v2183_v13  ;;  %v5623_v13 = vpop.f32.mrf.mxu3 }
 0x786   : > { %v5608_v7 = vpop.permute.xlu2 %2662  ;;  %6749 = vst [vmem:[#allocation92_spill] sm:$0xff] %v5623_v13 }
 0x787   : > { %3624 = vmatmul.msk.f32.gmra.mxu3 %vm453_vm0, %v5608_v7 }
 0x78d   : > { %2187 = vadd.xlane.f32.xlu2 %v2186_v42  ;;  %v5633_v4 = vpop.f32.mrf.mxu3 }
 0x78e   : > { %v2545_v61 = vpop.permute.xlu2 %2544  ;;  %6751 = vst [vmem:[#allocation94_spill] sm:$0xff] %v5633_v4 }
 0x78f   : > { %v2575_v49 = vadd.f32 %v2545_v61, %v2511_v50  ;;  %v2207_v50 = vsel %vm453_vm0, %v5474_v9, 0.0 }
 0x791   : > { %v5621_v11 = vadd.f32 %v2575_v49, %v4109_v59  ;;  %v5637_v49 = vpop.f32.mrf.mxu1 }
 0x792   : > { %6752 = vst [vmem:[#allocation95_spill] sm:$0xff] %v5637_v49 }
 0x793   : > { %2676 = vrot.lane.b32.xlu1 %v5621_v11, %s3849_s13 }
 0x795   : > { %2190 = vadd.xlane.f32.xlu2 %v2189_v22  ;;  %v5641_v42 = vpop.f32.mrf.mxu3 }
 0x796   : > { %6753 = vst [vmem:[#allocation96_spill] sm:$0xff] %v5641_v42 }
 0x799   : > { %v5649_v15 = vpop.f32.mrf.mxu1 }
 0x79a   : > { %6754 = vst [vmem:[#allocation97_spill] sm:$0xff] %v5649_v15 }
 0x79d   : > { %2199 = vadd.xlane.f32.xlu2 %v2198_v29  ;;  %v2512_v29 = vadd.f32 %v5448_v17, %v4120_v63 }
 0x79e   : > { %v5635_v61 = vpop.permute.xlu2 %2668 }
 0x7a1   : > { %v5665_v17 = vpop.f32.mrf.mxu1 }
 0x7a2   : > { %6756 = vst [vmem:[#allocation99_spill] sm:$0xff] %v5665_v17  ;;  %v1700_v17 = vadd.f32 %v5501_v34, %v5240_v43 }
 0x7a5   : > { %2208 = vadd.xlane.f32.xlu2 %v2207_v50  ;;  %v5656_v50 = vpop.f32.mrf.mxu3 }
 0x7a6   : > { %v5643_v35 = vpop.permute.xlu0 %2664  ;;  %v5645_v22 = vpop.permute.xlu2 %2150  ;;  %6755 = vst [vmem:[#allocation98_spill] sm:$0xff] %v5656_v50 }
 0x7a7   : > { %3625 = vmatmul.msk.f32.gmra.mxu3 %vm453_vm0, %v5643_v35 }
 0x7a9   : > { %v2273_v15 = vpop.f32.mrf.mxu1 }
 0x7ae   : > { %v2547_v4 = vpop.permute.xlu0 %2546  ;;  %v2155_v6 = vpop.permute.xlu2 %2154 }
 0x7af   : > { %v2576_v13 = vadd.f32 %v2547_v4, %v2512_v29  ;;  %v2216_v9 = vsel %vm453_vm0, %v2155_v6, 0.0  ;;  %v5654_v2 = vpop.permute.xlu1 %2666  ;;  %v2513_v4 = vadd.f32 %v5463_v27, %v4120_v63  ;;  %v2701_v29 = vsel %vm453_vm0, %v5533_v28, 0.0 }
 0x7b0   : > { %3626 = vmatmul.msk.f32.gmra.mxu3 %vm453_vm0, %v5654_v2  ;;  %2217 = vadd.xlane.f32.xlu2 %v2216_v9  ;;  %v5673_v9 = vpop.f32.mrf.mxu3  ;;  %v2353_v63 = vadd.f32 %v2273_v15, %v1700_v17 }
 0x7b1   : > { %v5661_v48 = vadd.f32 %v2576_v13, %v4109_v59  ;;  %6757 = vst [vmem:[#allocation100_spill] sm:$0xff] %v5673_v9  ;;  %v2276_v28 = vpop.f32.mrf.mxu1 }
 0x7b3   : > { %2678 = vrot.lane.b32.xlu0 %v5661_v48, %s3849_s13 }
 0x7b7   : > { %v2549_v6 = vpop.permute.xlu1 %2548 }
 0x7b8   : > { %v2577_v50 = vadd.f32 %v2549_v6, %v2513_v4  ;;  %3627 = vmatmul.msk.f32.gmra.mxu3 %vm453_vm0, %v5635_v61  ;;  %2702 = vadd.xlane.f32.xlu2 %v2701_v29  ;;  %v1701_v4 = vadd.f32 %v5511_v62, %v5247_v57  ;;  %v2752_v57 = vmul.f32 %v5495_v3, %v5495_v3  ;;  %v2192_v3 = vsel %vm453_vm0, %v5430_v33, 0.0 }
 0x7b9   : > { %v2279_v9 = vpop.f32.mrf.mxu1 }
 0x7ba   : > { %v2633_v13 = vadd.f32 %v2577_v50, %v4109_v59  ;;  %v2354_v6 = vadd.f32 %v2276_v28, %v1701_v4  ;;  %v2748_v59 = vmul.f32 %v5459_v32, %v5459_v32  ;;  %v1702_v50 = vadd.f32 %v5527_v54, %v5254_v26 }
 0x7bb   : > { %v2177_v26 = vsel %vm453_vm0, %v5424_v55, 0.0  ;;  %v2755_v54 = vmul.f32 %v5525_v58, %v5525_v58  ;;  %v2180_v55 = vsel %vm453_vm0, %v5426_v40, 0.0  ;;  %v2201_v58 = vsel %vm453_vm0, %v5457_v18, 0.0 }
 0x7bc   : > { %2680 = vrot.lane.b32.xlu1 %v2633_v13, %s3849_s13  ;;  %v2355_v43 = vadd.f32 %v2279_v9, %v1702_v50  ;;  %v2761_v33 = vmul.f32 %v2633_v13, %v2633_v13  ;;  %v2210_v40 = vsel %vm453_vm0, %v5645_v22, 0.0 }
 0x7bf   : > { %v2153_v32 = vpop.permute.xlu1 %2152 }
 0x7c0   : > { %v2213_v13 = vsel %vm453_vm0, %v2153_v32, 0.0  ;;  %v2719_v32 = vsel %vm453_vm0, %v5643_v35, 0.0 }
 0x7c2   : > { %v2925_v27 = vpop.f32.mrf.mxu3 }
 0x7c3   : > { %v5679_v42 = vadd.f32 %v2925_v27, %v2353_v63  ;;  %v2758_v63 = vmul.f32 %v5554_v45, %v5554_v45  ;;  %v2195_v27 = vsel %vm453_vm0, %v5444_v10, 0.0  ;;  %v2204_v45 = vsel %vm453_vm0, %v5461_v56, 0.0 }
 0x7c5   : > { %6758 = vst [vmem:[#allocation101_spill] sm:$0xff] %v5679_v42  ;;  %v6803_v42 = vld [vmem:[#allocation85_spill] sm:$0xff] }
 0x7c7   : > { %v5708_v9 = vpop.permute.xlu1 %2674 }
 0x7ca   : > { %v2928_v29 = vpop.f32.mrf.mxu3 }
 0x7cb   : > { %v5683_v49 = vadd.f32 %v2928_v29, %v2354_v6  ;;  %v2698_v29 = vsel %vm453_vm0, %v5521_v21, 0.0 }
 0x7cd   : > { %6759 = vst [vmem:[#allocation102_spill] sm:$0xff] %v5683_v49 }
 0x7d0   : > { %2782 = vrot.lane.b32.xlu2 %v2748_v59, %s3849_s13  ;;  %v2746_v59 = vmul.f32 %v5435_v19, %v5435_v19  ;;  %v2750_v19 = vmul.f32 %v5480_v0, %v5480_v0  ;;  %v2753_v0 = vmul.f32 %v5503_v46, %v5503_v46 }
 0x7d2   : > { %v2931_v34 = vpop.f32.mrf.mxu3 }
 0x7d3   : > { %v5690_v15 = vadd.f32 %v2931_v34, %v2355_v43  ;;  %v5692_v17 = vpop.permute.xlu0 %2670  ;;  %v2749_v43 = vmul.f32 %v5472_v41, %v5472_v41  ;;  %v2710_v34 = vsel %vm453_vm0, %v5569_v47, 0.0  ;;  %v2751_v47 = vmul.f32 %v5489_v60, %v5489_v60 }
 0x7d4   : > { %3628 = vmatmul.msk.f32.gmra.mxu3 %vm453_vm0, %v5692_v17  ;;  %v2728_v35 = vsel %vm453_vm0, %v5692_v17, 0.0 }
 0x7d5   : > { %6760 = vst [vmem:[#allocation103_spill] sm:$0xff] %v5690_v15  ;;  %v6801_v15 = vld [vmem:[#allocation84_spill] sm:$0xff] }
 0x7d8   : > { %2790 = vrot.lane.b32.xlu2 %v2752_v57, %s3849_s13  ;;  %v2747_v57 = vmul.f32 %v5446_v37, %v5446_v37  ;;  %v1669_v37 = vadd.f32 %v4913_v31, %v4622_v38  ;;  %v2756_v31 = vmul.f32 %v5571_v51, %v5571_v51  ;;  %v2757_v51 = vmul.f32 %v5581_v8, %v5581_v8 }
 0x7da   : > { %v2322_v60 = vadd.f32 %v5319_v36, %v1669_v37  ;;  %v2713_v37 = vsel %vm453_vm0, %v5598_v25, 0.0  ;;  %v1668_v25 = vadd.f32 %v4900_v52, %v4626_v53 }
 0x7db   : > { %v5699_v62 = vpop.permute.xlu0 %2672 }
 0x7dc   : > { %3629 = vmatmul.msk.f32.gmra.mxu3 %vm453_vm0, %v5699_v62 }
 0x7dd   : > { %2178 = vadd.xlane.f32.xlu0 %v2177_v26 }
 0x7e0   : > { %2796 = vrot.lane.b32.xlu2 %v2755_v54, %s3849_s13 }
 0x7e3   : > { %v2157_v18 = vpop.permute.xlu0 %2156 }
 0x7e4   : > { %3630 = vmatmul.msk.f32.gmra.mxu3 %vm453_vm0, %v5708_v9  ;;  %v2219_v10 = vsel %vm453_vm0, %v2157_v18, 0.0 }
 0x7e5   : > { %2193 = vadd.xlane.f32.xlu0 %v2192_v3  ;;  %v5781_v3 = vld [vmem:[%s6620_s4] ss:$0 sm:$0xff] }
 0x7e6   : > { %2181 = vadd.xlane.f32.xlu1 %v2180_v55  ;;  %v2754_v55 = vmul.f32 %v5513_v24, %v5513_v24 }
 0x7e8   : > { %2802 = vrot.lane.b32.xlu2 %v2758_v63, %s3849_s13 }
 0x7ed   : > { %2202 = vadd.xlane.f32.xlu0 %v2201_v58  ;;  %v2759_v58 = vmul.f32 %v5621_v11, %v5621_v11 }
 0x7ee   : > { %2196 = vadd.xlane.f32.xlu1 %v2195_v27  ;;  %v2760_v27 = vmul.f32 %v5661_v48, %v5661_v48 }
 0x7f0   : > { %v5723_v28 = vpop.xlane.xlu2 %2175  ;;  %2808 = vrot.lane.b32.xlu2 %v2761_v33, %s3849_s13  ;;  %v5811_v33 = vpop.f32.mrf.mxu1 }
 0x7f5   : > { %2211 = vadd.xlane.f32.xlu0 %v2210_v40 }
 0x7f6   : > { %2205 = vadd.xlane.f32.xlu1 %v2204_v45  ;;  %v5815_v45 = vpop.f32.mrf.mxu3 }
 0x7f8   : > { %v5730_v4 = vpop.xlane.xlu2 %2184  ;;  %v5813_v40 = vpop.f32.mrf.mxu1 }
 0x7fd   : > { %2220 = vadd.xlane.f32.xlu0 %v2219_v10 }
 0x7fe   : > { %2214 = vadd.xlane.f32.xlu1 %v2213_v13  ;;  %v5821_v11 = vpop.f32.mrf.mxu3 }
 0x800   : > { %v5734_v6 = vpop.xlane.xlu2 %2187  ;;  %v5819_v8 = vpop.f32.mrf.mxu1 }
 0x805   : > { %v2677_v22 = vpop.permute.xlu1 %2676 }
 0x806   : > { %2699 = vadd.xlane.f32.xlu1 %v2698_v29  ;;  %3631 = vmatmul.msk.f32.gmra.mxu3 %vm453_vm0, %v2677_v22  ;;  %v2737_v17 = vsel %vm453_vm0, %v2677_v22, 0.0  ;;  %v5825_v13 = vpop.f32.mrf.mxu3 }
 0x808   : > { %v5739_v56 = vpop.xlane.xlu2 %2190  ;;  %v5829_v22 = vpop.f32.mrf.mxu1 }
 0x810   : > { %v5743_v50 = vpop.xlane.xlu2 %2199 }
 0x811   : > { %2778 = vrot.lane.b32.xlu0 %v2746_v59, %s3849_s13 }
 0x818   : > { %v5751_v21 = vpop.xlane.xlu2 %2208 }
 0x819   : > { %2784 = vrot.lane.b32.xlu0 %v2749_v43, %s3849_s13  ;;  %2711 = vadd.xlane.f32.xlu2 %v2710_v34  ;;  %v2704_v43 = vsel %vm453_vm0, %v5547_v16, 0.0  ;;  %v5835_v34 = vpop.f32.mrf.mxu3 }
 0x81f   : > { %2780 = vrot.lane.b32.xlu1 %v2747_v57, %s3849_s13 }
 0x821   : > { %2786 = vrot.lane.b32.xlu0 %v2750_v19, %s3849_s13  ;;  %2720 = vadd.xlane.f32.xlu2 %v2719_v32  ;;  %v5839_v32 = vpop.f32.mrf.mxu1 }
 0x823   : > { %v5761_v41 = vpop.xlane.xlu2 %2217 }
 0x824   : > { %6761 = vst [vmem:[#allocation104_spill] sm:$0xff] %v5761_v41 }
 0x825   : > { %v5765_v26 = vpop.permute.xlu0 %2678 }
 0x826   : > { %3632 = vmatmul.msk.f32.gmra.mxu3 %vm453_vm0, %v5765_v26 }
 0x827   : > { %2788 = vrot.lane.b32.xlu1 %v2751_v47, %s3849_s13  ;;  %v2707_v47 = vsel %vm453_vm0, %v5561_v39, 0.0  ;;  %v2722_v39 = vsel %vm453_vm0, %v5654_v2, 0.0 }
 0x829   : > { %2792 = vrot.lane.b32.xlu0 %v2753_v0, %s3849_s13  ;;  %2729 = vadd.xlane.f32.xlu2 %v2728_v35 }
 0x82a   : > { %v5847_v35 = vpop.f32.mrf.mxu3 }
 0x82b   : > { %v2703_v54 = vpop.xlane.xlu2 %2702  ;;  %6770 = vst [vmem:[#allocation113_spill] sm:$0xff] %v5847_v35 }
 0x82c   : > { %v2974_v46 = vadd.f32 %v2703_v54, %v2322_v60  ;;  %v2716_v60 = vsel %vm453_vm0, %v5608_v7, 0.0  ;;  %v2725_v7 = vsel %vm453_vm0, %v5635_v61, 0.0  ;;  %v2734_v61 = vsel %vm453_vm0, %v5708_v9, 0.0 }
 0x82e   : > { %v5785_v63 = vmul.f32 0.03125, %v2974_v46  ;;  %v5787_v38 = vpop.permute.xlu1 %2680 }
 0x82f   : > { %2794 = vrot.lane.b32.xlu1 %v2754_v55, %s3849_s13  ;;  %3633 = vmatmul.msk.f32.gmra.mxu3 %vm453_vm0, %v5787_v38  ;;  %v5855_v55 = vpop.f32.mrf.mxu1 }
 0x830   : > { %6762 = vst [vmem:[#allocation105_spill] sm:$0xff] %v5785_v63  ;;  %v5796_v36 = vmul.f32 %v5781_v3, %v5785_v63  ;;  %v6840_v63 = vld [vmem:[#allocation56_spill] sm:$0xff] }
 0x831   : > { %2798 = vrot.lane.b32.xlu0 %v2756_v31, %s3849_s13  ;;  %2738 = vadd.xlane.f32.xlu2 %v2737_v17  ;;  %v2321_v31 = vadd.f32 %v5293_v5, %v1668_v25 }
 0x832   : > { %6763 = vst [vmem:[#allocation106_spill] sm:$0xff] %v5796_v36 }
 0x833   : > { %v2783_v29 = vpop.permute.xlu2 %2782  ;;  %v5862_v17 = vpop.f32.mrf.mxu3 }
 0x837   : > { %2800 = vrot.lane.b32.xlu1 %v2757_v51, %s3849_s13 }
 0x839   : > { %2804 = vrot.lane.b32.xlu0 %v2759_v58, %s3849_s13 }
 0x83b   : > { %v2791_v57 = vpop.permute.xlu2 %2790 }
 0x83f   : > { %2806 = vrot.lane.b32.xlu1 %v2760_v27, %s3849_s13  ;;  %s3486_s13 = sshll.u32 %s4049_s18, 7 }
 0x840   : > { %s6347_s17 = scalar_lea.vmem [#allocation3], %s3486_s13 }
 0x843   : > { %v2797_v16 = vpop.permute.xlu2 %2796 }
 0x84b   : > { %v5866_v58 = vpop.permute.xlu2 %2802 }
 0x850   : > { %v5817_v18 = vpop.xlane.xlu0 %2178 }
 0x851   : > { %6764 = vst [vmem:[#allocation107_spill] sm:$0xff] %v5817_v18  ;;  %v6838_v18 = vld [vmem:[#allocation98_spill] sm:$0xff] }
 0x858   : > { %v5827_v48 = vpop.xlane.xlu0 %2193 }
 0x859   : > { %v5823_v10 = vpop.xlane.xlu1 %2181  ;;  %6766 = vst [vmem:[#allocation109_spill] sm:$0xff] %v5827_v48  ;;  %v6836_v48 = vld [vmem:[#allocation44_spill] sm:$0xff] }
 0x85a   : > { %6765 = vst [vmem:[#allocation108_spill] sm:$0xff] %v5823_v10 }
 0x860   : > { %v5837_v19 = vpop.xlane.xlu0 %2202 }
 0x861   : > { %v5831_v59 = vpop.xlane.xlu1 %2196  ;;  %6768 = vst [vmem:[#allocation111_spill] sm:$0xff] %v5837_v19  ;;  %v6828_v19 = vld [vmem:[#allocation8_spill] sm:$0xff] }
 0x862   : > { %6767 = vst [vmem:[#allocation110_spill] sm:$0xff] %v5831_v59 }
 0x863   : > { %2705 = vadd.xlane.f32.xlu0 %v2704_v43  ;;  %v2731_v43 = vsel %vm453_vm0, %v5699_v62, 0.0  ;;  %v2740_v62 = vsel %vm453_vm0, %v5765_v26, 0.0 }
 0x868   : > { %v5851_v54 = vpop.xlane.xlu0 %2211 }
 0x869   : > { %2708 = vadd.xlane.f32.xlu1 %v2707_v47  ;;  %v5843_v0 = vpop.xlane.xlu1 %2205  ;;  %6771 = vst [vmem:[#allocation114_spill] sm:$0xff] %v5851_v54  ;;  %v5872_v47 = vpop.f32.mrf.mxu1  ;;  %v6819_v54 = vld [vmem:[#allocation35_spill] sm:$0xff] }
 0x86a   : > { %6769 = vst [vmem:[#allocation112_spill] sm:$0xff] %v5843_v0  ;;  %v6817_v0 = vld [vmem:[#allocation23_spill] sm:$0xff] }
 0x86b   : > { %2714 = vadd.xlane.f32.xlu0 %v2713_v37  ;;  %v5884_v37 = vpop.f32.mrf.mxu3 }
 0x870   : > { %v5870_v2 = vpop.xlane.xlu0 %2220 }
 0x871   : > { %2717 = vadd.xlane.f32.xlu1 %v2716_v60  ;;  %v5853_v46 = vpop.xlane.xlu1 %2214  ;;  %6773 = vst [vmem:[#allocation116_spill] sm:$0xff] %v5870_v2  ;;  %v6815_v2 = vld [vmem:[#allocation16_spill] sm:$0xff] }
 0x872   : > { %6772 = vst [vmem:[#allocation115_spill] sm:$0xff] %v5853_v46 }
 0x873   : > { %2723 = vadd.xlane.f32.xlu0 %v2722_v39  ;;  %v5888_v39 = vpop.permute.xlu2 %2808 }
 0x879   : > { %2726 = vadd.xlane.f32.xlu1 %v2725_v7  ;;  %v2700_v51 = vpop.xlane.xlu1 %2699  ;;  %v2743_v7 = vsel %vm453_vm0, %v5787_v38, 0.0  ;;  %v2844_v38 = vsel %vm453_vm0, %v2791_v57, 0.0 }
 0x87a   : > { %v2973_v27 = vadd.f32 %v2700_v51, %v2321_v31  ;;  %v2303_v31 = vpop.f32.mrf.mxu1  ;;  %v2955_v51 = vpop.f32.mrf.mxu3 }
 0x87b   : > { %2732 = vadd.xlane.f32.xlu0 %v2731_v43 }
 0x87c   : > { %v5874_v53 = vmul.f32 0.03125, %v2973_v27 }
 0x87e   : > { %v5878_v52 = vmul.f32 %v5781_v3, %v5874_v53 }
 0x880   : > { %6774 = vst [vmem:[#allocation117_spill] sm:$0xff] %v5878_v52 }
 0x881   : > { %2735 = vadd.xlane.f32.xlu1 %v2734_v61  ;;  %v2832_v61 = vsel %vm453_vm0, %v2783_v29, 0.0 }
 0x882   : > { %v5896_v26 = vpop.f32.mrf.mxu1 }
 0x883   : > { %v2779_v60 = vpop.permute.xlu0 %2778  ;;  %2741 = vadd.xlane.f32.xlu0 %v2740_v62 }
 0x884   : > { %v2826_v25 = vsel %vm453_vm0, %v2779_v60, 0.0 }
 0x885   : > { %2827 = vadd.xlane.f32.xlu2 %v2826_v25 }
 0x889   : > { %2744 = vadd.xlane.f32.xlu1 %v2743_v7  ;;  %v5901_v7 = vpop.f32.mrf.mxu3 }
 0x88a   : > { %v5907_v5 = vpop.f32.mrf.mxu1 }
 0x88b   : > { %v2785_v9 = vpop.permute.xlu0 %2784 }
 0x88c   : > { %v2835_v27 = vsel %vm453_vm0, %v2785_v9, 0.0  ;;  %v5894_v43 = vpop.xlane.xlu2 %2711  ;;  %v1678_v9 = vadd.f32 %v4968_v12, %v4840_v20 }
 0x88d   : > { %2836 = vadd.xlane.f32.xlu2 %v2835_v27 }
 0x891   : > { %2833 = vadd.xlane.f32.xlu1 %v2832_v61  ;;  %v2781_v62 = vpop.permute.xlu1 %2780  ;;  %v5915_v20 = vpop.f32.mrf.mxu3 }
 0x892   : > { %v2829_v60 = vsel %vm453_vm0, %v2781_v62, 0.0  ;;  %v2331_v62 = vadd.f32 %v5372_v23, %v1678_v9 }
 0x893   : > { %2830 = vadd.xlane.f32.xlu0 %v2829_v60  ;;  %v2787_v25 = vpop.permute.xlu0 %2786  ;;  %v2853_v60 = vsel %vm453_vm0, %v2797_v16, 0.0 }
 0x894   : > { %v5903_v24 = vpop.xlane.xlu2 %2720  ;;  %v2838_v29 = vsel %vm453_vm0, %v2787_v25, 0.0  ;;  %v1681_v25 = vadd.f32 %v4930_v30, %v4755_v14  ;;  %v2862_v14 = vsel %vm453_vm0, %v5866_v58, 0.0 }
 0x895   : > { %2845 = vadd.xlane.f32.xlu2 %v2844_v38  ;;  %v1710_v38 = vadd.f32 %v5612_v1, %v5604_v44  ;;  %v6778_v1 = vld [vmem:[#allocation75_spill] sm:$0xff] }
 0x897   : > { %v2363_v12 = vadd.f32 %v2303_v31, %v1710_v38  ;;  %v2312_v31 = vpop.f32.mrf.mxu1 }
 0x899   : > { %v2789_v27 = vpop.permute.xlu1 %2788  ;;  %v5921_v23 = vadd.f32 %v2955_v51, %v2363_v12  ;;  %v6779_v51 = vld [vmem:[#allocation95_spill] sm:$0xff] }
 0x89a   : > { %v2841_v61 = vsel %vm453_vm0, %v2789_v27, 0.0 }
 0x89b   : > { %2839 = vadd.xlane.f32.xlu0 %v2838_v29  ;;  %2842 = vadd.xlane.f32.xlu1 %v2841_v61  ;;  %v2793_v57 = vpop.permute.xlu0 %2792  ;;  %6776 = vst [vmem:[#allocation119_spill] sm:$0xff] %v5921_v23  ;;  %v6780_v29 = vld [vmem:[#allocation96_spill] sm:$0xff] }
 0x89c   : > { %v2730_v36 = vpop.xlane.xlu2 %2729  ;;  %v2847_v27 = vsel %vm453_vm0, %v2793_v57, 0.0  ;;  %v1713_v61 = vadd.f32 %v6780_v29, %v6779_v51  ;;  %v2964_v57 = vpop.f32.mrf.mxu3  ;;  %v6784_v29 = vld [vmem:[#allocation15_spill] sm:$0xff] }
 0x89d   : > { %v2983_v49 = vadd.f32 %v2730_v36, %v2331_v62  ;;  %2854 = vadd.xlane.f32.xlu2 %v2853_v60  ;;  %v2334_v36 = vadd.f32 %v6778_v1, %v1681_v25  ;;  %v6796_v1 = vld [vmem:[#allocation87_spill] sm:$0xff] }
 0x89e   : > { %v2366_v38 = vadd.f32 %v2312_v31, %v1713_v61  ;;  %v6785_v61 = vld [vmem:[#allocation12_spill] sm:$0xff] }
 0x89f   : > { %v5917_v52 = vmul.f32 0.03125, %v2983_v49  ;;  %v6797_v49 = vld [vmem:[#allocation88_spill] sm:$0xff] }
 0x8a0   : > { %v5938_v25 = vadd.f32 %v2964_v57, %v2366_v38 }
 0x8a1   : > { %6775 = vst [vmem:[#allocation118_spill] sm:$0xff] %v5917_v52  ;;  %v5925_v9 = vmul.f32 %v5781_v3, %v5917_v52  ;;  %v2795_v16 = vpop.permute.xlu1 %2794  ;;  %v6807_v52 = vld [vmem:[#allocation10_spill] sm:$0xff] }
 0x8a2   : > { %v2850_v44 = vsel %vm453_vm0, %v2795_v16, 0.0  ;;  %6782 = vst [vmem:[#allocation95_spill] sm:$0xff] %v5938_v25 }
 0x8a3   : > { %6777 = vst [vmem:[#allocation120_spill] sm:$0xff] %v5925_v9  ;;  %2848 = vadd.xlane.f32.xlu0 %v2847_v27  ;;  %2851 = vadd.xlane.f32.xlu1 %v2850_v44  ;;  %v2799_v62 = vpop.permute.xlu0 %2798  ;;  %v6798_v9 = vld [vmem:[#allocation65_spill] sm:$0xff] }
 0x8a4   : > { %v2739_v30 = vpop.xlane.xlu2 %2738  ;;  %v2856_v58 = vsel %vm453_vm0, %v2799_v62, 0.0  ;;  %v1670_v62 = vadd.f32 %v6785_v61, %v6784_v29  ;;  %v6793_v61 = vld [vmem:[#allocation73_spill] sm:$0xff] }
 0x8a5   : > { %v2986_v60 = vadd.f32 %v2739_v30, %v2334_v36  ;;  %2863 = vadd.xlane.f32.xlu2 %v2862_v14  ;;  %v2871_v36 = vsel %vm453_vm0, %v5888_v39, 0.0 }
 0x8a7   : > { %v5936_v12 = vmul.f32 0.03125, %v2986_v60  ;;  %v6786_v60 = vld [vmem:[#allocation69_spill] sm:$0xff] }
 0x8a8   : > { %v2323_v57 = vadd.f32 %v6786_v60, %v1670_v62 }
 0x8a9   : > { %6781 = vst [vmem:[#allocation75_spill] sm:$0xff] %v5936_v12  ;;  %v5942_v16 = vmul.f32 %v5781_v3, %v5936_v12  ;;  %v2801_v27 = vpop.permute.xlu1 %2800  ;;  %v6805_v12 = vld [vmem:[#allocation86_spill] sm:$0xff] }
 0x8aa   : > { %v2859_v44 = vsel %vm453_vm0, %v2801_v27, 0.0 }
 0x8ab   : > { %6783 = vst [vmem:[#allocation96_spill] sm:$0xff] %v5942_v16  ;;  %2857 = vadd.xlane.f32.xlu0 %v2856_v58  ;;  %2860 = vadd.xlane.f32.xlu1 %v2859_v44  ;;  %v2805_v31 = vpop.permute.xlu0 %2804  ;;  %v1708_v16 = vadd.f32 %v6797_v49, %v6796_v1  ;;  %v6808_v1 = vld [vmem:[#allocation34_spill] sm:$0xff] }
 0x8ac   : > { %v2865_v30 = vsel %vm453_vm0, %v2805_v31, 0.0 }
 0x8ad   : > { %2872 = vadd.xlane.f32.xlu2 %v2871_v36  ;;  %v6799_v36 = vld [vmem:[#allocation83_spill] sm:$0xff] }
 0x8ae   : > { %v5980_v23 = vadd.f32 %v6799_v36, %v6798_v9  ;;  %v2361_v9 = vadd.f32 %v5855_v55, %v1708_v16  ;;  %v6821_v55 = vld [vmem:[#allocation76_spill] sm:$0xff] }
 0x8b0   : > { %v6017_v16 = vadd.f32 %v5862_v17, %v2361_v9  ;;  %v6832_v17 = vld [vmem:[#allocation93_spill] sm:$0xff]  ;;  %v6833_v9 = vld [vmem:[#allocation94_spill] sm:$0xff] }
 0x8b1   : > { %v2807_v14 = vpop.permute.xlu1 %2806  ;;  %v1712_v10 = vadd.f32 %v6833_v9, %v6832_v17 }
 0x8b2   : > { %v2868_v51 = vsel %vm453_vm0, %v2807_v14, 0.0  ;;  %v6790_v14 = vld [vmem:[#allocation32_spill] sm:$0xff]  ;;  %6822 = vst [vmem:[#allocation73_spill] sm:$0xff] %v6017_v16  ;;  %v6854_v16 = vld [vmem:[#allocation11_spill] sm:$0xff] }
 0x8b3   : > { %2866 = vadd.xlane.f32.xlu0 %v2865_v30  ;;  %2869 = vadd.xlane.f32.xlu1 %v2868_v51  ;;  %v6791_v30 = vld [vmem:[#allocation46_spill] sm:$0xff] }
 0x8b4   : > { %v1676_v51 = vadd.f32 %v6791_v30, %v6790_v14  ;;  %v6802_v30 = vld [vmem:[#allocation67_spill] sm:$0xff] }
 0x8b6   : > { %v2329_v62 = vadd.f32 %v6793_v61, %v1676_v51  ;;  %v5988_v51 = vadd.f32 %v6803_v42, %v6802_v30  ;;  %v6804_v61 = vld [vmem:[#allocation68_spill] sm:$0xff]  ;;  %v6814_v30 = vld [vmem:[#allocation38_spill] sm:$0xff] }
 0x8b7   : > { %v6813_v42 = vld [vmem:[#allocation28_spill] sm:$0xff] }
 0x8b8   : > { %v1682_v46 = vadd.f32 %v6814_v30, %v6813_v42  ;;  %v6825_v42 = vld [vmem:[#allocation90_spill] sm:$0xff] }
 0x8d6   : > { %v2706_v38 = vpop.xlane.xlu0 %2705 }
 0x8d7   : > { %v2975_v27 = vadd.f32 %v2706_v38, %v2323_v57  ;;  %v6794_v57 = vld [vmem:[#allocation64_spill] sm:$0xff]  ;;  %v6795_v38 = vld [vmem:[#allocation82_spill] sm:$0xff] }
 0x8d9   : > { %v5955_v58 = vmul.f32 0.03125, %v2975_v27  ;;  %v5974_v27 = vadd.f32 %v6795_v38, %v6794_v57  ;;  %v5992_v57 = vadd.f32 %v6805_v12, %v6804_v61  ;;  %v6806_v38 = vld [vmem:[#allocation20_spill] sm:$0xff]  ;;  %v6816_v12 = vld [vmem:[#allocation39_spill] sm:$0xff] }
 0x8da   : > { %v1673_v49 = vadd.f32 %v6807_v52, %v6806_v38  ;;  %v6009_v61 = vadd.f32 %v6816_v12, %v6815_v2  ;;  %v6818_v52 = vld [vmem:[#allocation40_spill] sm:$0xff]  ;;  %v6826_v2 = vld [vmem:[#allocation25_spill] sm:$0xff] }
 0x8db   : > { %6787 = vst [vmem:[#allocation15_spill] sm:$0xff] %v5955_v58  ;;  %v5959_v39 = vmul.f32 %v5781_v3, %v5955_v58  ;;  %v1680_v38 = vadd.f32 %v6818_v52, %v6817_v0  ;;  %v6827_v12 = vld [vmem:[#allocation41_spill] sm:$0xff]  ;;  %v6829_v0 = vld [vmem:[#allocation43_spill] sm:$0xff] }
 0x8dc   : > { %v5961_v44 = vpop.xlane.xlu1 %2708  ;;  %v1674_v59 = vadd.f32 %v6827_v12, %v6826_v2  ;;  %v6029_v52 = vadd.f32 %v6829_v0, %v6828_v19  ;;  %v6837_v12 = vld [vmem:[#allocation97_spill] sm:$0xff]  ;;  %v6839_v0 = vld [vmem:[#allocation14_spill] sm:$0xff] }
 0x8dd   : > { %6788 = vst [vmem:[#allocation12_spill] sm:$0xff] %v5959_v39  ;;  %v6800_v39 = vld [vmem:[#allocation66_spill] sm:$0xff]  ;;  %v1714_v19 = vadd.f32 %v6838_v18, %v6837_v12  ;;  %v6044_v35 = vadd.f32 %v6840_v63, %v6839_v0  ;;  %v6849_v18 = vld [vmem:[#allocation49_spill] sm:$0xff]  ;;  %v6850_v63 = vld [vmem:[#allocation36_spill] sm:$0xff] }
 0x8de   : > { %v5965_v31 = vpop.xlane.xlu0 %2714  ;;  %v5984_v14 = vadd.f32 %v6801_v15, %v6800_v39  ;;  %v6811_v15 = vld [vmem:[#allocation21_spill] sm:$0xff]  ;;  %v6812_v39 = vld [vmem:[#allocation42_spill] sm:$0xff] }
 0x8df   : > { %6789 = vst [vmem:[#allocation69_spill] sm:$0xff] %v5965_v31  ;;  %v6003_v58 = vadd.f32 %v6812_v39, %v6811_v15  ;;  %v6824_v39 = vld [vmem:[#allocation89_spill] sm:$0xff]  ;;  %v6851_v0 = vld [vmem:[#allocation50_spill] sm:$0xff] }
 0x8e0   : > { %v1709_v30 = vadd.f32 %v6825_v42, %v6824_v39  ;;  %v6835_v42 = vld [vmem:[#allocation31_spill] sm:$0xff]  ;;  %6841 = vst [vmem:[#allocation82_spill] sm:$0xff] %v6044_v35  ;;  %v6063_v31 = vadd.f32 %v6851_v0, %v6850_v63  ;;  %v6855_v35 = vld [vmem:[#allocation52_spill] sm:$0xff]  ;;  %v6862_v63 = vld [vmem:[#allocation54_spill] sm:$0xff] }
 0x8e1   : > { %v1675_v2 = vadd.f32 %v6836_v48, %v6835_v42  ;;  %v6848_v42 = vld [vmem:[#allocation26_spill] sm:$0xff] }
 0x8e2   : > { %v6059_v12 = vadd.f32 %v6849_v18, %v6848_v42  ;;  %v6861_v18 = vld [vmem:[#allocation29_spill] sm:$0xff] }
 0x8e3   : > { %v1698_v0 = vadd.f32 %v6862_v63, %v6861_v18  ;;  %v6871_v18 = vld [vmem:[#allocation60_spill] sm:$0xff] }
 0x8e4   : > { %v5969_v29 = vpop.xlane.xlu1 %2717 }
 0x8e5   : > { %6792 = vst [vmem:[#allocation32_spill] sm:$0xff] %v5969_v29  ;;  %v6834_v29 = vld [vmem:[#allocation78_spill] sm:$0xff] }
 0x8e6   : > { %v2724_v60 = vpop.xlane.xlu0 %2723 }
 0x8e7   : > { %v2981_v25 = vadd.f32 %v2724_v60, %v2329_v62  ;;  %v6809_v62 = vld [vmem:[#allocation45_spill] sm:$0xff] }
 0x8e8   : > { %v1677_v60 = vadd.f32 %v6809_v62, %v6808_v1  ;;  %v6820_v1 = vld [vmem:[#allocation47_spill] sm:$0xff] }
 0x8e9   : > { %v5999_v36 = vmul.f32 0.03125, %v2981_v25  ;;  %v1679_v62 = vadd.f32 %v6820_v1, %v6819_v54  ;;  %v6830_v54 = vld [vmem:[#allocation91_spill] sm:$0xff]  ;;  %v6831_v1 = vld [vmem:[#allocation92_spill] sm:$0xff] }
 0x8ea   : > { %v2330_v25 = vadd.f32 %v6821_v55, %v1677_v60  ;;  %v1711_v60 = vadd.f32 %v6831_v1, %v6830_v54  ;;  %v6842_v54 = vld [vmem:[#allocation17_spill] sm:$0xff]  ;;  %v6843_v1 = vld [vmem:[#allocation58_spill] sm:$0xff] }
 0x8eb   : > { %6810 = vst [vmem:[#allocation46_spill] sm:$0xff] %v5999_v36  ;;  %v6021_v15 = vmul.f32 %v5781_v3, %v5999_v36  ;;  %v2332_v36 = vadd.f32 %v6834_v29, %v1679_v62  ;;  %v6048_v41 = vadd.f32 %v6843_v1, %v6842_v54  ;;  %v6844_v29 = vld [vmem:[#allocation19_spill] sm:$0xff]  ;;  %v6845_v62 = vld [vmem:[#allocation48_spill] sm:$0xff]  ;;  %v6852_v54 = vld [vmem:[#allocation13_spill] sm:$0xff] }
 0x8ec   : > { %v2727_v55 = vpop.xlane.xlu1 %2726  ;;  %v6052_v9 = vadd.f32 %v6845_v62, %v6844_v29  ;;  %v6853_v1 = vld [vmem:[#allocation51_spill] sm:$0xff]  ;;  %v6069_v29 = vadd.f32 %v6855_v35, %v6854_v16  ;;  %v6860_v62 = vld [vmem:[#allocation53_spill] sm:$0xff] }
 0x8ed   : > { %6823 = vst [vmem:[#allocation64_spill] sm:$0xff] %v6021_v15  ;;  %v2982_v39 = vadd.f32 %v2727_v55, %v2330_v25  ;;  %v2362_v25 = vadd.f32 %v5872_v47, %v1709_v30  ;;  %v1684_v15 = vadd.f32 %v6853_v1, %v6852_v54  ;;  %v2364_v47 = vadd.f32 %v5896_v26, %v1711_v60  ;;  %v6863_v54 = vld [vmem:[#allocation27_spill] sm:$0xff]  ;;  %v6866_v26 = vld [vmem:[#allocation37_spill] sm:$0xff] }
 0x8ee   : > { %v2733_v17 = vpop.xlane.xlu0 %2732  ;;  %6846 = vst [vmem:[#allocation87_spill] sm:$0xff] %v6052_v9  ;;  %v6864_v35 = vld [vmem:[#allocation55_spill] sm:$0xff]  ;;  %v6867_v60 = vld [vmem:[#allocation57_spill] sm:$0xff]  ;;  %v6883_v9 = vld [vmem:[#allocation80_spill] sm:$0xff] }
 0x8ef   : > { %v6055_v55 = vmul.f32 0.03125, %v2982_v39  ;;  %v2984_v48 = vadd.f32 %v2733_v17, %v2332_v36  ;;  %v6073_v30 = vadd.f32 %v5884_v37, %v2362_v25  ;;  %v6859_v17 = vld [vmem:[#allocation18_spill] sm:$0xff]  ;;  %v6087_v16 = vadd.f32 %v6864_v35, %v6863_v54  ;;  %v6869_v25 = vld [vmem:[#allocation79_spill] sm:$0xff]  ;;  %v6873_v54 = vld [vmem:[#allocation24_spill] sm:$0xff] }
 0x8f0   : > { %v1687_v42 = vadd.f32 %v6860_v62, %v6859_v17  ;;  %v6091_v37 = vadd.f32 %v6867_v60, %v6866_v26  ;;  %v2333_v1 = vadd.f32 %v6869_v25, %v1680_v38  ;;  %v6870_v62 = vld [vmem:[#allocation30_spill] sm:$0xff]  ;;  %v6874_v35 = vld [vmem:[#allocation59_spill] sm:$0xff]  ;;  %v6876_v60 = vld [vmem:[#allocation33_spill] sm:$0xff] }
 0x8f1   : > { %6847 = vst [vmem:[#allocation88_spill] sm:$0xff] %v6055_v55  ;;  %v6077_v36 = vmul.f32 %v5781_v3, %v6055_v55  ;;  %v6079_v39 = vmul.f32 0.03125, %v2984_v48  ;;  %v6095_v55 = vadd.f32 %v5901_v7, %v2364_v47  ;;  %v6105_v63 = vadd.f32 %v6871_v18, %v6870_v62  ;;  %v6877_v38 = vld [vmem:[#allocation62_spill] sm:$0xff]  ;;  %v6879_v7 = vld [vmem:[#allocation9_spill] sm:$0xff]  ;;  %v2315_v18 = vpop.f32.mrf.mxu1 }
 0x8f2   : > { %6856 = vst [vmem:[#allocation65_spill] sm:$0xff] %v6073_v30  ;;  %v6109_v26 = vadd.f32 %v6874_v35, %v6873_v54  ;;  %v6113_v25 = vadd.f32 %v6877_v38, %v6876_v60  ;;  %v6880_v47 = vld [vmem:[#allocation61_spill] sm:$0xff]  ;;  %v6882_v30 = vld [vmem:[#allocation63_spill] sm:$0xff]  ;;  %v2335_v62 = vadd.f32 %v6883_v9, %v1682_v46 }
 0x8f3   : > { %6857 = vst [vmem:[#allocation83_spill] sm:$0xff] %v6077_v36  ;;  %v6101_v17 = vmul.f32 %v5781_v3, %v6079_v39  ;;  %v6881_v36 = vld [vmem:[#allocation22_spill] sm:$0xff]  ;;  %v6885_v60 = vld [vmem:[#allocation71_spill] sm:$0xff] }
 0x8f4   : > { %6858 = vst [vmem:[#allocation66_spill] sm:$0xff] %v6079_v39  ;;  %v2736_v48 = vpop.xlane.xlu1 %2735  ;;  %v6121_v39 = vadd.f32 %v6882_v30, %v6881_v36  ;;  %v2327_v38 = vadd.f32 %v6885_v60, %v1674_v59  ;;  %v2365_v30 = vadd.f32 %v5907_v5, %v1712_v10  ;;  %v2337_v36 = vadd.f32 %v5723_v28, %v1684_v15  ;;  %v6887_v59 = vld [vmem:[#allocation77_spill] sm:$0xff] }
 0x8f5   : > { %6865 = vst [vmem:[#allocation84_spill] sm:$0xff] %v6087_v16  ;;  %v2985_v35 = vadd.f32 %v2736_v48, %v2333_v1  ;;  %v2357_v1 = vadd.f32 %v5813_v40, %v5980_v23  ;;  %v2367_v48 = vadd.f32 %v2315_v18, %v1714_v19  ;;  %v6888_v40 = vld [vmem:[#allocation74_spill] sm:$0xff] }
 0x8f6   : > { %6868 = vst [vmem:[#allocation67_spill] sm:$0xff] %v6091_v37  ;;  %v6117_v37 = vadd.f32 %v6880_v47, %v6879_v7  ;;  %v2356_v7 = vadd.f32 %v5811_v33, %v5974_v27  ;;  %v2742_v47 = vpop.xlane.xlu0 %2741  ;;  %v6142_v27 = vadd.f32 %v5915_v20, %v2365_v30  ;;  %v2324_v23 = vadd.f32 %v6888_v40, %v6009_v61  ;;  %v6902_v40 = vld [vmem:[#allocation111_spill] sm:$0xff] }
 0x8f7   : > { %6872 = vst [vmem:[#allocation85_spill] sm:$0xff] %v6105_v63  ;;  %v6133_v46 = vmul.f32 0.03125, %v2985_v35  ;;  %v2987_v9 = vadd.f32 %v2742_v47, %v2335_v62  ;;  %v2360_v61 = vadd.f32 %v5839_v32, %v5992_v57  ;;  %v6178_v18 = vadd.f32 %v5821_v11, %v2357_v1  ;;  %v6897_v1 = vld [vmem:[#allocation69_spill] sm:$0xff] }
 0x8f8   : > { %6875 = vst [vmem:[#allocation68_spill] sm:$0xff] %v6109_v26  ;;  %v6884_v26 = vld [vmem:[#allocation70_spill] sm:$0xff]  ;;  %v2828_v33 = vpop.xlane.xlu2 %2827  ;;  %v2340_v57 = vadd.f32 %v5730_v4, %v1687_v42  ;;  %v6891_v42 = vld [vmem:[#allocation113_spill] sm:$0xff] }
 0x8f9   : > { %6878 = vst [vmem:[#allocation86_spill] sm:$0xff] %v6113_v25  ;;  %v2326_v63 = vadd.f32 %v6884_v26, %v1673_v49  ;;  %v6886_v25 = vld [vmem:[#allocation72_spill] sm:$0xff]  ;;  %v2358_v49 = vadd.f32 %v5819_v8, %v5984_v14  ;;  %v2967_v26 = vpop.f32.mrf.mxu3  ;;  %v6146_v28 = vmul.f32 %v5781_v3, %v6133_v46  ;;  %v6148_v10 = vmul.f32 0.03125, %v2987_v9 }
 0x8fa   : > { %v2328_v16 = vadd.f32 %v6886_v25, %v1675_v2  ;;  %v2325_v2 = vadd.f32 %v6887_v59, %v6003_v58  ;;  %v2989_v5 = vadd.f32 %v2828_v33, %v2337_v36  ;;  %v2359_v8 = vadd.f32 %v5829_v22, %v5988_v51  ;;  %v6889_v22 = vld [vmem:[#allocation81_spill] sm:$0xff] }
 0x8fb   : > { %v3053_v58 = vmul.f32 %v5874_v53, %v5874_v53  ;;  %v6157_v20 = vadd.f32 %v2967_v26, %v2367_v48  ;;  %v6163_v19 = vmul.f32 %v5781_v3, %v6148_v10  ;;  %v6169_v51 = vadd.f32 %v6889_v22, %v6029_v52  ;;  %v6899_v48 = vld [vmem:[#allocation87_spill] sm:$0xff]  ;;  %v6900_v26 = vld [vmem:[#allocation108_spill] sm:$0xff]  ;;  %v6906_v22 = vld [vmem:[#allocation114_spill] sm:$0xff] }
 0x8fc   : > { %v2977_v14 = vadd.f32 %v5894_v43, %v2325_v2  ;;  %v3037_v25 = vmul.f32 0.03125, %v2989_v5  ;;  %v6172_v53 = vadd.f32 %v5815_v45, %v2356_v7  ;;  %v2976_v43 = vadd.f32 %v5961_v44, %v2324_v23  ;;  %v6175_v62 = vpop.xlane.xlu1 %2744  ;;  %v6892_v7 = vld [vmem:[#allocation105_spill] sm:$0xff]  ;;  %v6895_v9 = vld [vmem:[#allocation84_spill] sm:$0xff] }
 0x8fd   : > { %v2980_v35 = vadd.f32 %v5903_v24, %v2328_v16  ;;  %v6186_v52 = vadd.f32 %v5734_v6, %v6048_v41  ;;  %v6189_v45 = vadd.f32 %v5825_v13, %v2358_v49  ;;  %v6193_v44 = vadd.f32 %v5739_v56, %v6059_v12  ;;  %v6890_v41 = vld [vmem:[#allocation104_spill] sm:$0xff]  ;;  %v6901_v5 = vld [vmem:[#allocation67_spill] sm:$0xff] }
 0x8fe   : > { %v3069_v32 = vsub.f32 %v3037_v25, %v3053_v58  ;;  %v6196_v11 = vadd.f32 %v5835_v34, %v2359_v8  ;;  %v6200_v24 = vadd.f32 %v5743_v50, %v6063_v31  ;;  %v3025_v16 = vmul.f32 0.03125, %v2977_v14  ;;  %v6893_v50 = vld [vmem:[#allocation82_spill] sm:$0xff]  ;;  %v6894_v31 = vld [vmem:[#allocation107_spill] sm:$0xff]  ;;  %v6898_v49 = vld [vmem:[#allocation32_spill] sm:$0xff] }
 0x8ff   : > { %v6206_v6 = vadd.f32 %v5751_v21, %v6069_v29  ;;  %v6209_v13 = vadd.f32 %v6890_v41, %v1698_v0  ;;  %v6212_v56 = vadd.f32 %v6891_v42, %v2360_v61  ;;  %v3024_v12 = vmul.f32 0.03125, %v2976_v43  ;;  %v6896_v21 = vld [vmem:[#allocation109_spill] sm:$0xff]  ;;  %v6904_v58 = vld [vmem:[#allocation110_spill] sm:$0xff]  ;;  %v6905_v61 = vld [vmem:[#allocation68_spill] sm:$0xff] }
 0x900   : > { %v6202_v4 = vadd.f32 1e-05, %v3069_v32  ;;  %v2837_v34 = vpop.xlane.xlu2 %2836  ;;  %v3054_v47 = vmul.f32 %v6892_v7, %v6892_v7  ;;  %v2338_v30 = vadd.f32 %v6894_v31, %v6893_v50  ;;  %v3028_v36 = vmul.f32 0.03125, %v2980_v35  ;;  %v6903_v8 = vld [vmem:[#allocation85_spill] sm:$0xff]  ;;  %v6908_v43 = vld [vmem:[#allocation112_spill] sm:$0xff]  ;;  %v6910_v7 = vld [vmem:[#allocation115_spill] sm:$0xff] }
 0x901   : > { %v2343_v29 = vadd.f32 %v6896_v21, %v6895_v9  ;;  %v2978_v0 = vadd.f32 %v6897_v1, %v2326_v63  ;;  %v2979_v59 = vadd.f32 %v6898_v49, %v2327_v38  ;;  %v2992_v2 = vadd.f32 %v2837_v34, %v2340_v57  ;;  %v6907_v38 = vld [vmem:[#allocation86_spill] sm:$0xff]  ;;  %v6909_v42 = vld [vmem:[#allocation116_spill] sm:$0xff] }
 0x902   : > { %3730 = vrsqrt.f32 %v6202_v4  ;;  %v2339_v33 = vadd.f32 %v6900_v26, %v6899_v48  ;;  %v6227_v23 = vadd.f32 %v6902_v40, %v6901_v5  ;;  %v6231_v14 = vadd.f32 %v6904_v58, %v6903_v8 }
 0x903   : > { %v6234_v25 = vmul.f32 %v5781_v3, %v3025_v16  ;;  %v6238_v63 = vadd.f32 %v6906_v22, %v6905_v61  ;;  %v6242_v35 = vadd.f32 %v6908_v43, %v6907_v38  ;;  %v3056_v32 = vmul.f32 %v3024_v12, %v3024_v12 }
 0x904   : > { %v3040_v57 = vmul.f32 0.03125, %v2992_v2  ;;  %v2834_v41 = vpop.xlane.xlu1 %2833  ;;  %v6246_v34 = vadd.f32 %v6909_v42, %v6117_v37  ;;  %v6250_v50 = vadd.f32 %v6910_v7, %v6121_v39  ;;  %v6253_v31 = vmul.f32 %v5781_v3, %v3028_v36  ;;  %v6911_v37 = vld [vmem:[#allocation15_spill] sm:$0xff]  ;;  %v6912_v7 = vld [vmem:[#allocation118_spill] sm:$0xff] }
 0x905   : > { %v2991_v9 = vadd.f32 %v2834_v41, %v2339_v33  ;;  %v6255_v21 = vmul.f32 %v3025_v16, %v3025_v16  ;;  %v3026_v1 = vmul.f32 0.03125, %v2978_v0  ;;  %v3027_v49 = vmul.f32 0.03125, %v2979_v59 }
 0x906   : > { %v3072_v48 = vsub.f32 %v3040_v57, %v3056_v32  ;;  %v2831_v26 = vpop.xlane.xlu0 %2830  ;;  %v3285_v5 = vsub.f32 %v6178_v18, %v6234_v25  ;;  %v3055_v40 = vmul.f32 %v6911_v37, %v6911_v37  ;;  %v6261_v58 = vmul.f32 %v3028_v36, %v3028_v36 }
 0x907   : > { %v3039_v8 = vmul.f32 0.03125, %v2991_v9  ;;  %v2990_v39 = vadd.f32 %v2831_v26, %v2338_v30  ;;  %v6264_v61 = vmul.f32 %v5781_v3, %v3024_v12  ;;  %v6272_v32 = vmul.f32 %v5781_v3, %v3026_v1 }
 0x908   : > { %v3731_v2 = vpop.eup %3730  ;;  %v6267_v0 = vadd.f32 1e-05, %v3072_v48  ;;  %v2846_v59 = vpop.xlane.xlu2 %2845  ;;  %v6275_v30 = vmul.f32 %v5781_v3, %v3027_v49  ;;  %v3059_v12 = vmul.f32 %v3027_v49, %v3027_v49  ;;  %v6282_v9 = vmul.f32 %v6912_v7, %v6912_v7  ;;  %v6913_v48 = vld [vmem:[#allocation75_spill] sm:$0xff] }
 0x909   : > { %v3102_v16 = vmul.f32 %v3731_v2, %v6202_v4  ;;  %v3071_v22 = vsub.f32 %v3039_v8, %v3055_v40  ;;  %v3038_v38 = vmul.f32 0.03125, %v2990_v39  ;;  %v2995_v43 = vadd.f32 %v2846_v59, %v2343_v29 }
 0x90a   : > { %3732 = vrsqrt.f32 %v6267_v0  ;;  %v6286_v29 = vmul.f32 %v6913_v48, %v6913_v48  ;;  %v3284_v3 = vsub.f32 %v6172_v53, %v6264_v61  ;;  %v3058_v37 = vmul.f32 %v3026_v1, %v3026_v1  ;;  %v6915_v48 = vld [vmem:[#allocation88_spill] sm:$0xff] }
 0x90b   : > { %v3103_v36 = vmul.f32 %v3731_v2, %v3102_v16  ;;  %v6278_v57 = vadd.f32 1e-05, %v3071_v22  ;;  %v3070_v41 = vsub.f32 %v3038_v38, %v3054_v47  ;;  %v3043_v42 = vmul.f32 0.03125, %v2995_v43 }
 0x90c   : > { %v3286_v47 = vsub.f32 %v6189_v45, %v6272_v32  ;;  %v3287_v8 = vsub.f32 %v6196_v11, %v6275_v30  ;;  %vm3108_vm1 = vweird.f32 %v3731_v2  ;;  %v2988_v22 = vadd.f32 %v6175_v62, %v6169_v51  ;;  %v6916_v62 = vld [vmem:[#allocation66_spill] sm:$0xff] }
 0x90d   : > { %v3104_v26 = vmul.f32 0.5, %v3103_v36  ;;  %3734 = vrsqrt.f32 %v6278_v57  ;;  %v6291_v49 = vadd.f32 1e-05, %v3070_v41  ;;  %v3075_v40 = vsub.f32 %v3043_v42, %v3059_v12  ;;  %v6914_v36 = vld [vmem:[#allocation46_spill] sm:$0xff] }
 0x90e   : > { %v2840_v16 = vpop.xlane.xlu0 %2839  ;;  %v2843_v59 = vpop.xlane.xlu1 %2842  ;;  %v6305_v12 = vmul.f32 %v6914_v36, %v6914_v36  ;;  %vm3107_vm2 = vweird.f32 %v6202_v4  ;;  %v3062_v51 = vmul.f32 %v6915_v48, %v6915_v48  ;;  %v6327_v36 = vmul.f32 %v6133_v46, %v6133_v46  ;;  %v6917_v48 = vld [vmem:[#allocation101_spill] sm:$0xff] }
 0x90f   : > { %v3105_v39 = vsub.f32 1.5, %v3104_v26  ;;  %3736 = vrsqrt.f32 %v6291_v49  ;;  %v6300_v1 = vadd.f32 1e-05, %v3075_v40  ;;  %v2993_v38 = vadd.f32 %v2840_v16, %v6186_v52  ;;  %v6319_v52 = vld [vmem:[%s6621_s5] ss:$0 sm:$0xff]  ;;  %vm3109_vm3 = vmor %vm3107_vm2, %vm3108_vm1 }
 0x910   : > { %v3733_v43 = vpop.eup %3732  ;;  %v2994_v42 = vadd.f32 %v2843_v59, %v6193_v44  ;;  %v2855_v7 = vpop.xlane.xlu2 %2854  ;;  %v6313_v26 = vmul.f32 %v6916_v62, %v6916_v62  ;;  %v6918_v62 = vld [vmem:[#allocation117_spill] sm:$0xff]  ;;  %v6332_v15 = vmul.f32 0.03125, %v2988_v22  ;;  %vm3137_vm4 = vweird.f32 %v6267_v0 }
 0x911   : > { %v3106_v41 = vmul.f32 %v3731_v2, %v3105_v39  ;;  %v3132_v4 = vmul.f32 %v3733_v43, %v6267_v0  ;;  %3738 = vrsqrt.f32 %v6300_v1  ;;  %v3041_v40 = vmul.f32 0.03125, %v2993_v38 }
 0x912   : > { %v3042_v39 = vmul.f32 0.03125, %v2994_v42  ;;  %v2998_v16 = vadd.f32 %v2855_v7, %v6227_v23  ;;  %v6919_v60 = vsub.f32 %v6917_v48, %v6918_v62  ;;  %vm3127_vm5 = vweird.f32 %v6278_v57 }
 0x913   : > { %v3110_v44 = vsel %vm3109_vm3, %v3731_v2, %v3106_v41  ;;  %v3735_v59 = vpop.eup %3734  ;;  %v3133_v33 = vmul.f32 %v3733_v43, %v3132_v4  ;;  %v3073_v38 = vsub.f32 %v3041_v40, %v6255_v21  ;;  %vm3138_vm6 = vweird.f32 %v3733_v43 }
 0x914   : > { %v3297_v54 = vmul.f32 %v6919_v60, %v3110_v44  ;;  %v3122_v2 = vmul.f32 %v3735_v59, %v6278_v57  ;;  %v3074_v41 = vsub.f32 %v3042_v39, %v3058_v37  ;;  %v3046_v7 = vmul.f32 0.03125, %v2998_v16  ;;  %vm3139_vm10 = vmor %vm3137_vm4, %vm3138_vm6  ;;  %v6921_v57 = vld [vmem:[#allocation12_spill] sm:$0xff] }
 0x915   : > { %v6337_v23 = vpop.eup %3736  ;;  %v3134_v46 = vmul.f32 0.5, %v3133_v33  ;;  %v6343_v4 = vadd.f32 1e-05, %v3073_v38  ;;  %vm3117_vm7 = vweird.f32 %v6291_v49  ;;  %vm3128_vm8 = vweird.f32 %v3735_v59 }
 0x916   : > { %v3317_v42 = vadd.f32 %v6319_v52, %v3297_v54  ;;  %v3123_v60 = vmul.f32 %v3735_v59, %v3122_v2  ;;  %v3112_v22 = vmul.f32 %v6337_v23, %v6291_v49  ;;  %v2849_v44 = vpop.xlane.xlu0 %2848  ;;  %v6351_v21 = vadd.f32 1e-05, %v3074_v41  ;;  %v2852_v62 = vpop.xlane.xlu1 %2851  ;;  %vm3129_vm11 = vmor %vm3127_vm5, %vm3128_vm8 }
 0x917   : > { %v6345_v48 = vpop.eup %3738  ;;  %v3135_v54 = vsub.f32 1.5, %v3134_v46  ;;  %v3078_v33 = vsub.f32 %v3046_v7, %v3062_v51  ;;  %v2996_v37 = vadd.f32 %v2849_v44, %v6231_v14  ;;  %vm3118_vm9 = vweird.f32 %v6337_v23 }
 0x918   : > { %3333 = vst.msk [vmem:[%s6347_s17] sm:$0xff] %vm453_vm0, %v3317_v42  ;;  %v3124_v40 = vmul.f32 0.5, %v3123_v60  ;;  %v3113_v39 = vmul.f32 %v6337_v23, %v3112_v22  ;;  %v3162_v16 = vmul.f32 %v6345_v48, %v6300_v1  ;;  %3740 = vrsqrt.f32 %v6343_v4  ;;  %vm3119_vm13 = vmor %vm3117_vm7, %vm3118_vm9 }
 0x919   : > { %v3136_v2 = vmul.f32 %v3733_v43, %v3135_v54  ;;  %3742 = vrsqrt.f32 %v6351_v21  ;;  %v6365_v42 = vadd.f32 1e-05, %v3078_v33  ;;  %v3044_v46 = vmul.f32 0.03125, %v2996_v37 }
 0x91a   : > { %v3125_v14 = vsub.f32 1.5, %v3124_v40  ;;  %v3114_v51 = vmul.f32 0.5, %v3113_v39  ;;  %v3163_v38 = vmul.f32 %v6345_v48, %v3162_v16  ;;  %v2997_v7 = vadd.f32 %v2852_v62, %v6200_v24  ;;  %v2864_v24 = vpop.xlane.xlu2 %2863  ;;  %v6920_v40 = vld [vmem:[#allocation103_spill] sm:$0xff] }
 0x91b   : > { %v3140_v41 = vsel %vm3139_vm10, %v3733_v43, %v3136_v2  ;;  %vm3168_vm12 = vweird.f32 %v6345_v48  ;;  %3744 = vrsqrt.f32 %v6365_v42  ;;  %v3076_v43 = vsub.f32 %v3044_v46, %v6261_v58  ;;  %v6924_v46 = vld [vmem:[#allocation106_spill] sm:$0xff] }
 0x91c   : > { %v3300_v60 = vmul.f32 %v3284_v3, %v3140_v41  ;;  %v3126_v22 = vmul.f32 %v3735_v59, %v3125_v14  ;;  %v3115_v44 = vsub.f32 1.5, %v3114_v51  ;;  %v3164_v0 = vmul.f32 0.5, %v3163_v38  ;;  %v6923_v41 = vld [vmem:[#allocation102_spill] sm:$0xff] }
 0x91d   : > { %v3045_v54 = vmul.f32 0.03125, %v2997_v7  ;;  %v6922_v39 = vsub.f32 %v6920_v40, %v6921_v57  ;;  %vm3167_vm14 = vweird.f32 %v6300_v1  ;;  %v6389_v58 = vadd.f32 1e-05, %v3076_v43 }
 0x91e   : > { %v3320_v33 = vadd.f32 %v6319_v52, %v3300_v60  ;;  %v3130_v53 = vsel %vm3129_vm11, %v3735_v59, %v3126_v22  ;;  %v3116_v61 = vmul.f32 %v6337_v23, %v3115_v44  ;;  %v3165_v3 = vsub.f32 1.5, %v3164_v0  ;;  %v6379_v37 = vpop.eup %3740  ;;  %v2858_v62 = vpop.xlane.xlu0 %2857  ;;  %vm3169_vm15 = vmor %vm3167_vm14, %vm3168_vm12 }
 0x91f   : > { %v3299_v16 = vmul.f32 %v6922_v39, %v3130_v53  ;;  %v3077_v59 = vsub.f32 %v3045_v54, %v6305_v12  ;;  %v6392_v2 = vpop.eup %3742  ;;  %v3142_v49 = vmul.f32 %v6379_v37, %v6343_v4  ;;  %v3001_v38 = vadd.f32 %v2864_v24, %v6238_v63 }
 0x920   : > { %3336 = vst.msk [vmem:[%s6347_s17 + $0x18] sm:$0xff] %vm453_vm0, %v3320_v33  ;;  %v3120_v14 = vsel %vm3119_vm13, %v6337_v23, %v3116_v61  ;;  %v3166_v51 = vmul.f32 %v6345_v48, %v3165_v3  ;;  %v6403_v1 = vmul.f32 %v6332_v15, %v6332_v15  ;;  %v6925_v7 = vsub.f32 %v6923_v41, %v6924_v46  ;;  %v2861_v61 = vpop.xlane.xlu1 %2860 }
 0x921   : > { %v3319_v12 = vadd.f32 %v6319_v52, %v3299_v16  ;;  %v3152_v23 = vmul.f32 %v6392_v2, %v6351_v21  ;;  %v3143_v63 = vmul.f32 %v6379_v37, %v3142_v49  ;;  %vm3147_vm1 = vweird.f32 %v6343_v4  ;;  %v3745_v44 = vpop.eup %3744 }
 0x922   : > { %v3298_v60 = vmul.f32 %v6925_v7, %v3120_v14  ;;  %v3170_v22 = vsel %vm3169_vm15, %v6345_v48, %v3166_v51  ;;  %3746 = vrsqrt.f32 %v6389_v58  ;;  %v6424_v24 = vadd.f32 1e-05, %v3077_v59  ;;  %v2873_v59 = vpop.xlane.xlu2 %2872 }
 0x923   : > { %3335 = vst.msk [vmem:[%s6347_s17 + $0x10] sm:$0xff] %vm453_vm0, %v3319_v12  ;;  %v3303_v43 = vmul.f32 %v3287_v8, %v3170_v22  ;;  %v3153_v54 = vmul.f32 %v6392_v2, %v3152_v23  ;;  %v3144_v48 = vmul.f32 0.5, %v3143_v63  ;;  %vm3157_vm2 = vweird.f32 %v6351_v21 }
 0x924   : > { %v3318_v0 = vadd.f32 %v6319_v52, %v3298_v60  ;;  %v3192_v33 = vmul.f32 %v3745_v44, %v6365_v42  ;;  %v3049_v53 = vmul.f32 0.03125, %v3001_v38  ;;  %vm3148_vm3 = vweird.f32 %v6379_v37 }
 0x925   : > { %v3323_v3 = vadd.f32 %v6319_v52, %v3303_v43  ;;  %v3154_v11 = vmul.f32 0.5, %v3153_v54  ;;  %3748 = vrsqrt.f32 %v6424_v24  ;;  %v3145_v30 = vsub.f32 1.5, %v3144_v48  ;;  %vm3149_vm6 = vmor %vm3147_vm1, %vm3148_vm3 }
 0x926   : > { %3334 = vst.msk [vmem:[%s6347_s17 + $0x8] sm:$0xff] %vm453_vm0, %v3318_v0  ;;  %v3193_v8 = vmul.f32 %v3745_v44, %v3192_v33  ;;  %v3081_v40 = vsub.f32 %v3049_v53, %v6327_v36  ;;  %v2999_v57 = vadd.f32 %v2858_v62, %v6242_v35  ;;  %vm3158_vm4 = vweird.f32 %v6392_v2 }
 0x927   : > { %3339 = vst.msk [vmem:[%s6347_s17 + $0x30] sm:$0xff] %vm453_vm0, %v3323_v3  ;;  %v3155_v39 = vsub.f32 1.5, %v3154_v11  ;;  %vm3197_vm5 = vweird.f32 %v6365_v42  ;;  %v3000_v16 = vadd.f32 %v2861_v61, %v6206_v6  ;;  %v3146_v51 = vmul.f32 %v6379_v37, %v3145_v30  ;;  %v2867_v6 = vpop.xlane.xlu0 %2866  ;;  %vm3159_vm8 = vmor %vm3157_vm2, %vm3158_vm4 }
 0x928   : > { %v3747_v14 = vpop.eup %3746  ;;  %v3194_v49 = vmul.f32 0.5, %v3193_v8  ;;  %v6441_v38 = vadd.f32 1e-05, %v3081_v40  ;;  %v3047_v12 = vmul.f32 0.03125, %v2999_v57  ;;  %vm3198_vm7 = vweird.f32 %v3745_v44  ;;  %v2870_v3 = vpop.xlane.xlu1 %2869 }
 0x929   : > { %v3156_v35 = vmul.f32 %v6392_v2, %v3155_v39  ;;  %v3172_v36 = vmul.f32 %v3747_v14, %v6389_v58  ;;  %v3048_v62 = vmul.f32 0.03125, %v3000_v16  ;;  %v3150_v41 = vsel %vm3149_vm6, %v6379_v37, %v3146_v51  ;;  %vm3199_vm9 = vmor %vm3197_vm5, %vm3198_vm7 }
 0x92a   : > { %v3195_v46 = vsub.f32 1.5, %v3194_v49  ;;  %3750 = vrsqrt.f32 %v6441_v38  ;;  %v3004_v4 = vadd.f32 %v2873_v59, %v6246_v34  ;;  %v3301_v60 = vmul.f32 %v3285_v5, %v3150_v41 }
 0x92b   : > { %v3749_v7 = vpop.eup %3748  ;;  %v3160_v23 = vsel %vm3159_vm8, %v6392_v2, %v3156_v35  ;;  %v3173_v22 = vmul.f32 %v3747_v14, %v3172_v36  ;;  %v3079_v37 = vsub.f32 %v3047_v12, %v6282_v9  ;;  %v3002_v34 = vadd.f32 %v2867_v6, %v6250_v50  ;;  %v6926_v50 = vld [vmem:[#allocation65_spill] sm:$0xff]  ;;  %v6927_v2 = vld [vmem:[#allocation83_spill] sm:$0xff]  ;;  %v6931_v6 = vld [vmem:[#allocation64_spill] sm:$0xff] }
 0x92c   : > { %v3302_v21 = vmul.f32 %v3286_v47, %v3160_v23  ;;  %v3196_v63 = vmul.f32 %v3745_v44, %v3195_v46  ;;  %v3182_v0 = vmul.f32 %v3749_v7, %v6424_v24  ;;  %v3321_v43 = vadd.f32 %v6319_v52, %v3301_v60 }
 0x92d   : > { %v3174_v18 = vmul.f32 0.5, %v3173_v22  ;;  %v6470_v25 = vadd.f32 1e-05, %v3079_v37  ;;  %v3080_v5 = vsub.f32 %v3048_v62, %v6313_v26  ;;  %v3052_v47 = vmul.f32 0.03125, %v3004_v4 }
 0x92e   : > { %v3322_v45 = vadd.f32 %v6319_v52, %v3302_v21  ;;  %v3200_v32 = vsel %vm3199_vm9, %v3745_v44, %v3196_v63  ;;  %v3183_v9 = vmul.f32 %v3749_v7, %v3182_v0  ;;  %3337 = vst.msk [vmem:[%s6347_s17 + $0x20] sm:$0xff] %vm453_vm0, %v3321_v43  ;;  %v6928_v54 = vsub.f32 %v6926_v50, %v6927_v2 }
 0x92f   : > { %v3175_v33 = vsub.f32 1.5, %v3174_v18  ;;  %vm3178_vm10 = vweird.f32 %v3747_v14  ;;  %3752 = vrsqrt.f32 %v6470_v25  ;;  %v6482_v53 = vadd.f32 1e-05, %v3080_v5  ;;  %v2318_v18 = vpop.f32.mrf.mxu1 }
 0x930   : > { %v3306_v48 = vmul.f32 %v6928_v54, %v3200_v32  ;;  %v3751_v42 = vpop.eup %3750  ;;  %3338 = vst.msk [vmem:[%s6347_s17 + $0x28] sm:$0xff] %vm453_vm0, %v3322_v45  ;;  %v3184_v26 = vmul.f32 0.5, %v3183_v9  ;;  %v3084_v44 = vsub.f32 %v3052_v47, %v6403_v1  ;;  %v3050_v61 = vmul.f32 0.03125, %v3002_v34  ;;  %v6934_v9 = vld [vmem:[#allocation99_spill] sm:$0xff]  ;;  %v6935_v47 = vld [vmem:[#allocation100_spill] sm:$0xff] }
 0x931   : > { %v3176_v30 = vmul.f32 %v3747_v14, %v3175_v33  ;;  %vm3177_vm11 = vweird.f32 %v6389_v58  ;;  %v3222_v8 = vmul.f32 %v3751_v42, %v6441_v38  ;;  %vm3188_vm13 = vweird.f32 %v3749_v7 }
 0x932   : > { %v3326_v11 = vadd.f32 %v6319_v52, %v3306_v48  ;;  %vm3179_vm12 = vmor %vm3177_vm11, %vm3178_vm10  ;;  %v3185_v40 = vsub.f32 1.5, %v3184_v26  ;;  %3754 = vrsqrt.f32 %v6482_v53  ;;  %v6489_v57 = vadd.f32 1e-05, %v3084_v44 }
 0x933   : > { %v3180_v39 = vsel %vm3179_vm12, %v3747_v14, %v3176_v30  ;;  %v3223_v1 = vmul.f32 %v3751_v42, %v3222_v8  ;;  %v3082_v16 = vsub.f32 %v3050_v61, %v6286_v29  ;;  %v3003_v59 = vadd.f32 %v2870_v3, %v6209_v13  ;;  %v3778_v61 = vld [vmem:[%s6620_s4] ss:$0 sm:$0xff]  ;;  %v6936_v30 = vld [vmem:[#allocation119_spill] sm:$0xff] }
 0x934   : > { %3342 = vst.msk [vmem:[%s6347_s17 + $0x48] sm:$0xff] %vm453_vm0, %v3326_v11  ;;  %v6929_v58 = vsub.f32 %v6212_v56, %v6253_v31  ;;  %v3186_v49 = vmul.f32 %v3749_v7, %v3185_v40  ;;  %vm3187_vm14 = vweird.f32 %v6424_v24  ;;  %3756 = vrsqrt.f32 %v6489_v57  ;;  %v6930_v31 = vld [vmem:[#allocation73_spill] sm:$0xff]  ;;  %v6937_v8 = vld [vmem:[#allocation120_spill] sm:$0xff] }
 0x935   : > { %v3753_v12 = vpop.eup %3752  ;;  %vm3189_vm15 = vmor %vm3187_vm14, %vm3188_vm13  ;;  %v3224_v35 = vmul.f32 0.5, %v3223_v1  ;;  %v6500_v36 = vadd.f32 1e-05, %v3082_v16  ;;  %v3051_v14 = vmul.f32 0.03125, %v3003_v59  ;;  %v3067_v29 = vmul.f32 %v6148_v10, %v6148_v10 }
 0x936   : > { %v3304_v51 = vmul.f32 %v6929_v58, %v3180_v39  ;;  %v3190_v62 = vsel %vm3189_vm15, %v3749_v7, %v3186_v49  ;;  %v3202_v56 = vmul.f32 %v3753_v12, %v6470_v25  ;;  %v6932_v24 = vsub.f32 %v6930_v31, %v6931_v6 }
 0x937   : > { %v3225_v46 = vsub.f32 1.5, %v3224_v35  ;;  %vm3228_vm1 = vweird.f32 %v3751_v42  ;;  %3758 = vrsqrt.f32 %v6500_v36  ;;  %v3083_v23 = vsub.f32 %v3051_v14, %v3067_v29 }
 0x938   : > { %v3324_v13 = vadd.f32 %v6319_v52, %v3304_v51  ;;  %v3305_v41 = vmul.f32 %v6932_v24, %v3190_v62  ;;  %v3755_v4 = vpop.eup %3754  ;;  %v3203_v60 = vmul.f32 %v3753_v12, %v3202_v56  ;;  %vm3227_vm2 = vweird.f32 %v6441_v38 }
 0x939   : > { %v3226_v22 = vmul.f32 %v3751_v42, %v3225_v46  ;;  %v3212_v7 = vmul.f32 %v3755_v4, %v6482_v53  ;;  %vm3229_vm3 = vmor %vm3227_vm2, %vm3228_vm1  ;;  %v6515_v63 = vadd.f32 1e-05, %v3083_v23  ;;  %v6933_v5 = vsub.f32 %v6142_v27, %v6146_v28  ;;  %v2970_v28 = vpop.f32.mrf.mxu3  ;;  %v6941_v46 = vld [vmem:[#allocation96_spill] sm:$0xff] }
 0x93a   : > { %3340 = vst.msk [vmem:[%s6347_s17 + $0x38] sm:$0xff] %vm453_vm0, %v3324_v13  ;;  %v3325_v10 = vadd.f32 %v6319_v52, %v3305_v41  ;;  %v3757_v37 = vpop.eup %3756  ;;  %v3204_v21 = vmul.f32 0.5, %v3203_v60  ;;  %vm3208_vm4 = vweird.f32 %v3753_v12  ;;  %v1715_v50 = vadd.f32 %v6935_v47, %v6934_v9  ;;  %v6940_v41 = vld [vmem:[#allocation95_spill] sm:$0xff] }
 0x93b   : > { %v3230_v0 = vsel %vm3229_vm3, %v3751_v42, %v3226_v22  ;;  %v3213_v34 = vmul.f32 %v3755_v4, %v3212_v7  ;;  %v3252_v43 = vmul.f32 %v3757_v37, %v6489_v57  ;;  %3760 = vrsqrt.f32 %v6515_v63 }
 0x93c   : > { %3341 = vst.msk [vmem:[%s6347_s17 + $0x40] sm:$0xff] %vm453_vm0, %v3325_v10  ;;  %v3309_v45 = vmul.f32 %v6933_v5, %v3230_v0  ;;  %v3205_v32 = vsub.f32 1.5, %v3204_v21  ;;  %vm3207_vm5 = vweird.f32 %v6470_v25  ;;  %v2368_v27 = vadd.f32 %v2318_v18, %v1715_v50 }
 0x93d   : > { %v3759_v38 = vpop.eup %3758  ;;  %v3214_v2 = vmul.f32 0.5, %v3213_v34  ;;  %v3253_v54 = vmul.f32 %v3757_v37, %v3252_v43  ;;  %vm3209_vm6 = vmor %vm3207_vm5, %vm3208_vm4  ;;  %vm3218_vm7 = vweird.f32 %v3755_v4  ;;  %v3280_v3 = vmul.f32 %v3778_v61, %v6332_v15 }
 0x93e   : > { %v3329_v48 = vadd.f32 %v6319_v52, %v3309_v45  ;;  %v3206_v33 = vmul.f32 %v3753_v12, %v3205_v32  ;;  %v3232_v42 = vmul.f32 %v3759_v38, %v6500_v36  ;;  %vm3217_vm8 = vweird.f32 %v6482_v53 }
 0x93f   : > { %v3215_v26 = vsub.f32 1.5, %v3214_v2  ;;  %v3254_v44 = vmul.f32 0.5, %v3253_v54  ;;  %v6938_v40 = vsub.f32 %v6936_v30, %v6937_v8  ;;  %vm3258_vm9 = vweird.f32 %v3757_v37  ;;  %vm3219_vm10 = vmor %vm3217_vm8, %vm3218_vm7 }
 0x940   : > { %3345 = vst.msk [vmem:[%s6347_s17 + $0x60] sm:$0xff] %vm453_vm0, %v3329_v48  ;;  %v3210_v11 = vsel %vm3209_vm6, %v3753_v12, %v3206_v33  ;;  %v3233_v25 = vmul.f32 %v3759_v38, %v3232_v42  ;;  %v3020_v58 = vadd.f32 %v2970_v28, %v2368_v27  ;;  %vm3257_vm11 = vweird.f32 %v6489_v57 }
 0x941   : > { %v3307_v39 = vmul.f32 %v6938_v40, %v3210_v11  ;;  %v3216_v1 = vmul.f32 %v3755_v4, %v3215_v26  ;;  %v3255_v16 = vsub.f32 1.5, %v3254_v44  ;;  %v3761_v59 = vpop.eup %3760  ;;  %v6939_v14 = vsub.f32 %v6095_v55, %v6101_v17  ;;  %vm3259_vm12 = vmor %vm3257_vm11, %vm3258_vm9 }
 0x942   : > { %v3234_v15 = vmul.f32 0.5, %v3233_v25  ;;  %v3242_v53 = vmul.f32 %v3761_v59, %v6515_v63  ;;  %v3296_v35 = vsub.f32 %v3020_v58, %v3280_v3  ;;  %vm3238_vm13 = vweird.f32 %v3759_v38 }
 0x943   : > { %v3327_v51 = vadd.f32 %v6319_v52, %v3307_v39  ;;  %v3220_v49 = vsel %vm3219_vm10, %v3755_v4, %v3216_v1  ;;  %v3256_v12 = vmul.f32 %v3757_v37, %v3255_v16  ;;  %vm3237_vm14 = vweird.f32 %v6500_v36 }
 0x944   : > { %v3308_v29 = vmul.f32 %v6939_v14, %v3220_v49  ;;  %v3235_v13 = vsub.f32 1.5, %v3234_v15  ;;  %v3243_v62 = vmul.f32 %v3761_v59, %v3242_v53  ;;  %vm3239_vm15 = vmor %vm3237_vm14, %vm3238_vm13  ;;  %v6942_v4 = vsub.f32 %v6940_v41, %v6941_v46 }
 0x945   : > { %3343 = vst.msk [vmem:[%s6347_s17 + $0x50] sm:$0xff] %vm453_vm0, %v3327_v51  ;;  %v3260_v57 = vsel %vm3259_vm12, %v3757_v37, %v3256_v12  ;;  %vm3248_vm1 = vweird.f32 %v3761_v59  ;;  %vm3247_vm2 = vweird.f32 %v6515_v63  ;;  %v6943_v7 = vsub.f32 %v6157_v20, %v6163_v19 }
 0x946   : > { %v3328_v56 = vadd.f32 %v6319_v52, %v3308_v29  ;;  %v3312_v31 = vmul.f32 %v3296_v35, %v3260_v57  ;;  %v3236_v6 = vmul.f32 %v3759_v38, %v3235_v13  ;;  %v3244_v24 = vmul.f32 0.5, %v3243_v62  ;;  %vm3249_vm3 = vmor %vm3247_vm2, %vm3248_vm1 }
 0x948   : > { %3344 = vst.msk [vmem:[%s6347_s17 + $0x58] sm:$0xff] %vm453_vm0, %v3328_v56  ;;  %v3332_v55 = vadd.f32 %v6319_v52, %v3312_v31  ;;  %v3240_v17 = vsel %vm3239_vm15, %v3759_v38, %v3236_v6  ;;  %v3245_v23 = vsub.f32 1.5, %v3244_v24 }
 0x949   : > { %v3310_v60 = vmul.f32 %v6942_v4, %v3240_v17 }
 0x94a   : > { %3348 = vst.msk [vmem:[%s6347_s17 + $0x78] sm:$0xff] %vm453_vm0, %v3332_v55  ;;  %v3246_v36 = vmul.f32 %v3761_v59, %v3245_v23 }
 0x94b   : > { %v3330_v10 = vadd.f32 %v6319_v52, %v3310_v60 }
 0x94c   : > { %v3250_v22 = vsel %vm3249_vm3, %v3761_v59, %v3246_v36 }
 0x94d   : > { %3346 = vst.msk [vmem:[%s6347_s17 + $0x68] sm:$0xff] %vm453_vm0, %v3330_v10  ;;  %v3311_v37 = vmul.f32 %v6943_v7, %v3250_v22 }
 0x94f   : > { %v3331_v21 = vadd.f32 %v6319_v52, %v3311_v37 }
 0x951   : > { %3347 = vst.msk [vmem:[%s6347_s17 + $0x70] sm:$0xff] %vm453_vm0, %v3331_v21 }
 0x952   : > { %s3635_s9 = sshll.u32 %s3829_s24, 2  ;;  %s3636_s19 = sshll.u32 %s3833_s25, 5 }
 0x953   : > { %s3361_s14 = sadd.s32 %s3636_s19, %s3635_s9  ;;  %s3374_s13 = sshll.u32 %s6347_s17, 4  ;;  %s3375_s13 = int_to_ptr.vmem [resolvable:$true] %s3374_s13 }
 0x954   : > { %s3637_s10 = sshll.u32 %s3361_s14, 3  ;;  %s3850_s0 = smov 512  }
 0x955   : > { %s3363_s29 = scalar_lea.hbm %s6622_s6, %s3637_s10  ;;  %3641 = sst [smem:[#allocation6]] (%p3952_p8), %s3850_s0 }
 0x956   : > { %s3376_s18 = sshll.u32 %s3363_s29, 4  ;;  %s3851_s1 = smov 1024   ;;  %s3377_s18 = int_to_ptr.hbm [resolvable:$true] %s3376_s18 }
 0x957   : > { %3642 = sst [smem:[#allocation6 + $0x1]] (%p3952_p8), %s3851_s1  ;;  %s3852_s24 = smov 4  }
 0x958   : > { %3643 = sst [smem:[#allocation6 + $0x2]] (%p3952_p8), %s3852_s24  ;;  %s3853_s25 = smov 128  }
 0x959   : > { %3644 = sst [smem:[#allocation6 + $0x3]] (%p3952_p8), %s3853_s25  ;;  %s3854_s17 = smov 8  }
 0x95a   : > { %3645 = sst [smem:[#allocation6 + $0x4]] (%p3952_p8), %s3853_s25  ;;  %s3855_s9 = smov [#allocation5]  }
 0x95b   : > { %3646 = sst [smem:[#allocation6 + $0x5]] (%p3952_p8), %s3854_s17  ;;  %s3856_s19 = smov 0  }
 0x95c   : > { %3647 = dma.general (%p3952_p8), %s3375_s13, 2048, %s3377_s18, %s3350_s30, %s3855_s9, [#allocation6], %s3856_s19, 0  }
 0x95d PF: > { %p3653_p1 = scmp.ge.s32.totalorder %s3845_s28, 2  ;;  %s3404_s0 = sand.u32 1, %s3817_s21  }
 0x95e   : > { %s3405_s1 = scalar_lea.sflag [#allocation4], %s3404_s0 }
 0x95f   : > { %p3650_p2 = pnand %p3653_p1, %p3956_p9 }
 0x961   : > { %p3651_p3 = pneg %p3650_p2 }
 0x963   : > { %3812 = dma.done.wait (%p3651_p3), %s3405_s1, 2048  }
 0x964   : > { %3814 = vsyncadd (%p3651_p3), %s3405_s1, 4294965248  ;;  %s19_s28 = sadd.s32 1, %s3845_s28   ;;  %s6944_s21 = smov %s3821_s22 }
 0x965   : > { %p16_p4 = scmp.ge.s32.totalorder %s19_s28, 6   ;;  %s6945_s22 = smov %s3825_s23 }
 0x966   : > { %s6946_s23 = smov %s3964_s16  ;;  %s6947_s24 = smov %s3837_s26 }
 0x967   : > { %s6948_s25 = smov %s3841_s27  ;;  %s6949_s26 = smov %s6952_s7 }
 0x968   : > { %s6950_s27 = smov %s6956_s8  ;;  %18 = sbr.rel (!%p16_p4) target bundleno = 8 (0x8), region = 131 }
 0x96d   :  { %3411 = vsyncpa [#allocation4], 1 }
 0x96e   :  { %3413 = vsyncpa [#allocation4 + $0x1], 1 }

</bundles_post_ra>
